<compile_context>
chip_gen: v7x
topology: tpu7x:2x2x1
jax: 0.10.0
libtpu: 0.0.40
codegen_flags: <defaults>
</compile_context>

<pallas_src>
import math

import jax
import jax.numpy as jnp
from jax import lax
from jax.experimental import pallas as pl
from jax.experimental.pallas import tpu as pltpu

EPS = 1e-5
VMEM_LIMIT = 32 * 1024 * 1024      # safe on v5e/v6e (128 MiB) and v7x (64 MiB)


def _stats(y):
    """Per-channel (sum, sum_sq) of a (rows, C) f32 tile -> (2, C)."""
    return jnp.concatenate(
        [jnp.sum(y, axis=0, keepdims=True),
         jnp.sum(y * y, axis=0, keepdims=True)], axis=0)


# ---------------------------------------------------------------------------
# Kernels
# ---------------------------------------------------------------------------
def _matmul_stats_kernel(x_ref, w_ref, y_ref, st_ref):
    """Raw 1x1 conv: y = x @ w, plus per-tile BN partial statistics."""
    y = jnp.dot(x_ref[...], w_ref[...], preferred_element_type=jnp.float32)
    y_ref[...] = y
    st_ref[...] = _stats(y)


def _bn_relu_matmul_stats_kernel(x_ref, sc_ref, sh_ref, w_ref, y_ref, st_ref):
    """Previous BN+relu fused in: y = relu(x*scale+shift) @ w, plus stats."""
    a = jnp.maximum(x_ref[...] * sc_ref[...] + sh_ref[...], 0.0)
    y = jnp.dot(a, w_ref[...], preferred_element_type=jnp.float32)
    y_ref[...] = y
    st_ref[...] = _stats(y)


def _bn_add_relu_kernel(y_ref, sc_ref, sh_ref, res_ref, o_ref):
    """out = relu(y*scale + shift + residual)."""
    o_ref[...] = jnp.maximum(
        y_ref[...] * sc_ref[...] + sh_ref[...] + res_ref[...], 0.0)


def _make_conv3x3_kernel(H, W):
    """bn1+relu fused 3x3 conv (stride 1, pad 1) on one image as a single
    im2col matmul (H*W, 9*C1) @ (9*C1, C2).  The zero-padding halo is built
    in-register: each tap is a flat shift of the (H*W, C1) activation with
    zero fill at the array edges plus a column mask for the +-1 lateral taps.
    Only the 3x3 tap loop is unrolled (9 iterations)."""
    HW = H * W

    def kernel(x_ref, sc_ref, sh_ref, mask_ref, w_ref, y_ref, st_ref):
        C1 = x_ref.shape[-1]
        a = jnp.maximum(x_ref[...] * sc_ref[...] + sh_ref[...], 0.0)  # (HW,C1)
        cm = mask_ref[...]                                            # (HW,2)
        slabs = []
        for di in range(3):
            for dj in range(3):
                s = (di - 1) * W + (dj - 1)          # flat shift for this tap
                if s == 0:
                    sh = a
                elif s > 0:
                    sh = jnp.concatenate(
                        [a[s:, :], jnp.zeros((s, C1), a.dtype)], axis=0)
                else:
                    sh = jnp.concatenate(
                        [jnp.zeros((-s, C1), a.dtype), a[:HW + s, :]], axis=0)
                if dj == 0:                          # left neighbour of col 0
                    sh = sh * cm[:, 0:1]
                elif dj == 2:                        # right neighbour of W-1
                    sh = sh * cm[:, 1:2]
                slabs.append(sh)
        patch = jnp.concatenate(slabs, axis=1)                       # (HW,9*C1)
        y = jnp.dot(patch, w_ref[...], preferred_element_type=jnp.float32)
        y_ref[...] = y
        st_ref[...] = _stats(y)

    return kernel


# ---------------------------------------------------------------------------
# Wrapper helpers
# ---------------------------------------------------------------------------
def _bn_finalize(stats, gamma, beta, count):
    """Reduce per-tile (sum, sum_sq) -> BN affine (scale, shift). Tiny jnp op."""
    tot = jnp.sum(stats, axis=0)                                     # (2, C)
    mean = tot[0] / count
    var = jnp.maximum(tot[1] / count - mean * mean, 0.0)
    scale = gamma.reshape(-1) * lax.rsqrt(var + EPS)
    shift = beta.reshape(-1) - mean * scale
    return scale.reshape(1, -1), shift.reshape(1, -1)


def _pick_tile(M, target):
    tm = min(target, M)
    tm -= tm % 8
    while tm > 8 and M % tm:
        tm -= 8
    assert tm >= 8 and M % tm == 0, (M, tm)
    return tm


# ---------------------------------------------------------------------------
# Bottleneck forward (x in NCHW like PyTorch; kernels run on NHWC views)
# ---------------------------------------------------------------------------
def bottleneck_forward(x_nchw, params, *, tile_m=256):
    x = jnp.transpose(x_nchw, (0, 2, 3, 1)).astype(jnp.float32)   # NCHW->NHWC
    N, H, W, Cin = x.shape
    C1 = params["w1"].shape[1]          # planes
    C2 = params["w2"].shape[2]          # planes
    C3 = params["w3"].shape[1]          # expansion * planes
    assert Cin == C3, "downsample=None requires in_planes == expansion*planes"
    M, HW = N * H * W, H * W
    assert M % 8 == 0

    tm = _pick_tile(M, tile_m)
    nm = M // tm
    x2d = x.reshape(M, Cin)

    cp = pltpu.CompilerParams(dimension_semantics=("parallel",),
                              vmem_limit_bytes=VMEM_LIMIT)

    # ---- stage A: conv1 (1x1) tiled over M, raw output + partial stats ----
    y1, st1 = pl.pallas_call(
        _matmul_stats_kernel,
        out_shape=(jax.ShapeDtypeStruct((M, C1), jnp.float32),
                   jax.ShapeDtypeStruct((nm, 2, C1), jnp.float32)),
        grid=(nm,),
        in_specs=[pl.BlockSpec((tm, Cin), lambda i: (i, 0)),
                  pl.BlockSpec((Cin, C1), lambda i: (0, 0))],
        out_specs=(pl.BlockSpec((tm, C1), lambda i: (i, 0)),
                   pl.BlockSpec((None, 2, C1), lambda i: (i, 0, 0))),
        compiler_params=cp,
        cost_estimate=pl.CostEstimate(
            flops=2 * M * Cin * C1, transcendentals=0,
            bytes_accessed=4 * (M * Cin + Cin * C1 + M * C1)),
    )(x2d, params["w1"])
    scale1, shift1 = _bn_finalize(st1, params["g1"], params["b1"], M)

    # ---- stage B: bn1+relu fused + conv2 (3x3) as im2col matmul, per image -
    j_idx = jnp.arange(HW, dtype=jnp.int32) % W
    col_mask = jnp.stack([j_idx > 0, j_idx < W - 1], axis=1).astype(jnp.float32)
    w2flat = params["w2"].reshape(9 * C1, C2)          # row = tap*C1 + cin

    y2, st2 = pl.pallas_call(
        _make_conv3x3_kernel(H, W),
        out_shape=(jax.ShapeDtypeStruct((N, HW, C2), jnp.float32),
                   jax.ShapeDtypeStruct((N, 2, C2), jnp.float32)),
        grid=(N,),
        in_specs=[pl.BlockSpec((None, HW, C1), lambda n: (n, 0, 0)),
                  pl.BlockSpec((1, C1), lambda n: (0, 0)),
                  pl.BlockSpec((1, C1), lambda n: (0, 0)),
                  pl.BlockSpec((HW, 2), lambda n: (0, 0)),
                  pl.BlockSpec((9 * C1, C2), lambda n: (0, 0))],
        out_specs=(pl.BlockSpec((None, HW, C2), lambda n: (n, 0, 0)),
                   pl.BlockSpec((None, 2, C2), lambda n: (n, 0, 0))),
        compiler_params=cp,
        cost_estimate=pl.CostEstimate(
            flops=2 * M * 9 * C1 * C2, transcendentals=0,
            bytes_accessed=4 * (M * C1 + 9 * C1 * C2 + M * C2)),
    )(y1.reshape(N, HW, C1), scale1, shift1, col_mask, w2flat)
    scale2, shift2 = _bn_finalize(st2, params["g2"], params["b2"], M)

    # ---- stage C: bn2+relu fused + conv3 (1x1), tiled over M ---------------
    y3, st3 = pl.pallas_call(
        _bn_relu_matmul_stats_kernel,
        out_shape=(jax.ShapeDtypeStruct((M, C3), jnp.float32),
                   jax.ShapeDtypeStruct((nm, 2, C3), jnp.float32)),
        grid=(nm,),
        in_specs=[pl.BlockSpec((tm, C2), lambda i: (i, 0)),
                  pl.BlockSpec((1, C2), lambda i: (0, 0)),
                  pl.BlockSpec((1, C2), lambda i: (0, 0)),
                  pl.BlockSpec((C2, C3), lambda i: (0, 0))],
        out_specs=(pl.BlockSpec((tm, C3), lambda i: (i, 0)),
                   pl.BlockSpec((None, 2, C3), lambda i: (i, 0, 0))),
        compiler_params=cp,
        cost_estimate=pl.CostEstimate(
            flops=2 * M * C2 * C3, transcendentals=0,
            bytes_accessed=4 * (M * C2 + C2 * C3 + M * C3)),
    )(y2.reshape(M, C2), scale2, shift2, params["w3"])
    scale3, shift3 = _bn_finalize(st3, params["g3"], params["b3"], M)

    # ---- stage D: bn3 + residual add + relu, tiled over M ------------------
    out2d = pl.pallas_call(
        _bn_add_relu_kernel,
        out_shape=jax.ShapeDtypeStruct((M, C3), jnp.float32),
        grid=(nm,),
        in_specs=[pl.BlockSpec((tm, C3), lambda i: (i, 0)),
                  pl.BlockSpec((1, C3), lambda i: (0, 0)),
                  pl.BlockSpec((1, C3), lambda i: (0, 0)),
                  pl.BlockSpec((tm, C3), lambda i: (i, 0))],
        out_specs=pl.BlockSpec((tm, C3), lambda i: (i, 0)),
        compiler_params=cp,
        cost_estimate=pl.CostEstimate(
            flops=3 * M * C3, transcendentals=0,
            bytes_accessed=4 * 3 * M * C3),
    )(y3, scale3, shift3, x2d)

    out = out2d.reshape(N, H, W, C3)
    return jnp.transpose(out, (0, 3, 1, 2))                          # -> NCHW


# ---------------------------------------------------------------------------
# Pure-JAX reference (independent path via lax.conv) for validation
# ---------------------------------------------------------------------------
def _bn_train(y_nhwc, g, b):
    mean = jnp.mean(y_nhwc, axis=(0, 1, 2), keepdims=True)
    var = jnp.mean((y_nhwc - mean) ** 2, axis=(0, 1, 2), keepdims=True)
    return (y_nhwc - mean) / jnp.sqrt(var + EPS) * g.reshape(1, 1, 1, -1) \
        + b.reshape(1, 1, 1, -1)


def ref_bottleneck(x_nchw, params):
    x = jnp.transpose(x_nchw, (0, 2, 3, 1)).astype(jnp.float32)
    planes = params["w1"].shape[1]

    y = jnp.einsum("nhwc,cd->nhwd", x, params["w1"])
    y = jax.nn.relu(_bn_train(y, params["g1"], params["b1"]))

    w2_hwio = params["w2"].reshape(3, 3, planes, planes)
    y = lax.conv_general_dilated(
        y, w2_hwio, window_strides=(1, 1), padding=((1, 1), (1, 1)),
        dimension_numbers=("NHWC", "HWIO", "NHWC"))
    y = jax.nn.relu(_bn_train(y, params["g2"], params["b2"]))

    y = jnp.einsum("nhwc,cd->nhwd", y, params["w3"])
    y = _bn_train(y, params["g3"], params["b3"])
    y = jax.nn.relu(y + x)
    return jnp.transpose(y, (0, 3, 1, 2))


# ---------------------------------------------------------------------------
# Main
# ---------------------------------------------------------------------------
def make_params(key, in_planes, planes):
    expansion = 4
    ks = jax.random.split(key, 9)

    def uinit(k, shape, fan_in):
        bound = math.sqrt(1.0 / fan_in)
        return jax.random.uniform(k, shape, jnp.float32, -bound, bound)

    return {
        # conv weights (already transposed to (Cin, Cout) / (tap, Cin, Cout))
        "w1": uinit(ks[0], (in_planes, planes), in_planes),
        "w2": uinit(ks[1], (9, planes, planes), planes * 9),
        "w3": uinit(ks[2], (planes, expansion * planes), planes),
        # BN affine params (nontrivial but deterministic)
        "g1": 1.0 + 0.1 * jax.random.uniform(ks[3], (1, planes), jnp.float32),
        "b1": 0.1 * jax.random.uniform(ks[4], (1, planes), jnp.float32),
        "g2": 1.0 + 0.1 * jax.random.uniform(ks[5], (1, planes), jnp.float32),
        "b2": 0.1 * jax.random.uniform(ks[6], (1, planes), jnp.float32),
        "g3": 1.0 + 0.1 * jax.random.uniform(ks[7], (1, expansion * planes), jnp.float32),
        "b3": 0.1 * jax.random.uniform(ks[8], (1, expansion * planes), jnp.float32),
    }


if __name__ == "__main__":
    N, planes, H, W = 2, 4, 16, 16
    in_planes = 4 * planes   # downsample=None, stride=1 -> residual shapes match

    key = jax.random.PRNGKey(0)
    kx, kp = jax.random.split(key)
    x = jax.random.normal(kx, (N, in_planes, H, W), jnp.float32)  # NCHW like torch
    params = make_params(kp, in_planes, planes)

    fwd = jax.jit(bottleneck_forward)
    out = jax.block_until_ready(fwd(x, params))
    ref = ref_bottleneck(x, params)

    assert out.shape == (N, 4 * planes, H, W), out.shape
    max_err = float(jnp.max(jnp.abs(out - ref)))
    assert jnp.allclose(out, ref, atol=2e-3, rtol=2e-3), f"max_err={max_err}"

    print("KERNEL_OK")
</pallas_src>

<mosaic_0001>
module attributes {stable_mosaic.version = 11 : i64} {
  func.func @_matmul_stats_kernel(%arg0: i32, %arg1: memref<256x16xf32, #tpu.memory_space<vmem>>, %arg2: memref<16x4xf32, #tpu.memory_space<vmem>>, %arg3: memref<256x4xf32, #tpu.memory_space<vmem>>, %arg4: memref<1x2x4xf32, #tpu.memory_space<vmem>>) attributes {dimension_semantics = [#tpu.dimension_semantics<parallel>], iteration_bounds = array<i64: 2>, scalar_prefetch = 0 : i64, scratch_operands = 0 : i64, tpu.core_type = #tpu.core_type<tc>, window_params = [{transform_indices = @transform_0, window_bounds = array<i64: 256, 16>}, {pipeline_mode = #tpu.pipeline_mode<synchronous>, transform_indices = @transform_1, window_bounds = array<i64: 16, 4>}, {transform_indices = @transform_2, window_bounds = array<i64: 256, 4>}, {transform_indices = @transform_3, window_bounds = array<i64: 1, 2, 4>}]} {
    %c0 = arith.constant 0 : index
    %c0_0 = arith.constant 0 : index
    %0 = vector.load %arg1[%c0, %c0_0] : memref<256x16xf32, #tpu.memory_space<vmem>>, vector<256x16xf32>
    %c0_1 = arith.constant 0 : index
    %c0_2 = arith.constant 0 : index
    %1 = vector.load %arg2[%c0_1, %c0_2] : memref<16x4xf32, #tpu.memory_space<vmem>>, vector<16x4xf32>
    %cst = arith.constant dense<0.000000e+00> : vector<256x4xf32>
    %2 = tpu.matmul %0, %1, %cst {dimension_numbers = #tpu.dot_dimension_numbers<[1], [0], [0], [1], [0, 0, 1, 1], [], []>} : vector<256x16xf32>, vector<16x4xf32>, vector<256x4xf32> -> vector<256x4xf32>
    %c0_3 = arith.constant 0 : index
    %c0_4 = arith.constant 0 : index
    %3 = vector.load %arg3[%c0_3, %c0_4] : memref<256x4xf32, #tpu.memory_space<vmem>>, vector<256x4xf32>
    tpu.vector_store %arg3[%c0_3, %c0_4], %2 {strides = array<i32>} : memref<256x4xf32, #tpu.memory_space<vmem>>, vector<256x4xf32>,
    %cst_5 = arith.constant dense<0.000000e+00> : vector<4xf32>
    %4 = vector.multi_reduction <add>, %2, %cst_5 [0] : vector<256x4xf32> to vector<4xf32>
    %5 = vector.shape_cast %4 : vector<4xf32> to vector<1x4xf32>
    %6 = arith.mulf %2, %2 : vector<256x4xf32>
    %cst_6 = arith.constant dense<0.000000e+00> : vector<4xf32>
    %7 = vector.multi_reduction <add>, %6, %cst_6 [0] : vector<256x4xf32> to vector<4xf32>
    %8 = vector.shape_cast %7 : vector<4xf32> to vector<1x4xf32>
    %9 = tpu.concatenate %5, %8 in 0 : vector<1x4xf32>, vector<1x4xf32> -> vector<2x4xf32>
    %c0_7 = arith.constant 0 : index
    %c0_8 = arith.constant 0 : index
    %c0_9 = arith.constant 0 : index
    %10 = vector.load %arg4[%c0_7, %c0_8, %c0_9] : memref<1x2x4xf32, #tpu.memory_space<vmem>>, vector<1x2x4xf32>
    %11 = vector.shape_cast %10 : vector<1x2x4xf32> to vector<2x4xf32>
    %12 = vector.shape_cast %9 : vector<2x4xf32> to vector<1x2x4xf32>
    tpu.vector_store %arg4[%c0_7, %c0_8, %c0_9], %12 {strides = array<i32>} : memref<1x2x4xf32, #tpu.memory_space<vmem>>, vector<1x2x4xf32>,
    return
  }
  func.func @transform_0(%arg0: i32) -> (i32, i32) {
    %c0_i32 = arith.constant 0 : i32
    %c0_i32_0 = arith.constant 0 : i32
    return %arg0, %c0_i32 : i32, i32
  }
  func.func @transform_1(%arg0: i32) -> (i32, i32) {
    %c0_i32 = arith.constant 0 : i32
    %c0_i32_0 = arith.constant 0 : i32
    %c0_i32_1 = arith.constant 0 : i32
    return %c0_i32, %c0_i32_0 : i32, i32
  }
  func.func @transform_2(%arg0: i32) -> (i32, i32) {
    %c0_i32 = arith.constant 0 : i32
    %c0_i32_0 = arith.constant 0 : i32
    return %arg0, %c0_i32 : i32, i32
  }
  func.func @transform_3(%arg0: i32) -> (i32, i32, i32) {
    %c0_i32 = arith.constant 0 : i32
    %c0_i32_0 = arith.constant 0 : i32
    %c0_i32_1 = arith.constant 0 : i32
    return %arg0, %c0_i32, %c0_i32_0 : i32, i32, i32
  }
}

module attributes {stable_mosaic.version = 11 : i64} {
  func.func @_bn_add_relu_kernel(%arg0: i32, %arg1: memref<256x16xf32, #tpu.memory_space<vmem>>, %arg2: memref<1x16xf32, #tpu.memory_space<vmem>>, %arg3: memref<1x16xf32, #tpu.memory_space<vmem>>, %arg4: memref<256x16xf32, #tpu.memory_space<vmem>>, %arg5: memref<256x16xf32, #tpu.memory_space<vmem>>) attributes {dimension_semantics = [#tpu.dimension_semantics<parallel>], iteration_bounds = array<i64: 2>, scalar_prefetch = 0 : i64, scratch_operands = 0 : i64, tpu.core_type = #tpu.core_type<tc>, window_params = [{transform_indices = @transform_0, window_bounds = array<i64: 256, 16>}, {pipeline_mode = #tpu.pipeline_mode<synchronous>, transform_indices = @transform_1, window_bounds = array<i64: 1, 16>}, {pipeline_mode = #tpu.pipeline_mode<synchronous>, transform_indices = @transform_2, window_bounds = array<i64: 1, 16>}, {transform_indices = @transform_3, window_bounds = array<i64: 256, 16>}, {transform_indices = @transform_4, window_bounds = array<i64: 256, 16>}]} {
    %c0 = arith.constant 0 : index
    %c0_0 = arith.constant 0 : index
    %0 = vector.load %arg1[%c0, %c0_0] : memref<256x16xf32, #tpu.memory_space<vmem>>, vector<256x16xf32>
    %c0_1 = arith.constant 0 : index
    %c0_2 = arith.constant 0 : index
    %1 = vector.load %arg2[%c0_1, %c0_2] : memref<1x16xf32, #tpu.memory_space<vmem>>, vector<1x16xf32>
    %2 = vector.broadcast %1 : vector<1x16xf32> to vector<256x16xf32>
    %3 = arith.mulf %0, %2 : vector<256x16xf32>
    %c0_3 = arith.constant 0 : index
    %c0_4 = arith.constant 0 : index
    %4 = vector.load %arg3[%c0_3, %c0_4] : memref<1x16xf32, #tpu.memory_space<vmem>>, vector<1x16xf32>
    %5 = vector.broadcast %4 : vector<1x16xf32> to vector<256x16xf32>
    %6 = arith.addf %3, %5 : vector<256x16xf32>
    %c0_5 = arith.constant 0 : index
    %c0_6 = arith.constant 0 : index
    %7 = vector.load %arg4[%c0_5, %c0_6] : memref<256x16xf32, #tpu.memory_space<vmem>>, vector<256x16xf32>
    %8 = arith.addf %6, %7 : vector<256x16xf32>
    %cst = arith.constant 0.000000e+00 : f32
    %9 = vector.broadcast %cst : f32 to vector<256x16xf32>
    %10 = arith.maximumf %8, %9 : vector<256x16xf32>
    %c0_7 = arith.constant 0 : index
    %c0_8 = arith.constant 0 : index
    %11 = vector.load %arg5[%c0_7, %c0_8] : memref<256x16xf32, #tpu.memory_space<vmem>>, vector<256x16xf32>
    tpu.vector_store %arg5[%c0_7, %c0_8], %10 {strides = array<i32>} : memref<256x16xf32, #tpu.memory_space<vmem>>, vector<256x16xf32>,
    return
  }
  func.func @transform_0(%arg0: i32) -> (i32, i32) {
    %c0_i32 = arith.constant 0 : i32
    %c0_i32_0 = arith.constant 0 : i32
    return %arg0, %c0_i32 : i32, i32
  }
  func.func @transform_1(%arg0: i32) -> (i32, i32) {
    %c0_i32 = arith.constant 0 : i32
    %c0_i32_0 = arith.constant 0 : i32
    %c0_i32_1 = arith.constant 0 : i32
    return %c0_i32, %c0_i32_0 : i32, i32
  }
  func.func @transform_2(%arg0: i32) -> (i32, i32) {
    %c0_i32 = arith.constant 0 : i32
    %c0_i32_0 = arith.constant 0 : i32
    %c0_i32_1 = arith.constant 0 : i32
    return %c0_i32, %c0_i32_0 : i32, i32
  }
  func.func @transform_3(%arg0: i32) -> (i32, i32) {
    %c0_i32 = arith.constant 0 : i32
    %c0_i32_0 = arith.constant 0 : i32
    return %arg0, %c0_i32 : i32, i32
  }
  func.func @transform_4(%arg0: i32) -> (i32, i32) {
    %c0_i32 = arith.constant 0 : i32
    %c0_i32_0 = arith.constant 0 : i32
    return %arg0, %c0_i32 : i32, i32
  }
}

module attributes {stable_mosaic.version = 11 : i64} {
  func.func @kernel(%arg0: i32, %arg1: memref<1x256x4xf32, #tpu.memory_space<vmem>>, %arg2: memref<1x4xf32, #tpu.memory_space<vmem>>, %arg3: memref<1x4xf32, #tpu.memory_space<vmem>>, %arg4: memref<256x2xf32, #tpu.memory_space<vmem>>, %arg5: memref<36x4xf32, #tpu.memory_space<vmem>>, %arg6: memref<1x256x4xf32, #tpu.memory_space<vmem>>, %arg7: memref<1x2x4xf32, #tpu.memory_space<vmem>>) attributes {dimension_semantics = [#tpu.dimension_semantics<parallel>], iteration_bounds = array<i64: 2>, scalar_prefetch = 0 : i64, scratch_operands = 0 : i64, tpu.core_type = #tpu.core_type<tc>, window_params = [{transform_indices = @transform_0, window_bounds = array<i64: 1, 256, 4>}, {pipeline_mode = #tpu.pipeline_mode<synchronous>, transform_indices = @transform_1, window_bounds = array<i64: 1, 4>}, {pipeline_mode = #tpu.pipeline_mode<synchronous>, transform_indices = @transform_2, window_bounds = array<i64: 1, 4>}, {pipeline_mode = #tpu.pipeline_mode<synchronous>, transform_indices = @transform_3, window_bounds = array<i64: 256, 2>}, {pipeline_mode = #tpu.pipeline_mode<synchronous>, transform_indices = @transform_4, window_bounds = array<i64: 36, 4>}, {transform_indices = @transform_5, window_bounds = array<i64: 1, 256, 4>}, {transform_indices = @transform_6, window_bounds = array<i64: 1, 2, 4>}]} {
    %c0 = arith.constant 0 : index
    %c0_0 = arith.constant 0 : index
    %c0_1 = arith.constant 0 : index
    %0 = vector.load %arg1[%c0, %c0_0, %c0_1] : memref<1x256x4xf32, #tpu.memory_space<vmem>>, vector<1x256x4xf32>
    %1 = vector.shape_cast %0 : vector<1x256x4xf32> to vector<256x4xf32>
    %c0_2 = arith.constant 0 : index
    %c0_3 = arith.constant 0 : index
    %2 = vector.load %arg2[%c0_2, %c0_3] : memref<1x4xf32, #tpu.memory_space<vmem>>, vector<1x4xf32>
    %3 = vector.broadcast %2 : vector<1x4xf32> to vector<256x4xf32>
    %4 = arith.mulf %1, %3 : vector<256x4xf32>
    %c0_4 = arith.constant 0 : index
    %c0_5 = arith.constant 0 : index
    %5 = vector.load %arg3[%c0_4, %c0_5] : memref<1x4xf32, #tpu.memory_space<vmem>>, vector<1x4xf32>
    %6 = vector.broadcast %5 : vector<1x4xf32> to vector<256x4xf32>
    %7 = arith.addf %4, %6 : vector<256x4xf32>
    %cst = arith.constant 0.000000e+00 : f32
    %8 = vector.broadcast %cst : f32 to vector<256x4xf32>
    %9 = arith.maximumf %7, %8 : vector<256x4xf32>
    %c0_6 = arith.constant 0 : index
    %c0_7 = arith.constant 0 : index
    %10 = vector.load %arg4[%c0_6, %c0_7] : memref<256x2xf32, #tpu.memory_space<vmem>>, vector<256x2xf32>
    %cst_8 = arith.constant 0.000000e+00 : f32
    %11 = vector.broadcast %cst_8 : f32 to vector<17x4xf32>
    %12 = vector.extract_strided_slice %9 {offsets = [0, 0], sizes = [239, 4], strides = [1, 1]} : vector<256x4xf32> to vector<239x4xf32>
    %13 = tpu.concatenate %11, %12 in 0 : vector<17x4xf32>, vector<239x4xf32> -> vector<256x4xf32>
    %14 = vector.extract_strided_slice %10 {offsets = [0, 0], sizes = [256, 1], strides = [1, 1]} : vector<256x2xf32> to vector<256x1xf32>
    %15 = vector.broadcast %14 : vector<256x1xf32> to vector<256x4xf32>
    %16 = arith.mulf %13, %15 : vector<256x4xf32>
    %cst_9 = arith.constant 0.000000e+00 : f32
    %17 = vector.broadcast %cst_9 : f32 to vector<16x4xf32>
    %18 = vector.extract_strided_slice %9 {offsets = [0, 0], sizes = [240, 4], strides = [1, 1]} : vector<256x4xf32> to vector<240x4xf32>
    %19 = tpu.concatenate %17, %18 in 0 : vector<16x4xf32>, vector<240x4xf32> -> vector<256x4xf32>
    %cst_10 = arith.constant 0.000000e+00 : f32
    %20 = vector.broadcast %cst_10 : f32 to vector<15x4xf32>
    %21 = vector.extract_strided_slice %9 {offsets = [0, 0], sizes = [241, 4], strides = [1, 1]} : vector<256x4xf32> to vector<241x4xf32>
    %22 = tpu.concatenate %20, %21 in 0 : vector<15x4xf32>, vector<241x4xf32> -> vector<256x4xf32>
    %23 = vector.extract_strided_slice %10 {offsets = [0, 1], sizes = [256, 1], strides = [1, 1]} : vector<256x2xf32> to vector<256x1xf32>
    %24 = vector.broadcast %23 : vector<256x1xf32> to vector<256x4xf32>
    %25 = arith.mulf %22, %24 : vector<256x4xf32>
    %cst_11 = arith.constant 0.000000e+00 : f32
    %26 = vector.broadcast %cst_11 : f32 to vector<1x4xf32>
    %27 = vector.extract_strided_slice %9 {offsets = [0, 0], sizes = [255, 4], strides = [1, 1]} : vector<256x4xf32> to vector<255x4xf32>
    %28 = tpu.concatenate %26, %27 in 0 : vector<1x4xf32>, vector<255x4xf32> -> vector<256x4xf32>
    %29 = vector.extract_strided_slice %10 {offsets = [0, 0], sizes = [256, 1], strides = [1, 1]} : vector<256x2xf32> to vector<256x1xf32>
    %30 = vector.broadcast %29 : vector<256x1xf32> to vector<256x4xf32>
    %31 = arith.mulf %28, %30 : vector<256x4xf32>
    %32 = vector.extract_strided_slice %9 {offsets = [1, 0], sizes = [255, 4], strides = [1, 1]} : vector<256x4xf32> to vector<255x4xf32>
    %cst_12 = arith.constant 0.000000e+00 : f32
    %33 = vector.broadcast %cst_12 : f32 to vector<1x4xf32>
    %34 = tpu.concatenate %32, %33 in 0 : vector<255x4xf32>, vector<1x4xf32> -> vector<256x4xf32>
    %35 = vector.extract_strided_slice %10 {offsets = [0, 1], sizes = [256, 1], strides = [1, 1]} : vector<256x2xf32> to vector<256x1xf32>
    %36 = vector.broadcast %35 : vector<256x1xf32> to vector<256x4xf32>
    %37 = arith.mulf %34, %36 : vector<256x4xf32>
    %38 = vector.extract_strided_slice %9 {offsets = [15, 0], sizes = [241, 4], strides = [1, 1]} : vector<256x4xf32> to vector<241x4xf32>
    %cst_13 = arith.constant 0.000000e+00 : f32
    %39 = vector.broadcast %cst_13 : f32 to vector<15x4xf32>
    %40 = tpu.concatenate %38, %39 in 0 : vector<241x4xf32>, vector<15x4xf32> -> vector<256x4xf32>
    %41 = vector.extract_strided_slice %10 {offsets = [0, 0], sizes = [256, 1], strides = [1, 1]} : vector<256x2xf32> to vector<256x1xf32>
    %42 = vector.broadcast %41 : vector<256x1xf32> to vector<256x4xf32>
    %43 = arith.mulf %40, %42 : vector<256x4xf32>
    %44 = vector.extract_strided_slice %9 {offsets = [16, 0], sizes = [240, 4], strides = [1, 1]} : vector<256x4xf32> to vector<240x4xf32>
    %cst_14 = arith.constant 0.000000e+00 : f32
    %45 = vector.broadcast %cst_14 : f32 to vector<16x4xf32>
    %46 = tpu.concatenate %44, %45 in 0 : vector<240x4xf32>, vector<16x4xf32> -> vector<256x4xf32>
    %47 = vector.extract_strided_slice %9 {offsets = [17, 0], sizes = [239, 4], strides = [1, 1]} : vector<256x4xf32> to vector<239x4xf32>
    %cst_15 = arith.constant 0.000000e+00 : f32
    %48 = vector.broadcast %cst_15 : f32 to vector<17x4xf32>
    %49 = tpu.concatenate %47, %48 in 0 : vector<239x4xf32>, vector<17x4xf32> -> vector<256x4xf32>
    %50 = vector.extract_strided_slice %10 {offsets = [0, 1], sizes = [256, 1], strides = [1, 1]} : vector<256x2xf32> to vector<256x1xf32>
    %51 = vector.broadcast %50 : vector<256x1xf32> to vector<256x4xf32>
    %52 = arith.mulf %49, %51 : vector<256x4xf32>
    %53 = tpu.concatenate %16, %19, %25, %31, %9, %37, %43, %46, %52 in 1 : vector<256x4xf32>, vector<256x4xf32>, vector<256x4xf32>, vector<256x4xf32>, vector<256x4xf32>, vector<256x4xf32>, vector<256x4xf32>, vector<256x4xf32>, vector<256x4xf32> -> vector<256x36xf32>
    %c0_16 = arith.constant 0 : index
    %c0_17 = arith.constant 0 : index
    %54 = vector.load %arg5[%c0_16, %c0_17] : memref<36x4xf32, #tpu.memory_space<vmem>>, vector<36x4xf32>
    %cst_18 = arith.constant dense<0.000000e+00> : vector<256x4xf32>
    %55 = tpu.matmul %53, %54, %cst_18 {dimension_numbers = #tpu.dot_dimension_numbers<[1], [0], [0], [1], [0, 0, 1, 1], [], []>} : vector<256x36xf32>, vector<36x4xf32>, vector<256x4xf32> -> vector<256x4xf32>
    %c0_19 = arith.constant 0 : index
    %c0_20 = arith.constant 0 : index
    %c0_21 = arith.constant 0 : index
    %56 = vector.load %arg6[%c0_19, %c0_20, %c0_21] : memref<1x256x4xf32, #tpu.memory_space<vmem>>, vector<1x256x4xf32>
    %57 = vector.shape_cast %56 : vector<1x256x4xf32> to vector<256x4xf32>
    %58 = vector.shape_cast %55 : vector<256x4xf32> to vector<1x256x4xf32>
    tpu.vector_store %arg6[%c0_19, %c0_20, %c0_21], %58 {strides = array<i32>} : memref<1x256x4xf32, #tpu.memory_space<vmem>>, vector<1x256x4xf32>,
    %cst_22 = arith.constant dense<0.000000e+00> : vector<4xf32>
    %59 = vector.multi_reduction <add>, %55, %cst_22 [0] : vector<256x4xf32> to vector<4xf32>
    %60 = vector.shape_cast %59 : vector<4xf32> to vector<1x4xf32>
    %61 = arith.mulf %55, %55 : vector<256x4xf32>
    %cst_23 = arith.constant dense<0.000000e+00> : vector<4xf32>
    %62 = vector.multi_reduction <add>, %61, %cst_23 [0] : vector<256x4xf32> to vector<4xf32>
    %63 = vector.shape_cast %62 : vector<4xf32> to vector<1x4xf32>
    %64 = tpu.concatenate %60, %63 in 0 : vector<1x4xf32>, vector<1x4xf32> -> vector<2x4xf32>
    %c0_24 = arith.constant 0 : index
    %c0_25 = arith.constant 0 : index
    %c0_26 = arith.constant 0 : index
    %65 = vector.load %arg7[%c0_24, %c0_25, %c0_26] : memref<1x2x4xf32, #tpu.memory_space<vmem>>, vector<1x2x4xf32>
    %66 = vector.shape_cast %65 : vector<1x2x4xf32> to vector<2x4xf32>
    %67 = vector.shape_cast %64 : vector<2x4xf32> to vector<1x2x4xf32>
    tpu.vector_store %arg7[%c0_24, %c0_25, %c0_26], %67 {strides = array<i32>} : memref<1x2x4xf32, #tpu.memory_space<vmem>>, vector<1x2x4xf32>,
    return
  }
  func.func @transform_0(%arg0: i32) -> (i32, i32, i32) {
    %c0_i32 = arith.constant 0 : i32
    %c0_i32_0 = arith.constant 0 : i32
    %c0_i32_1 = arith.constant 0 : i32
    return %arg0, %c0_i32, %c0_i32_0 : i32, i32, i32
  }
  func.func @transform_1(%arg0: i32) -> (i32, i32) {
    %c0_i32 = arith.constant 0 : i32
    %c0_i32_0 = arith.constant 0 : i32
    %c0_i32_1 = arith.constant 0 : i32
    return %c0_i32, %c0_i32_0 : i32, i32
  }
  func.func @transform_2(%arg0: i32) -> (i32, i32) {
    %c0_i32 = arith.constant 0 : i32
    %c0_i32_0 = arith.constant 0 : i32
    %c0_i32_1 = arith.constant 0 : i32
    return %c0_i32, %c0_i32_0 : i32, i32
  }
  func.func @transform_3(%arg0: i32) -> (i32, i32) {
    %c0_i32 = arith.constant 0 : i32
    %c0_i32_0 = arith.constant 0 : i32
    %c0_i32_1 = arith.constant 0 : i32
    return %c0_i32, %c0_i32_0 : i32, i32
  }
  func.func @transform_4(%arg0: i32) -> (i32, i32) {
    %c0_i32 = arith.constant 0 : i32
    %c0_i32_0 = arith.constant 0 : i32
    %c0_i32_1 = arith.constant 0 : i32
    return %c0_i32, %c0_i32_0 : i32, i32
  }
  func.func @transform_5(%arg0: i32) -> (i32, i32, i32) {
    %c0_i32 = arith.constant 0 : i32
    %c0_i32_0 = arith.constant 0 : i32
    %c0_i32_1 = arith.constant 0 : i32
    return %arg0, %c0_i32, %c0_i32_0 : i32, i32, i32
  }
  func.func @transform_6(%arg0: i32) -> (i32, i32, i32) {
    %c0_i32 = arith.constant 0 : i32
    %c0_i32_0 = arith.constant 0 : i32
    %c0_i32_1 = arith.constant 0 : i32
    return %arg0, %c0_i32, %c0_i32_0 : i32, i32, i32
  }
}

module attributes {stable_mosaic.version = 11 : i64} {
  func.func @_bn_relu_matmul_stats_kernel(%arg0: i32, %arg1: memref<256x4xf32, #tpu.memory_space<vmem>>, %arg2: memref<1x4xf32, #tpu.memory_space<vmem>>, %arg3: memref<1x4xf32, #tpu.memory_space<vmem>>, %arg4: memref<4x16xf32, #tpu.memory_space<vmem>>, %arg5: memref<256x16xf32, #tpu.memory_space<vmem>>, %arg6: memref<1x2x16xf32, #tpu.memory_space<vmem>>) attributes {dimension_semantics = [#tpu.dimension_semantics<parallel>], iteration_bounds = array<i64: 2>, scalar_prefetch = 0 : i64, scratch_operands = 0 : i64, tpu.core_type = #tpu.core_type<tc>, window_params = [{transform_indices = @transform_0, window_bounds = array<i64: 256, 4>}, {pipeline_mode = #tpu.pipeline_mode<synchronous>, transform_indices = @transform_1, window_bounds = array<i64: 1, 4>}, {pipeline_mode = #tpu.pipeline_mode<synchronous>, transform_indices = @transform_2, window_bounds = array<i64: 1, 4>}, {pipeline_mode = #tpu.pipeline_mode<synchronous>, transform_indices = @transform_3, window_bounds = array<i64: 4, 16>}, {transform_indices = @transform_4, window_bounds = array<i64: 256, 16>}, {transform_indices = @transform_5, window_bounds = array<i64: 1, 2, 16>}]} {
    %c0 = arith.constant 0 : index
    %c0_0 = arith.constant 0 : index
    %0 = vector.load %arg1[%c0, %c0_0] : memref<256x4xf32, #tpu.memory_space<vmem>>, vector<256x4xf32>
    %c0_1 = arith.constant 0 : index
    %c0_2 = arith.constant 0 : index
    %1 = vector.load %arg2[%c0_1, %c0_2] : memref<1x4xf32, #tpu.memory_space<vmem>>, vector<1x4xf32>
    %2 = vector.broadcast %1 : vector<1x4xf32> to vector<256x4xf32>
    %3 = arith.mulf %0, %2 : vector<256x4xf32>
    %c0_3 = arith.constant 0 : index
    %c0_4 = arith.constant 0 : index
    %4 = vector.load %arg3[%c0_3, %c0_4] : memref<1x4xf32, #tpu.memory_space<vmem>>, vector<1x4xf32>
    %5 = vector.broadcast %4 : vector<1x4xf32> to vector<256x4xf32>
    %6 = arith.addf %3, %5 : vector<256x4xf32>
    %cst = arith.constant 0.000000e+00 : f32
    %7 = vector.broadcast %cst : f32 to vector<256x4xf32>
    %8 = arith.maximumf %6, %7 : vector<256x4xf32>
    %c0_5 = arith.constant 0 : index
    %c0_6 = arith.constant 0 : index
    %9 = vector.load %arg4[%c0_5, %c0_6] : memref<4x16xf32, #tpu.memory_space<vmem>>, vector<4x16xf32>
    %cst_7 = arith.constant dense<0.000000e+00> : vector<256x16xf32>
    %10 = tpu.matmul %8, %9, %cst_7 {dimension_numbers = #tpu.dot_dimension_numbers<[1], [0], [0], [1], [0, 0, 1, 1], [], []>} : vector<256x4xf32>, vector<4x16xf32>, vector<256x16xf32> -> vector<256x16xf32>
    %c0_8 = arith.constant 0 : index
    %c0_9 = arith.constant 0 : index
    %11 = vector.load %arg5[%c0_8, %c0_9] : memref<256x16xf32, #tpu.memory_space<vmem>>, vector<256x16xf32>
    tpu.vector_store %arg5[%c0_8, %c0_9], %10 {strides = array<i32>} : memref<256x16xf32, #tpu.memory_space<vmem>>, vector<256x16xf32>,
    %cst_10 = arith.constant dense<0.000000e+00> : vector<16xf32>
    %12 = vector.multi_reduction <add>, %10, %cst_10 [0] : vector<256x16xf32> to vector<16xf32>
    %13 = vector.shape_cast %12 : vector<16xf32> to vector<1x16xf32>
    %14 = arith.mulf %10, %10 : vector<256x16xf32>
    %cst_11 = arith.constant dense<0.000000e+00> : vector<16xf32>
    %15 = vector.multi_reduction <add>, %14, %cst_11 [0] : vector<256x16xf32> to vector<16xf32>
    %16 = vector.shape_cast %15 : vector<16xf32> to vector<1x16xf32>
    %17 = tpu.concatenate %13, %16 in 0 : vector<1x16xf32>, vector<1x16xf32> -> vector<2x16xf32>
    %c0_12 = arith.constant 0 : index
    %c0_13 = arith.constant 0 : index
    %c0_14 = arith.constant 0 : index
    %18 = vector.load %arg6[%c0_12, %c0_13, %c0_14] : memref<1x2x16xf32, #tpu.memory_space<vmem>>, vector<1x2x16xf32>
    %19 = vector.shape_cast %18 : vector<1x2x16xf32> to vector<2x16xf32>
    %20 = vector.shape_cast %17 : vector<2x16xf32> to vector<1x2x16xf32>
    tpu.vector_store %arg6[%c0_12, %c0_13, %c0_14], %20 {strides = array<i32>} : memref<1x2x16xf32, #tpu.memory_space<vmem>>, vector<1x2x16xf32>,
    return
  }
  func.func @transform_0(%arg0: i32) -> (i32, i32) {
    %c0_i32 = arith.constant 0 : i32
    %c0_i32_0 = arith.constant 0 : i32
    return %arg0, %c0_i32 : i32, i32
  }
  func.func @transform_1(%arg0: i32) -> (i32, i32) {
    %c0_i32 = arith.constant 0 : i32
    %c0_i32_0 = arith.constant 0 : i32
    %c0_i32_1 = arith.constant 0 : i32
    return %c0_i32, %c0_i32_0 : i32, i32
  }
  func.func @transform_2(%arg0: i32) -> (i32, i32) {
    %c0_i32 = arith.constant 0 : i32
    %c0_i32_0 = arith.constant 0 : i32
    %c0_i32_1 = arith.constant 0 : i32
    return %c0_i32, %c0_i32_0 : i32, i32
  }
  func.func @transform_3(%arg0: i32) -> (i32, i32) {
    %c0_i32 = arith.constant 0 : i32
    %c0_i32_0 = arith.constant 0 : i32
    %c0_i32_1 = arith.constant 0 : i32
    return %c0_i32, %c0_i32_0 : i32, i32
  }
  func.func @transform_4(%arg0: i32) -> (i32, i32) {
    %c0_i32 = arith.constant 0 : i32
    %c0_i32_0 = arith.constant 0 : i32
    return %arg0, %c0_i32 : i32, i32
  }
  func.func @transform_5(%arg0: i32) -> (i32, i32, i32) {
    %c0_i32 = arith.constant 0 : i32
    %c0_i32_0 = arith.constant 0 : i32
    %c0_i32_1 = arith.constant 0 : i32
    return %arg0, %c0_i32, %c0_i32_0 : i32, i32, i32
  }
}

</mosaic_0001>

<bundles_post_ra>
// kernel: bottleneck_forward.7
= control target key start
LH: loop header
LB: loop body
LE: loop exit
PB: predicated region body
PF: predicated region fallthrough
CT: control target
= control target key end

     0   :  { %s586_s15 = smov 0   ;;  %s819_s0 = inlined_call_operand.vmem [shape: f32[512,16], index: 0, kind: input, shape index: {}]   ;;  %s820_s1 = inlined_call_operand.vmem [shape: f32[1,16], index: 1, kind: input, shape index: {}]   ;;  %s821_s2 = inlined_call_operand.vmem [shape: f32[1,16], index: 2, kind: input, shape index: {}]   ;;  %s822_s3 = inlined_call_operand.vmem [shape: f32[512,16], index: 3, kind: input, shape index: {}]   ;;  %s823_s4 = inlined_call_operand.vmem [shape: f32[512,16], index: 4, kind: output, shape index: {}]  }
   0x1 LB: > { %s530_s16 = sadd.s32 4294967295, %s559_s15   ;;  %p534_p0 = scmp.ge.s32.totalorder %s559_s15, 1  ;;  %s559_s15 = sphi %s586_s15, %s14_s15  }
   0x2   : > { %p174_p1 = scmp.lt.s32.totalorder %s559_s15, 3 }
   0x4   : > { %p175_p2 = pnand %p534_p0, %p174_p1 }
   0x5   : > { %s535_s17 = sshll.u32 (!%p175_p2), %s530_s16, 5  ;;  %v599_v0 = vld [vmem:[%s820_s1] ss:$0 sm:$0xff] (!%p175_p2)  ;;  %vm429_vm0 = vcmask (!%p175_p2), 130048  }
   0x6   : > { %178 = sbr.rel (%p175_p2) target bundleno = 55 (0x37), region = 36  ;;  %p206_p3 = scmp.lt.s32.totalorder (!%p175_p2), %s535_s17, 63  ;;  %v617_v2 = vld [vmem:[%s821_s2] ss:$0 sm:$0xff] (!%p175_p2) }
   0xd   : > { %s825_s17 = smov (!%p206_p3, %s535_s17), 63 }
   0xe   : > { %s594_s18 = sshll.u32 %s825_s17, 3 }
   0xf   : > { %s605_s23 = scalar_lea.vmem %s819_s0, %s594_s18  ;;  %s611_s26 = scalar_lea.vmem %s822_s3, %s594_s18 }
  0x10   : > { %v223_v1 = vld [vmem:[%s605_s23] sm:$0xff]  ;;  %v224_v3 = vld [vmem:[%s605_s23 + $0x8] sm:$0xff]  ;;  %v225_v7 = vld [vmem:[%s605_s23 + $0x10] sm:$0xff]  ;;  %s647_s5 = scalar_lea.vmem %s823_s4, %s594_s18 }
  0x11   : > { %v262_v4 = vmul.f32 %v599_v0, %v223_v1  ;;  %v333_v5 = vld [vmem:[%s611_s26] sm:$0xff]  ;;  %v263_v6 = vmul.f32 %v599_v0, %v224_v3  ;;  %v334_v8 = vld [vmem:[%s611_s26 + $0x8] sm:$0xff]  ;;  %v264_v9 = vmul.f32 %v599_v0, %v225_v7  ;;  %v226_v10 = vld [vmem:[%s605_s23 + $0x18] sm:$0xff] }
  0x12   : > { %v227_v11 = vld [vmem:[%s605_s23 + $0x20] sm:$0xff]  ;;  %v335_v14 = vld [vmem:[%s611_s26 + $0x10] sm:$0xff]  ;;  %v265_v15 = vmul.f32 %v599_v0, %v226_v10  ;;  %v336_v16 = vld [vmem:[%s611_s26 + $0x18] sm:$0xff] }
  0x13   : > { %v301_v12 = vadd.f32 %v617_v2, %v262_v4  ;;  %v302_v13 = vadd.f32 %v617_v2, %v263_v6  ;;  %v266_v17 = vmul.f32 %v599_v0, %v227_v11  ;;  %v228_v18 = vld [vmem:[%s605_s23 + $0x28] sm:$0xff]  ;;  %v303_v19 = vadd.f32 %v617_v2, %v264_v9  ;;  %v337_v20 = vld [vmem:[%s611_s26 + $0x20] sm:$0xff]  ;;  %v229_v22 = vld [vmem:[%s605_s23 + $0x30] sm:$0xff] }
  0x14   : > { %v267_v21 = vmul.f32 %v599_v0, %v228_v18  ;;  %v230_v23 = vld [vmem:[%s605_s23 + $0x38] sm:$0xff]  ;;  %v304_v26 = vadd.f32 %v617_v2, %v265_v15  ;;  %v338_v28 = vld [vmem:[%s611_s26 + $0x28] sm:$0xff]  ;;  %v268_v31 = vmul.f32 %v599_v0, %v229_v22  ;;  %v231_v33 = vld [vmem:[%s605_s23 + $0x40] sm:$0xff] }
  0x15   : > { %v365_v24 = vadd.f32 %v333_v5, %v301_v12  ;;  %v366_v25 = vadd.f32 %v334_v8, %v302_v13  ;;  %v305_v27 = vadd.f32 %v617_v2, %v266_v17  ;;  %v367_v29 = vadd.f32 %v335_v14, %v303_v19  ;;  %v232_v34 = vld [vmem:[%s605_s23 + $0x48] sm:$0xff]  ;;  %v339_v39 = vld [vmem:[%s611_s26 + $0x30] sm:$0xff]  ;;  %v340_v40 = vld [vmem:[%s611_s26 + $0x38] sm:$0xff] }
  0x16   : > { %v306_v30 = vadd.f32 %v617_v2, %v267_v21  ;;  %v269_v32 = vmul.f32 %v599_v0, %v230_v23  ;;  %v368_v37 = vadd.f32 %v336_v16, %v304_v26  ;;  %v233_v41 = vld [vmem:[%s605_s23 + $0x50] sm:$0xff]  ;;  %v307_v44 = vadd.f32 %v617_v2, %v268_v31  ;;  %v234_v46 = vld [vmem:[%s605_s23 + $0x58] sm:$0xff]  ;;  %v235_v47 = vld [vmem:[%s605_s23 + $0x60] sm:$0xff] }
  0x17   : > { %v397_v35 = vmax.f32 %v365_v24, 0.0  ;;  %v398_v36 = vmax.f32 %v366_v25, 0.0  ;;  %v369_v38 = vadd.f32 %v337_v20, %v305_v27  ;;  %v399_v42 = vmax.f32 %v367_v29, 0.0  ;;  %v236_v52 = vld [vmem:[%s605_s23 + $0x68] sm:$0xff]  ;;  %v341_v56 = vld [vmem:[%s611_s26 + $0x40] sm:$0xff]  ;;  %v343_v61 = vld [vmem:[%s611_s26 + $0x50] sm:$0xff] }
  0x18   : > { %v370_v43 = vadd.f32 %v338_v28, %v306_v30  ;;  %v308_v45 = vadd.f32 %v617_v2, %v269_v32  ;;  %v400_v48 = vmax.f32 %v368_v37, 0.0  ;;  %v270_v50 = vmul.f32 %v599_v0, %v231_v33  ;;  %v342_v57 = vld [vmem:[%s611_s26 + $0x48] sm:$0xff]  ;;  %v237_v1 = vld [vmem:[%s605_s23 + $0x70] sm:$0xff]  ;;  %v238_v3 = vld [vmem:[%s605_s23 + $0x78] sm:$0xff] }
  0x19   : > { %430 = vst.msk [vmem:[%s647_s5] sm:$0xff] %vm429_vm0, %v397_v35  ;;  %431 = vst.msk [vmem:[%s647_s5 + $0x8] sm:$0xff] %vm429_vm0, %v398_v36  ;;  %v401_v49 = vmax.f32 %v369_v38, 0.0  ;;  %v271_v51 = vmul.f32 %v599_v0, %v232_v34  ;;  %v371_v54 = vadd.f32 %v339_v39, %v307_v44  ;;  %v272_v58 = vmul.f32 %v599_v0, %v233_v41  ;;  %v344_v7 = vld [vmem:[%s611_s26 + $0x58] sm:$0xff]  ;;  %v345_v8 = vld [vmem:[%s611_s26 + $0x60] sm:$0xff] }
  0x1a   : > { %432 = vst.msk [vmem:[%s647_s5 + $0x10] sm:$0xff] %vm429_vm0, %v399_v42  ;;  %v402_v53 = vmax.f32 %v370_v43, 0.0  ;;  %v372_v55 = vadd.f32 %v340_v40, %v308_v45  ;;  %433 = vst.msk [vmem:[%s647_s5 + $0x18] sm:$0xff] %vm429_vm0, %v400_v48  ;;  %v309_v59 = vadd.f32 %v617_v2, %v270_v50  ;;  %v273_v62 = vmul.f32 %v599_v0, %v234_v46  ;;  %v346_v14 = vld [vmem:[%s611_s26 + $0x68] sm:$0xff]  ;;  %v239_v19 = vld [vmem:[%s605_s23 + $0x80] sm:$0xff] }
  0x1b   : > { %434 = vst.msk [vmem:[%s647_s5 + $0x20] sm:$0xff] %vm429_vm0, %v401_v49  ;;  %v310_v60 = vadd.f32 %v617_v2, %v271_v51  ;;  %v274_v63 = vmul.f32 %v599_v0, %v235_v47  ;;  %v403_v4 = vmax.f32 %v371_v54, 0.0  ;;  %v311_v6 = vadd.f32 %v617_v2, %v272_v58  ;;  %v240_v20 = vld [vmem:[%s605_s23 + $0x88] sm:$0xff]  ;;  %v347_v25 = vld [vmem:[%s611_s26 + $0x70] sm:$0xff]  ;;  %v348_v26 = vld [vmem:[%s611_s26 + $0x78] sm:$0xff] }
  0x1c   : > { %435 = vst.msk [vmem:[%s647_s5 + $0x28] sm:$0xff] %vm429_vm0, %v402_v53  ;;  %v404_v5 = vmax.f32 %v372_v55, 0.0  ;;  %v275_v9 = vmul.f32 %v599_v0, %v236_v52  ;;  %v373_v10 = vadd.f32 %v341_v56, %v309_v59  ;;  %v312_v12 = vadd.f32 %v617_v2, %v273_v62  ;;  %v241_v27 = vld [vmem:[%s605_s23 + $0x90] sm:$0xff]  ;;  %v242_v32 = vld [vmem:[%s605_s23 + $0x98] sm:$0xff]  ;;  %v243_v33 = vld [vmem:[%s605_s23 + $0xa0] sm:$0xff] }
  0x1d   : > { %v374_v11 = vadd.f32 %v342_v57, %v310_v60  ;;  %v313_v13 = vadd.f32 %v617_v2, %v274_v63  ;;  %436 = vst.msk [vmem:[%s647_s5 + $0x30] sm:$0xff] %vm429_vm0, %v403_v4  ;;  %v375_v15 = vadd.f32 %v343_v61, %v311_v6  ;;  %v276_v17 = vmul.f32 %v599_v0, %v237_v1  ;;  %v244_v38 = vld [vmem:[%s605_s23 + $0xa8] sm:$0xff]  ;;  %v349_v42 = vld [vmem:[%s611_s26 + $0x80] sm:$0xff]  ;;  %v351_v47 = vld [vmem:[%s611_s26 + $0x90] sm:$0xff] }
  0x1e   : > { %437 = vst.msk [vmem:[%s647_s5 + $0x38] sm:$0xff] %vm429_vm0, %v404_v5  ;;  %v314_v16 = vadd.f32 %v617_v2, %v275_v9  ;;  %v277_v18 = vmul.f32 %v599_v0, %v238_v3  ;;  %v405_v21 = vmax.f32 %v373_v10, 0.0  ;;  %v376_v23 = vadd.f32 %v344_v7, %v312_v12  ;;  %v350_v43 = vld [vmem:[%s611_s26 + $0x88] sm:$0xff]  ;;  %v245_v50 = vld [vmem:[%s605_s23 + $0xb0] sm:$0xff]  ;;  %v246_v51 = vld [vmem:[%s605_s23 + $0xb8] sm:$0xff] }
  0x1f   : > { %v406_v22 = vmax.f32 %v374_v11, 0.0  ;;  %v377_v24 = vadd.f32 %v345_v8, %v313_v13  ;;  %v407_v28 = vmax.f32 %v375_v15, 0.0  ;;  %v315_v30 = vadd.f32 %v617_v2, %v276_v17  ;;  %v352_v55 = vld [vmem:[%s611_s26 + $0x98] sm:$0xff]  ;;  %v353_v56 = vld [vmem:[%s611_s26 + $0xa0] sm:$0xff]  ;;  %v354_v62 = vld [vmem:[%s611_s26 + $0xa8] sm:$0xff] }
  0x20   : > { %v378_v29 = vadd.f32 %v346_v14, %v314_v16  ;;  %v316_v31 = vadd.f32 %v617_v2, %v277_v18  ;;  %438 = vst.msk [vmem:[%s647_s5 + $0x40] sm:$0xff] %vm429_vm0, %v405_v21  ;;  %v408_v34 = vmax.f32 %v376_v23, 0.0  ;;  %v278_v36 = vmul.f32 %v599_v0, %v239_v19  ;;  %v247_v5 = vld [vmem:[%s605_s23 + $0xc0] sm:$0xff]  ;;  %v248_v6 = vld [vmem:[%s605_s23 + $0xc8] sm:$0xff]  ;;  %v355_v11 = vld [vmem:[%s611_s26 + $0xb0] sm:$0xff] }
  0x21   : > { %439 = vst.msk [vmem:[%s647_s5 + $0x48] sm:$0xff] %vm429_vm0, %v406_v22  ;;  %v409_v35 = vmax.f32 %v377_v24, 0.0  ;;  %v279_v37 = vmul.f32 %v599_v0, %v240_v20  ;;  %440 = vst.msk [vmem:[%s647_s5 + $0x50] sm:$0xff] %vm429_vm0, %v407_v28  ;;  %v379_v40 = vadd.f32 %v347_v25, %v315_v30  ;;  %v280_v44 = vmul.f32 %v599_v0, %v241_v27  ;;  %v356_v12 = vld [vmem:[%s611_s26 + $0xb8] sm:$0xff]  ;;  %v249_v13 = vld [vmem:[%s605_s23 + $0xd0] sm:$0xff] }
  0x22   : > { %v410_v39 = vmax.f32 %v378_v29, 0.0  ;;  %v380_v41 = vadd.f32 %v348_v26, %v316_v31  ;;  %441 = vst.msk [vmem:[%s647_s5 + $0x58] sm:$0xff] %vm429_vm0, %v408_v34  ;;  %v317_v45 = vadd.f32 %v617_v2, %v278_v36  ;;  %v281_v48 = vmul.f32 %v599_v0, %v242_v32  ;;  %v250_v18 = vld [vmem:[%s605_s23 + $0xd8] sm:$0xff]  ;;  %v251_v19 = vld [vmem:[%s605_s23 + $0xe0] sm:$0xff]  ;;  %v252_v24 = vld [vmem:[%s605_s23 + $0xe8] sm:$0xff] }
  0x23   : > { %442 = vst.msk [vmem:[%s647_s5 + $0x60] sm:$0xff] %vm429_vm0, %v409_v35  ;;  %v318_v46 = vadd.f32 %v617_v2, %v279_v37  ;;  %v282_v49 = vmul.f32 %v599_v0, %v243_v33  ;;  %v411_v52 = vmax.f32 %v379_v40, 0.0  ;;  %v319_v54 = vadd.f32 %v617_v2, %v280_v44  ;;  %v357_v28 = vld [vmem:[%s611_s26 + $0xc0] sm:$0xff]  ;;  %v358_v29 = vld [vmem:[%s611_s26 + $0xc8] sm:$0xff]  ;;  %v359_v33 = vld [vmem:[%s611_s26 + $0xd0] sm:$0xff] }
  0x24   : > { %443 = vst.msk [vmem:[%s647_s5 + $0x68] sm:$0xff] %vm429_vm0, %v410_v39  ;;  %v412_v53 = vmax.f32 %v380_v41, 0.0  ;;  %v283_v57 = vmul.f32 %v599_v0, %v244_v38  ;;  %v381_v58 = vadd.f32 %v349_v42, %v317_v45  ;;  %v320_v60 = vadd.f32 %v617_v2, %v281_v48  ;;  %v253_v36 = vld [vmem:[%s605_s23 + $0xf0] sm:$0xff]  ;;  %v254_v37 = vld [vmem:[%s605_s23 + $0xf8] sm:$0xff]  ;;  %v361_v42 = vld [vmem:[%s611_s26 + $0xe0] sm:$0xff] }
  0x25   : > { %v382_v59 = vadd.f32 %v350_v43, %v318_v46  ;;  %v321_v61 = vadd.f32 %v617_v2, %v282_v49  ;;  %444 = vst.msk [vmem:[%s647_s5 + $0x70] sm:$0xff] %vm429_vm0, %v411_v52  ;;  %v383_v63 = vadd.f32 %v351_v47, %v319_v54  ;;  %v284_v3 = vmul.f32 %v599_v0, %v245_v50  ;;  %v360_v41 = vld [vmem:[%s611_s26 + $0xd8] sm:$0xff]  ;;  %v362_v48 = vld [vmem:[%s611_s26 + $0xe8] sm:$0xff] }
  0x26   : > { %445 = vst.msk [vmem:[%s647_s5 + $0x78] sm:$0xff] %vm429_vm0, %v412_v53  ;;  %v322_v1 = vadd.f32 %v617_v2, %v283_v57  ;;  %v285_v4 = vmul.f32 %v599_v0, %v246_v51  ;;  %v413_v7 = vmax.f32 %v381_v58, 0.0  ;;  %v384_v9 = vadd.f32 %v352_v55, %v320_v60  ;;  %v363_v57 = vld [vmem:[%s611_s26 + $0xf0] sm:$0xff]  ;;  %v364_v58 = vld [vmem:[%s611_s26 + $0xf8] sm:$0xff] }
  0x27   : > { %v414_v8 = vmax.f32 %v382_v59, 0.0  ;;  %v385_v10 = vadd.f32 %v353_v56, %v321_v61  ;;  %v415_v14 = vmax.f32 %v383_v63, 0.0  ;;  %v323_v16 = vadd.f32 %v617_v2, %v284_v3 }
  0x28   : > { %v386_v15 = vadd.f32 %v354_v62, %v322_v1  ;;  %v324_v17 = vadd.f32 %v617_v2, %v285_v4  ;;  %446 = vst.msk [vmem:[%s647_s5 + $0x80] sm:$0xff] %vm429_vm0, %v413_v7  ;;  %v416_v20 = vmax.f32 %v384_v9, 0.0  ;;  %v286_v22 = vmul.f32 %v599_v0, %v247_v5 }
  0x29   : > { %447 = vst.msk [vmem:[%s647_s5 + $0x88] sm:$0xff] %vm429_vm0, %v414_v8  ;;  %v417_v21 = vmax.f32 %v385_v10, 0.0  ;;  %v287_v23 = vmul.f32 %v599_v0, %v248_v6  ;;  %448 = vst.msk [vmem:[%s647_s5 + $0x90] sm:$0xff] %vm429_vm0, %v415_v14  ;;  %v387_v26 = vadd.f32 %v355_v11, %v323_v16  ;;  %v288_v30 = vmul.f32 %v599_v0, %v249_v13 }
  0x2a   : > { %v418_v25 = vmax.f32 %v386_v15, 0.0  ;;  %v388_v27 = vadd.f32 %v356_v12, %v324_v17  ;;  %449 = vst.msk [vmem:[%s647_s5 + $0x98] sm:$0xff] %vm429_vm0, %v416_v20  ;;  %v325_v31 = vadd.f32 %v617_v2, %v286_v22  ;;  %v289_v34 = vmul.f32 %v599_v0, %v250_v18 }
  0x2b   : > { %450 = vst.msk [vmem:[%s647_s5 + $0xa0] sm:$0xff] %vm429_vm0, %v417_v21  ;;  %v326_v32 = vadd.f32 %v617_v2, %v287_v23  ;;  %v290_v35 = vmul.f32 %v599_v0, %v251_v19  ;;  %v419_v38 = vmax.f32 %v387_v26, 0.0  ;;  %v327_v40 = vadd.f32 %v617_v2, %v288_v30 }
  0x2c   : > { %451 = vst.msk [vmem:[%s647_s5 + $0xa8] sm:$0xff] %vm429_vm0, %v418_v25  ;;  %v420_v39 = vmax.f32 %v388_v27, 0.0  ;;  %v291_v43 = vmul.f32 %v599_v0, %v252_v24  ;;  %v389_v44 = vadd.f32 %v357_v28, %v325_v31  ;;  %v328_v46 = vadd.f32 %v617_v2, %v289_v34 }
  0x2d   : > { %v390_v45 = vadd.f32 %v358_v29, %v326_v32  ;;  %v329_v47 = vadd.f32 %v617_v2, %v290_v35  ;;  %452 = vst.msk [vmem:[%s647_s5 + $0xb0] sm:$0xff] %vm429_vm0, %v419_v38  ;;  %v391_v49 = vadd.f32 %v359_v33, %v327_v40  ;;  %v292_v51 = vmul.f32 %v599_v0, %v253_v36 }
  0x2e   : > { %453 = vst.msk [vmem:[%s647_s5 + $0xb8] sm:$0xff] %vm429_vm0, %v420_v39  ;;  %v330_v50 = vadd.f32 %v617_v2, %v291_v43  ;;  %v293_v52 = vmul.f32 %v599_v0, %v254_v37  ;;  %v421_v53 = vmax.f32 %v389_v44, 0.0  ;;  %v392_v55 = vadd.f32 %v360_v41, %v328_v46 }
  0x2f   : > { %v422_v54 = vmax.f32 %v390_v45, 0.0  ;;  %v393_v56 = vadd.f32 %v361_v42, %v329_v47  ;;  %v423_v59 = vmax.f32 %v391_v49, 0.0  ;;  %v331_v61 = vadd.f32 %v617_v2, %v292_v51 }
  0x30   : > { %v394_v60 = vadd.f32 %v362_v48, %v330_v50  ;;  %v332_v62 = vadd.f32 %v617_v2, %v293_v52  ;;  %454 = vst.msk [vmem:[%s647_s5 + $0xc0] sm:$0xff] %vm429_vm0, %v421_v53  ;;  %v424_v0 = vmax.f32 %v392_v55, 0.0 }
  0x31   : > { %455 = vst.msk [vmem:[%s647_s5 + $0xc8] sm:$0xff] %vm429_vm0, %v422_v54  ;;  %v425_v63 = vmax.f32 %v393_v56, 0.0  ;;  %456 = vst.msk [vmem:[%s647_s5 + $0xd0] sm:$0xff] %vm429_vm0, %v423_v59  ;;  %v395_v3 = vadd.f32 %v363_v57, %v331_v61 }
  0x32   : > { %v426_v1 = vmax.f32 %v394_v60, 0.0  ;;  %v396_v4 = vadd.f32 %v364_v58, %v332_v62  ;;  %457 = vst.msk [vmem:[%s647_s5 + $0xd8] sm:$0xff] %vm429_vm0, %v424_v0 }
  0x33   : > { %458 = vst.msk [vmem:[%s647_s5 + $0xe0] sm:$0xff] %vm429_vm0, %v425_v63  ;;  %v427_v5 = vmax.f32 %v395_v3, 0.0 }
  0x34   : > { %459 = vst.msk [vmem:[%s647_s5 + $0xe8] sm:$0xff] %vm429_vm0, %v426_v1  ;;  %v428_v6 = vmax.f32 %v396_v4, 0.0 }
  0x35   : > { %460 = vst.msk [vmem:[%s647_s5 + $0xf0] sm:$0xff] %vm429_vm0, %v427_v5 }
  0x36   : > { %461 = vst.msk [vmem:[%s647_s5 + $0xf8] sm:$0xff] %vm429_vm0, %v428_v6 }
  0x37 PF: > { %s14_s15 = sadd.s32 1, %s559_s15  }
  0x38   : > { %p11_p4 = scmp.ge.s32.totalorder %s14_s15, 4  }
  0x3a   :  { %13 = sbr.rel (!%p11_p4) target bundleno = 1 (0x1), region = 69 }

// kernel: bottleneck_forward.6
= control target key start
LH: loop header
LB: loop body
LE: loop exit
PB: predicated region body
PF: predicated region fallthrough
CT: control target
= control target key end

     0   :  { %s1180_s18 = smov 0   ;;  %s1557_s0 = inlined_call_operand.vmem [shape: f32[512,4], index: 0, kind: input, shape index: {}]   ;;  %s1558_s1 = inlined_call_operand.vmem [shape: f32[1,4], index: 1, kind: input, shape index: {}]   ;;  %s1559_s2 = inlined_call_operand.vmem [shape: f32[1,4], index: 2, kind: input, shape index: {}]   ;;  %s1560_s3 = inlined_call_operand.vmem [shape: f32[4,16], index: 3, kind: input, shape index: {}]   ;;  %s1561_s4 = inlined_call_operand.vmem [shape: f32[512,16], index: 4, kind: output, shape index: {0}]   ;;  %s1562_s5 = inlined_call_operand.vmem [shape: f32[2,2,16], index: 5, kind: output, shape index: {1}]  }
   0x1 LB: > { %s1186_s19 = sadd.s32 4294967295, %s1148_s18   ;;  %p1006_p0 = scmp.ge.s32.totalorder %s1148_s18, 1  ;;  %s1148_s18 = sphi %s1180_s18, %s16_s18  }
   0x2   : > { %p191_p1 = scmp.lt.s32.totalorder %s1148_s18, 3 }
   0x4   : > { %p192_p2 = pnand %p1006_p0, %p191_p1 }
   0x5   : > { %v381_v0 = vld [vmem:[%s1560_s3] sm:$0xf] (!%p192_p2)  ;;  %vm479_vm0 = vcmask (!%p192_p2), 1043456   ;;  %s1007_s22 = sshll.u32 (!%p192_p2), %s1186_s19, 5  ;;  %vm382_vm1 = vcmask (!%p192_p2), 31744   ;;  %vm708_vm2 = vcmask (!%p192_p2), 130048  }
   0x6   : > { %195 = sbr.rel (%p192_p2) target bundleno = 318 (0x13e), region = 36  ;;  %1082 = vmatprep.subr.msk.mxu0 (!%p192_p2), %vm479_vm0, %v381_v0  ;;  %p224_p3 = scmp.lt.s32.totalorder (!%p192_p2), %s1007_s22, 63  ;;  %1132 = vmatprep.subr.msk.mxu1 (!%p192_p2), %vm479_vm0, %v381_v0  ;;  %v1200_v1 = vld [vmem:[%s1558_s1] ss:$0 sm:$0xff] (!%p192_p2)  ;;  %vm911_vm3 = vcmask (!%p192_p2), 1040384   ;;  %vm913_vm4 = vcmask (!%p192_p2), 123904  }
   0x7   : > { %1083 = vmatpush3.msk.msra.mxu0 (!%p192_p2), %vm479_vm0, %v381_v0  ;;  %1133 = vmatpush3.msk.msra.mxu1 (!%p192_p2), %vm479_vm0, %v381_v0  ;;  %v1212_v2 = vld [vmem:[%s1559_s2] ss:$0 sm:$0xff] (!%p192_p2)  ;;  %p235_p4 = scmp.lt.s32.totalorder (!%p192_p2), %s1186_s19, 1 }
   0xd   : > { %s1564_s22 = smov (!%p224_p3, %s1007_s22), 63  ;;  %s1566_s19 = smov (!%p235_p4, %s1186_s19), 1 }
   0xe   : > { %s1008_s23 = sshll.u32 %s1564_s22, 3  ;;  %s1011_s9 = sshll.u32 %s1566_s19, 1 }
   0xf   : > { %s1207_s28 = scalar_lea.vmem %s1557_s0, %s1008_s23  ;;  %s1347_s8 = scalar_lea.vmem %s1561_s4, %s1008_s23 }
  0x10   : > { %v239_v3 = vld [vmem:[%s1207_s28] sm:$0xff]  ;;  %v240_v4 = vld [vmem:[%s1207_s28 + $0x8] sm:$0xff]  ;;  %v241_v5 = vld [vmem:[%s1207_s28 + $0x10] sm:$0xff]  ;;  %s238_s12 = scalar_lea.vmem %s1562_s5, %s1011_s9 }
  0x11   : > { %v278_v6 = vmul.f32 %v1200_v1, %v239_v3  ;;  %v279_v7 = vmul.f32 %v1200_v1, %v240_v4  ;;  %v280_v8 = vmul.f32 %v1200_v1, %v241_v5  ;;  %v242_v9 = vld [vmem:[%s1207_s28 + $0x18] sm:$0xff]  ;;  %v243_v10 = vld [vmem:[%s1207_s28 + $0x20] sm:$0xff]  ;;  %v244_v11 = vld [vmem:[%s1207_s28 + $0x28] sm:$0xff] }
  0x12   : > { %v281_v12 = vmul.f32 %v1200_v1, %v242_v9  ;;  %v282_v13 = vmul.f32 %v1200_v1, %v243_v10  ;;  %v245_v14 = vld [vmem:[%s1207_s28 + $0x30] sm:$0xff]  ;;  %v246_v15 = vld [vmem:[%s1207_s28 + $0x38] sm:$0xff]  ;;  %v283_v19 = vmul.f32 %v1200_v1, %v244_v11  ;;  %v247_v27 = vld [vmem:[%s1207_s28 + $0x40] sm:$0xff] }
  0x13   : > { %v317_v16 = vadd.f32 %v1212_v2, %v278_v6  ;;  %v318_v17 = vadd.f32 %v1212_v2, %v279_v7  ;;  %v319_v18 = vadd.f32 %v1212_v2, %v280_v8  ;;  %v284_v21 = vmul.f32 %v1200_v1, %v245_v14  ;;  %v248_v29 = vld [vmem:[%s1207_s28 + $0x48] sm:$0xff]  ;;  %v249_v34 = vld [vmem:[%s1207_s28 + $0x50] sm:$0xff]  ;;  %v250_v36 = vld [vmem:[%s1207_s28 + $0x58] sm:$0xff] }
  0x14   : > { %v320_v20 = vadd.f32 %v1212_v2, %v281_v12  ;;  %v285_v22 = vmul.f32 %v1200_v1, %v246_v15  ;;  %v321_v26 = vadd.f32 %v1212_v2, %v282_v13  ;;  %v322_v28 = vadd.f32 %v1212_v2, %v283_v19  ;;  %v255_v38 = vld [vmem:[%s1207_s28 + $0x80] sm:$0xff]  ;;  %v256_v39 = vld [vmem:[%s1207_s28 + $0x88] sm:$0xff]  ;;  %v257_v40 = vld [vmem:[%s1207_s28 + $0x90] sm:$0xff] }
  0x15   : > { %v349_v23 = vmax.f32 %v317_v16, 0.0  ;;  %v350_v24 = vmax.f32 %v318_v17, 0.0  ;;  %v351_v25 = vmax.f32 %v319_v18, 0.0  ;;  %v323_v31 = vadd.f32 %v1212_v2, %v284_v21  ;;  %v251_v42 = vld [vmem:[%s1207_s28 + $0x60] sm:$0xff]  ;;  %v258_v43 = vld [vmem:[%s1207_s28 + $0x98] sm:$0xff]  ;;  %v260_v53 = vld [vmem:[%s1207_s28 + $0xa8] sm:$0xff] }
  0x16   : > { %v352_v30 = vmax.f32 %v320_v20, 0.0  ;;  %v324_v32 = vadd.f32 %v1212_v2, %v285_v22  ;;  %v286_v33 = vmul.f32 %v1200_v1, %v247_v27  ;;  %v353_v35 = vmax.f32 %v321_v26, 0.0  ;;  %v259_v44 = vld [vmem:[%s1207_s28 + $0xa0] sm:$0xff]  ;;  %v261_v54 = vld [vmem:[%s1207_s28 + $0xb0] sm:$0xff]  ;;  %v252_v0 = vld [vmem:[%s1207_s28 + $0x68] sm:$0xff] }
  0x17   : > { %1084 = vmatprep.mubr.msk.f32.mxu0 %vm382_vm1, %v349_v23  ;;  %v287_v37 = vmul.f32 %v1200_v1, %v248_v29  ;;  %v288_v41 = vmul.f32 %v1200_v1, %v249_v34  ;;  %v354_v45 = vmax.f32 %v322_v28, 0.0  ;;  %v355_v46 = vmax.f32 %v323_v31, 0.0  ;;  %v253_v3 = vld [vmem:[%s1207_s28 + $0x70] sm:$0xff]  ;;  %v262_v11 = vld [vmem:[%s1207_s28 + $0xb8] sm:$0xff]  ;;  %v263_v12 = vld [vmem:[%s1207_s28 + $0xc0] sm:$0xff] }
  0x18   : > { %1085 = vmatmul.mubr.msk.f32.vlgmr.msra.gmra.mrb[0].mxu0 %vm382_vm1, %v350_v24  ;;  %v356_v47 = vmax.f32 %v324_v32, 0.0  ;;  %v325_v48 = vadd.f32 %v1212_v2, %v286_v33  ;;  %v289_v49 = vmul.f32 %v1200_v1, %v250_v36  ;;  %v294_v50 = vmul.f32 %v1200_v1, %v255_v38  ;;  %v254_v18 = vld [vmem:[%s1207_s28 + $0x78] sm:$0xff]  ;;  %v264_v26 = vld [vmem:[%s1207_s28 + $0xc8] sm:$0xff]  ;;  %v265_v27 = vld [vmem:[%s1207_s28 + $0xd0] sm:$0xff] }
  0x19   : > { %1087 = vmatprep.mubr.msk.f32.mxu0 %vm382_vm1, %v351_v25  ;;  %v295_v51 = vmul.f32 %v1200_v1, %v256_v39  ;;  %v296_v52 = vmul.f32 %v1200_v1, %v257_v40  ;;  %v326_v55 = vadd.f32 %v1212_v2, %v287_v37  ;;  %v290_v56 = vmul.f32 %v1200_v1, %v251_v42  ;;  %v266_v39 = vld [vmem:[%s1207_s28 + $0xd8] sm:$0xff]  ;;  %v267_v40 = vld [vmem:[%s1207_s28 + $0xe0] sm:$0xff] }
  0x1a   : > { %v297_v57 = vmul.f32 %v1200_v1, %v258_v43  ;;  %v298_v58 = vmul.f32 %v1200_v1, %v259_v44  ;;  %v327_v59 = vadd.f32 %v1212_v2, %v288_v41  ;;  %v333_v60 = vadd.f32 %v1212_v2, %v294_v50  ;;  %v268_v50 = vld [vmem:[%s1207_s28 + $0xe8] sm:$0xff] }
  0x1b   : > { %v334_v61 = vadd.f32 %v1212_v2, %v295_v51  ;;  %v335_v62 = vadd.f32 %v1212_v2, %v296_v52  ;;  %v357_v63 = vmax.f32 %v325_v48, 0.0  ;;  %v299_v5 = vmul.f32 %v1200_v1, %v260_v53  ;;  %v269_v51 = vld [vmem:[%s1207_s28 + $0xf0] sm:$0xff] }
  0x1c   : > { %1088 = vmatmul.mubr.msk.f32.gmra.mrb[2].mxu0 %vm382_vm1, %v352_v30  ;;  %v336_v4 = vadd.f32 %v1212_v2, %v297_v57  ;;  %v300_v6 = vmul.f32 %v1200_v1, %v261_v54  ;;  %v365_v7 = vmax.f32 %v333_v60, 0.0  ;;  %v337_v10 = vadd.f32 %v1212_v2, %v298_v58 }
  0x1d   : > { %1090 = vmatprep.mubr.msk.f32.mxu0 %vm382_vm1, %v353_v35  ;;  %v366_v8 = vmax.f32 %v334_v61, 0.0  ;;  %v367_v9 = vmax.f32 %v335_v62, 0.0  ;;  %v328_v13 = vadd.f32 %v1212_v2, %v289_v49  ;;  %v329_v14 = vadd.f32 %v1212_v2, %v290_v56 }
  0x1e   : > { %v291_v15 = vmul.f32 %v1200_v1, %v252_v0  ;;  %v292_v16 = vmul.f32 %v1200_v1, %v253_v3  ;;  %1108 = vmatprep.mubr.msk.f32.mxu1 %vm382_vm1, %v365_v7  ;;  %v358_v17 = vmax.f32 %v326_v55, 0.0  ;;  %v368_v19 = vmax.f32 %v336_v4, 0.0 }
  0x1f   : > { %1109 = vmatmul.mubr.msk.f32.vlgmr.msra.gmra.mrb[0].mxu1 %vm382_vm1, %v366_v8  ;;  %v338_v20 = vadd.f32 %v1212_v2, %v299_v5  ;;  %v301_v21 = vmul.f32 %v1200_v1, %v262_v11  ;;  %v359_v22 = vmax.f32 %v327_v59, 0.0  ;;  %v369_v23 = vmax.f32 %v337_v10, 0.0  ;;  %v270_v59 = vld [vmem:[%s1207_s28 + $0xf8] sm:$0xff] }
  0x20   : > { %1091 = vmatmul.mubr.msk.f32.gmra.mrb[4].mxu0 %vm382_vm1, %v354_v45  ;;  %1111 = vmatprep.mubr.msk.f32.mxu1 %vm382_vm1, %v367_v9  ;;  %v339_v24 = vadd.f32 %v1212_v2, %v300_v6  ;;  %v302_v25 = vmul.f32 %v1200_v1, %v263_v12  ;;  %v330_v28 = vadd.f32 %v1212_v2, %v291_v15  ;;  %v360_v31 = vmax.f32 %v328_v13, 0.0 }
  0x21   : > { %1093 = vmatprep.mubr.msk.f32.mxu0 %vm382_vm1, %v355_v46  ;;  %v331_v29 = vadd.f32 %v1212_v2, %v292_v16  ;;  %v293_v30 = vmul.f32 %v1200_v1, %v254_v18  ;;  %v370_v32 = vmax.f32 %v338_v20, 0.0  ;;  %v340_v33 = vadd.f32 %v1212_v2, %v301_v21 }
  0x22   : > { %v303_v34 = vmul.f32 %v1200_v1, %v264_v26  ;;  %v361_v35 = vmax.f32 %v329_v14, 0.0  ;;  %v371_v36 = vmax.f32 %v339_v24, 0.0  ;;  %v341_v37 = vadd.f32 %v1212_v2, %v302_v25 }
  0x23   : > { %1112 = vmatmul.mubr.msk.f32.gmra.mrb[2].mxu1 %vm382_vm1, %v368_v19  ;;  %v304_v38 = vmul.f32 %v1200_v1, %v265_v27  ;;  %v362_v41 = vmax.f32 %v330_v28, 0.0  ;;  %v332_v42 = vadd.f32 %v1212_v2, %v293_v30  ;;  %v372_v43 = vmax.f32 %v340_v33, 0.0 }
  0x24   : > { %1094 = vmatmul.mubr.msk.f32.gmra.mrb[6].mxu0 %vm382_vm1, %v356_v47  ;;  %1114 = vmatprep.mubr.msk.f32.mxu1 %vm382_vm1, %v369_v23  ;;  %v342_v44 = vadd.f32 %v1212_v2, %v303_v34  ;;  %v305_v45 = vmul.f32 %v1200_v1, %v266_v39  ;;  %v363_v46 = vmax.f32 %v331_v29, 0.0  ;;  %v373_v47 = vmax.f32 %v341_v37, 0.0 }
  0x25   : > { %1096 = vmatprep.mubr.msk.f32.mxu0 %vm382_vm1, %v357_v63  ;;  %v343_v48 = vadd.f32 %v1212_v2, %v304_v38  ;;  %v306_v49 = vmul.f32 %v1200_v1, %v267_v40  ;;  %v364_v52 = vmax.f32 %v332_v42, 0.0  ;;  %v307_v55 = vmul.f32 %v1200_v1, %v268_v50 }
  0x26   : > { %v374_v53 = vmax.f32 %v342_v44, 0.0  ;;  %v344_v54 = vadd.f32 %v1212_v2, %v305_v45  ;;  %v308_v58 = vmul.f32 %v1200_v1, %v269_v51  ;;  %v309_v62 = vmul.f32 %v1200_v1, %v270_v59 }
  0x27   : > { %1115 = vmatmul.mubr.msk.f32.gmra.mrb[4].mxu1 %vm382_vm1, %v370_v32  ;;  %v375_v56 = vmax.f32 %v343_v48, 0.0  ;;  %v345_v57 = vadd.f32 %v1212_v2, %v306_v49  ;;  %v346_v61 = vadd.f32 %v1212_v2, %v307_v55 }
  0x28   : > { %1097 = vmatmul.mubr.msk.f32.gmra.mrb[8].mxu0 %vm382_vm1, %v358_v17  ;;  %1117 = vmatprep.mubr.msk.f32.mxu1 %vm382_vm1, %v371_v36  ;;  %v376_v60 = vmax.f32 %v344_v54, 0.0  ;;  %v347_v0 = vadd.f32 %v1212_v2, %v308_v58  ;;  %v348_v4 = vadd.f32 %v1212_v2, %v309_v62 }
  0x29   : > { %1099 = vmatprep.mubr.msk.f32.mxu0 %vm382_vm1, %v359_v22  ;;  %v377_v63 = vmax.f32 %v345_v57, 0.0  ;;  %v378_v3 = vmax.f32 %v346_v61, 0.0 }
  0x2a   : > { %v379_v5 = vmax.f32 %v347_v0, 0.0  ;;  %v380_v6 = vmax.f32 %v348_v4, 0.0 }
  0x2b   : > { %1118 = vmatmul.mubr.msk.f32.gmra.mrb[6].mxu1 %vm382_vm1, %v372_v43 }
  0x2c   : > { %1100 = vmatmul.mubr.msk.f32.gmra.mrb[10].mxu0 %vm382_vm1, %v360_v31  ;;  %1120 = vmatprep.mubr.msk.f32.mxu1 %vm382_vm1, %v373_v47 }
  0x2d   : > { %1102 = vmatprep.mubr.msk.f32.mxu0 %vm382_vm1, %v361_v35 }
  0x2f   : > { %1121 = vmatmul.mubr.msk.f32.gmra.mrb[8].mxu1 %vm382_vm1, %v374_v53 }
  0x30   : > { %1103 = vmatmul.mubr.msk.f32.gmra.mrb[12].mxu0 %vm382_vm1, %v362_v41  ;;  %1123 = vmatprep.mubr.msk.f32.mxu1 %vm382_vm1, %v375_v56 }
  0x31   : > { %1105 = vmatprep.mubr.msk.f32.mxu0 %vm382_vm1, %v363_v46 }
  0x33   : > { %1124 = vmatmul.mubr.msk.f32.gmra.mrb[10].mxu1 %vm382_vm1, %v376_v60 }
  0x34   : > { %1106 = vmatmul.mubr.msk.f32.gmra.mrb[14].mxu0 %vm382_vm1, %v364_v52  ;;  %1126 = vmatprep.mubr.msk.f32.mxu1 %vm382_vm1, %v377_v63 }
  0x37   : > { %1127 = vmatmul.mubr.msk.f32.gmra.mrb[12].mxu1 %vm382_vm1, %v378_v3 }
  0x38   : > { %1129 = vmatprep.mubr.msk.f32.mxu1 %vm382_vm1, %v379_v5 }
  0x3b   : > { %1130 = vmatmul.mubr.msk.f32.gmra.mrb[14].mxu1 %vm382_vm1, %v380_v6 }
  0xeb   : > { %v1086_v1 = vpop.f32.mrb[0].mxu0 }
  0xec   : > { %710 = vst.msk [vmem:[%s1347_s8 + $0x8] sm:$0xff] %vm708_vm2, %v1086_v1  ;;  %v742_v2 = vsel %vm708_vm2, %v1086_v1, 0.0  ;;  %v811_v7 = vmul.f32 %v1086_v1, %v1086_v1  ;;  %v549_v8 = vpop.f32.mrb[1].mxu0 }
  0xed   : > { %709 = vst.msk [vmem:[%s1347_s8] sm:$0xff] %vm708_vm2, %v549_v8  ;;  %v741_v9 = vsel %vm708_vm2, %v549_v8, 0.0  ;;  %v810_v10 = vmul.f32 %v549_v8, %v549_v8 }
  0xee   : > { %v843_v11 = vsel %vm708_vm2, %v811_v7, 0.0  ;;  %v743_v12 = vadd.f32 %v742_v2, %v741_v9 }
  0xef   : > { %v842_v13 = vsel %vm708_vm2, %v810_v10, 0.0  ;;  %v1089_v14 = vpop.f32.mrb[2].mxu0 }
  0xf0   : > { %v844_v15 = vadd.f32 %v843_v11, %v842_v13  ;;  %712 = vst.msk [vmem:[%s1347_s8 + $0x18] sm:$0xff] %vm708_vm2, %v1089_v14  ;;  %v559_v16 = vpop.f32.mrb[3].mxu0  ;;  %v813_v17 = vmul.f32 %v1089_v14, %v1089_v14  ;;  %v746_v21 = vsel %vm708_vm2, %v1089_v14, 0.0 }
  0xf1   : > { %711 = vst.msk [vmem:[%s1347_s8 + $0x10] sm:$0xff] %vm708_vm2, %v559_v16  ;;  %v744_v18 = vsel %vm708_vm2, %v559_v16, 0.0  ;;  %v812_v19 = vmul.f32 %v559_v16, %v559_v16 }
  0xf2   : > { %v745_v20 = vadd.f32 %v744_v18, %v743_v12  ;;  %v847_v27 = vsel %vm708_vm2, %v813_v17, 0.0  ;;  %v1372_v36 = vpop.f32.mrb[0].mxu1 }
  0xf3   : > { %v845_v22 = vsel %vm708_vm2, %v812_v19, 0.0  ;;  %v1092_v23 = vpop.f32.mrb[4].mxu0  ;;  %726 = vst.msk [vmem:[%s1347_s8 + $0x88] sm:$0xff] %vm708_vm2, %v1372_v36  ;;  %v1379_v40 = vpop.f32.mrb[1].mxu1 }
  0xf4   : > { %v846_v24 = vadd.f32 %v845_v22, %v844_v15  ;;  %714 = vst.msk [vmem:[%s1347_s8 + $0x28] sm:$0xff] %vm708_vm2, %v1092_v23  ;;  %v569_v25 = vpop.f32.mrb[5].mxu0  ;;  %v747_v26 = vadd.f32 %v746_v21, %v745_v20  ;;  %v815_v28 = vmul.f32 %v1092_v23, %v1092_v23  ;;  %v750_v33 = vsel %vm708_vm2, %v1092_v23, 0.0  ;;  %725 = vst.msk [vmem:[%s1347_s8 + $0x80] sm:$0xff] %vm708_vm2, %v1379_v40 }
  0xf5   : > { %713 = vst.msk [vmem:[%s1347_s8 + $0x20] sm:$0xff] %vm708_vm2, %v569_v25  ;;  %v748_v29 = vsel %vm708_vm2, %v569_v25, 0.0  ;;  %v814_v30 = vmul.f32 %v569_v25, %v569_v25 }
  0xf6   : > { %v749_v31 = vadd.f32 %v748_v29, %v747_v26  ;;  %v848_v32 = vadd.f32 %v847_v27, %v846_v24  ;;  %v851_v41 = vsel %vm708_vm2, %v815_v28, 0.0  ;;  %v1390_v50 = vpop.f32.mrb[2].mxu1 }
  0xf7   : > { %v849_v34 = vsel %vm708_vm2, %v814_v30, 0.0  ;;  %v1095_v35 = vpop.f32.mrb[6].mxu0  ;;  %728 = vst.msk [vmem:[%s1347_s8 + $0x98] sm:$0xff] %vm708_vm2, %v1390_v50  ;;  %v1397_v54 = vpop.f32.mrb[3].mxu1 }
  0xf8   : > { %v850_v37 = vadd.f32 %v849_v34, %v848_v32  ;;  %716 = vst.msk [vmem:[%s1347_s8 + $0x38] sm:$0xff] %vm708_vm2, %v1095_v35  ;;  %v579_v38 = vpop.f32.mrb[7].mxu0  ;;  %v751_v39 = vadd.f32 %v750_v33, %v749_v31  ;;  %v817_v42 = vmul.f32 %v1095_v35, %v1095_v35  ;;  %v754_v47 = vsel %vm708_vm2, %v1095_v35, 0.0  ;;  %727 = vst.msk [vmem:[%s1347_s8 + $0x90] sm:$0xff] %vm708_vm2, %v1397_v54 }
  0xf9   : > { %715 = vst.msk [vmem:[%s1347_s8 + $0x30] sm:$0xff] %vm708_vm2, %v579_v38  ;;  %v752_v43 = vsel %vm708_vm2, %v579_v38, 0.0  ;;  %v816_v44 = vmul.f32 %v579_v38, %v579_v38  ;;  %v826_v32 = vmul.f32 %v1379_v40, %v1379_v40 }
  0xfa   : > { %v753_v45 = vadd.f32 %v752_v43, %v751_v39  ;;  %v852_v46 = vadd.f32 %v851_v41, %v850_v37  ;;  %v855_v55 = vsel %vm708_vm2, %v817_v42, 0.0  ;;  %v1408_v0 = vpop.f32.mrb[4].mxu1 }
  0xfb   : > { %v853_v48 = vsel %vm708_vm2, %v816_v44, 0.0  ;;  %v1098_v49 = vpop.f32.mrb[8].mxu0  ;;  %730 = vst.msk [vmem:[%s1347_s8 + $0xa8] sm:$0xff] %vm708_vm2, %v1408_v0  ;;  %v1415_v6 = vpop.f32.mrb[5].mxu1  ;;  %v772_v44 = vsel %vm708_vm2, %v1379_v40, 0.0  ;;  %v828_v40 = vmul.f32 %v1397_v54, %v1397_v54 }
  0xfc   : > { %v854_v51 = vadd.f32 %v853_v48, %v852_v46  ;;  %718 = vst.msk [vmem:[%s1347_s8 + $0x48] sm:$0xff] %vm708_vm2, %v1098_v49  ;;  %v589_v52 = vpop.f32.mrb[9].mxu0  ;;  %v755_v53 = vadd.f32 %v754_v47, %v753_v45  ;;  %v819_v56 = vmul.f32 %v1098_v49, %v1098_v49  ;;  %v758_v61 = vsel %vm708_vm2, %v1098_v49, 0.0  ;;  %729 = vst.msk [vmem:[%s1347_s8 + $0xa0] sm:$0xff] %vm708_vm2, %v1415_v6 }
  0xfd   : > { %717 = vst.msk [vmem:[%s1347_s8 + $0x40] sm:$0xff] %vm708_vm2, %v589_v52  ;;  %v756_v57 = vsel %vm708_vm2, %v589_v52, 0.0  ;;  %v818_v58 = vmul.f32 %v589_v52, %v589_v52  ;;  %v873_v52 = vsel %vm708_vm2, %v826_v32, 0.0 }
  0xfe   : > { %v757_v59 = vadd.f32 %v756_v57, %v755_v53  ;;  %v856_v60 = vadd.f32 %v855_v55, %v854_v51  ;;  %v859_v1 = vsel %vm708_vm2, %v819_v56, 0.0  ;;  %v1426_v14 = vpop.f32.mrb[6].mxu1  ;;  %v827_v51 = vmul.f32 %v1372_v36, %v1372_v36 }
  0xff   : > { %v857_v62 = vsel %vm708_vm2, %v818_v58, 0.0  ;;  %v1101_v63 = vpop.f32.mrb[10].mxu0  ;;  %732 = vst.msk [vmem:[%s1347_s8 + $0xb8] sm:$0xff] %vm708_vm2, %v1426_v14  ;;  %v1433_v18 = vpop.f32.mrb[7].mxu1  ;;  %v774_v56 = vsel %vm708_vm2, %v1372_v36, 0.0  ;;  %v776_v57 = vsel %vm708_vm2, %v1397_v54, 0.0  ;;  %v830_v36 = vmul.f32 %v1415_v6, %v1415_v6 }
 0x100   : > { %v858_v3 = vadd.f32 %v857_v62, %v856_v60  ;;  %720 = vst.msk [vmem:[%s1347_s8 + $0x58] sm:$0xff] %vm708_vm2, %v1101_v63  ;;  %v599_v4 = vpop.f32.mrb[11].mxu0  ;;  %v759_v5 = vadd.f32 %v758_v61, %v757_v59  ;;  %v821_v2 = vmul.f32 %v1101_v63, %v1101_v63  ;;  %v762_v11 = vsel %vm708_vm2, %v1101_v63, 0.0  ;;  %731 = vst.msk [vmem:[%s1347_s8 + $0xb0] sm:$0xff] %vm708_vm2, %v1433_v18 }
 0x101   : > { %719 = vst.msk [vmem:[%s1347_s8 + $0x50] sm:$0xff] %vm708_vm2, %v599_v4  ;;  %v760_v7 = vsel %vm708_vm2, %v599_v4, 0.0  ;;  %v820_v8 = vmul.f32 %v599_v4, %v599_v4  ;;  %v875_v62 = vsel %vm708_vm2, %v827_v51, 0.0  ;;  %v829_v63 = vmul.f32 %v1390_v50, %v1390_v50 }
 0x102   : > { %v761_v9 = vadd.f32 %v760_v7, %v759_v5  ;;  %v860_v10 = vadd.f32 %v859_v1, %v858_v3  ;;  %v863_v19 = vsel %vm708_vm2, %v821_v2, 0.0  ;;  %v1444_v28 = vpop.f32.mrb[8].mxu1  ;;  %v877_v3 = vsel %vm708_vm2, %v828_v40, 0.0 }
 0x103   : > { %v861_v12 = vsel %vm708_vm2, %v820_v8, 0.0  ;;  %v1104_v13 = vpop.f32.mrb[12].mxu0  ;;  %734 = vst.msk [vmem:[%s1347_s8 + $0xc8] sm:$0xff] %vm708_vm2, %v1444_v28  ;;  %v1453_v33 = vpop.f32.mrb[9].mxu1  ;;  %v778_v5 = vsel %vm708_vm2, %v1390_v50, 0.0  ;;  %v780_v1 = vsel %vm708_vm2, %v1415_v6, 0.0  ;;  %v832_v50 = vmul.f32 %v1433_v18, %v1433_v18 }
 0x104   : > { %v862_v15 = vadd.f32 %v861_v12, %v860_v10  ;;  %722 = vst.msk [vmem:[%s1347_s8 + $0x68] sm:$0xff] %vm708_vm2, %v1104_v13  ;;  %v609_v16 = vpop.f32.mrb[13].mxu0  ;;  %v763_v17 = vadd.f32 %v762_v11, %v761_v9  ;;  %v823_v20 = vmul.f32 %v1104_v13, %v1104_v13  ;;  %v766_v25 = vsel %vm708_vm2, %v1104_v13, 0.0  ;;  %733 = vst.msk [vmem:[%s1347_s8 + $0xc0] sm:$0xff] %vm708_vm2, %v1453_v33 }
 0x105   : > { %721 = vst.msk [vmem:[%s1347_s8 + $0x60] sm:$0xff] %vm708_vm2, %v609_v16  ;;  %v764_v21 = vsel %vm708_vm2, %v609_v16, 0.0  ;;  %v822_v22 = vmul.f32 %v609_v16, %v609_v16  ;;  %v879_v12 = vsel %vm708_vm2, %v829_v63, 0.0  ;;  %v831_v13 = vmul.f32 %v1408_v0, %v1408_v0 }
 0x106   : > { %v765_v23 = vadd.f32 %v764_v21, %v763_v17  ;;  %v864_v24 = vadd.f32 %v863_v19, %v862_v15  ;;  %v867_v34 = vsel %vm708_vm2, %v823_v20, 0.0  ;;  %v1466_v45 = vpop.f32.mrb[10].mxu1  ;;  %v881_v15 = vsel %vm708_vm2, %v830_v36, 0.0 }
 0x107   : > { %v865_v26 = vsel %vm708_vm2, %v822_v22, 0.0  ;;  %v1107_v27 = vpop.f32.mrb[14].mxu0  ;;  %736 = vst.msk [vmem:[%s1347_s8 + $0xd8] sm:$0xff] %vm708_vm2, %v1466_v45  ;;  %v679_v48 = vpop.f32.mrb[11].mxu1  ;;  %v782_v19 = vsel %vm708_vm2, %v1408_v0, 0.0  ;;  %v784_v20 = vsel %vm708_vm2, %v1433_v18, 0.0 }
 0x108   : > { %v866_v29 = vadd.f32 %v865_v26, %v864_v24  ;;  %724 = vst.msk [vmem:[%s1347_s8 + $0x78] sm:$0xff] %vm708_vm2, %v1107_v27  ;;  %v619_v30 = vpop.f32.mrb[15].mxu0  ;;  %v767_v31 = vadd.f32 %v766_v25, %v765_v23  ;;  %v825_v35 = vmul.f32 %v1107_v27, %v1107_v27  ;;  %v770_v42 = vsel %vm708_vm2, %v1107_v27, 0.0  ;;  %735 = vst.msk [vmem:[%s1347_s8 + $0xd0] sm:$0xff] %vm708_vm2, %v679_v48 }
 0x109   : > { %723 = vst.msk [vmem:[%s1347_s8 + $0x70] sm:$0xff] %vm708_vm2, %v619_v30  ;;  %v768_v37 = vsel %vm708_vm2, %v619_v30, 0.0  ;;  %v824_v38 = vmul.f32 %v619_v30, %v619_v30  ;;  %v883_v23 = vsel %vm708_vm2, %v831_v13, 0.0  ;;  %v833_v24 = vmul.f32 %v1426_v14, %v1426_v14 }
 0x10a   : > { %v769_v39 = vadd.f32 %v768_v37, %v767_v31  ;;  %v868_v41 = vadd.f32 %v867_v34, %v866_v29  ;;  %v871_v49 = vsel %vm708_vm2, %v825_v35, 0.0  ;;  %v1483_v58 = vpop.f32.mrb[12].mxu1  ;;  %v885_v25 = vsel %vm708_vm2, %v832_v50, 0.0 }
 0x10b   : > { %v869_v43 = vsel %vm708_vm2, %v824_v38, 0.0  ;;  %738 = vst.msk [vmem:[%s1347_s8 + $0xe8] sm:$0xff] %vm708_vm2, %v1483_v58  ;;  %v689_v61 = vpop.f32.mrb[13].mxu1  ;;  %v834_v26 = vmul.f32 %v1453_v33, %v1453_v33  ;;  %v786_v0 = vsel %vm708_vm2, %v1426_v14, 0.0  ;;  %v788_v18 = vsel %vm708_vm2, %v1453_v33, 0.0 }
 0x10c   : > { %v771_v46 = vadd.f32 %v770_v42, %v769_v39  ;;  %v870_v47 = vadd.f32 %v869_v43, %v868_v41  ;;  %737 = vst.msk [vmem:[%s1347_s8 + $0xe0] sm:$0xff] %vm708_vm2, %v689_v61  ;;  %v887_v32 = vsel %vm708_vm2, %v833_v24, 0.0  ;;  %v835_v34 = vmul.f32 %v1444_v28, %v1444_v28 }
 0x10d   : > { %v889_v35 = vsel %vm708_vm2, %v834_v26, 0.0  ;;  %v836_v37 = vmul.f32 %v679_v48, %v679_v48  ;;  %v790_v41 = vsel %vm708_vm2, %v1444_v28, 0.0  ;;  %v792_v14 = vsel %vm708_vm2, %v679_v48, 0.0 }
 0x10e   : > { %v872_v53 = vadd.f32 %v871_v49, %v870_v47  ;;  %v773_v55 = vadd.f32 %v772_v44, %v771_v46  ;;  %v1131_v2 = vpop.f32.mrb[14].mxu1  ;;  %v891_v33 = vsel %vm708_vm2, %v835_v34, 0.0  ;;  %v837_v44 = vmul.f32 %v1466_v45, %v1466_v45 }
 0x10f   : > { %740 = vst.msk [vmem:[%s1347_s8 + $0xf8] sm:$0xff] %vm708_vm2, %v1131_v2  ;;  %v802_v9 = vsel %vm708_vm2, %v1131_v2, 0.0  ;;  %v841_v10 = vmul.f32 %v1131_v2, %v1131_v2  ;;  %v699_v11 = vpop.f32.mrb[15].mxu1  ;;  %v893_v46 = vsel %vm708_vm2, %v836_v37, 0.0  ;;  %v838_v47 = vmul.f32 %v689_v61, %v689_v61 }
 0x110   : > { %v874_v59 = vadd.f32 %v873_v52, %v872_v53  ;;  %v775_v60 = vadd.f32 %v774_v56, %v773_v55  ;;  %739 = vst.msk [vmem:[%s1347_s8 + $0xf0] sm:$0xff] %vm708_vm2, %v699_v11  ;;  %v794_v52 = vsel %vm708_vm2, %v1466_v45, 0.0  ;;  %v796_v40 = vsel %vm708_vm2, %v689_v61, 0.0 }
 0x111   : > { %v903_v17 = vsel %vm708_vm2, %v841_v10, 0.0  ;;  %v895_v48 = vsel %vm708_vm2, %v837_v44, 0.0  ;;  %v839_v55 = vmul.f32 %v1483_v58, %v1483_v58  ;;  %v897_v56 = vsel %vm708_vm2, %v838_v47, 0.0 }
 0x112   : > { %v777_v54 = vadd.f32 %v776_v57, %v775_v60  ;;  %v876_v4 = vadd.f32 %v875_v62, %v874_v59  ;;  %v840_v57 = vmul.f32 %v699_v11, %v699_v11  ;;  %v798_v62 = vsel %vm708_vm2, %v1483_v58, 0.0 }
 0x113   : > { %v800_v45 = vsel %vm708_vm2, %v699_v11, 0.0 }
 0x114   : > { %v878_v7 = vadd.f32 %v877_v3, %v876_v4  ;;  %v779_v8 = vadd.f32 %v778_v5, %v777_v54  ;;  %v899_v3 = vsel %vm708_vm2, %v839_v55, 0.0  ;;  %v901_v36 = vsel %vm708_vm2, %v840_v57, 0.0 }
 0x116   : > { %v781_v6 = vadd.f32 %v780_v1, %v779_v8  ;;  %v880_v16 = vadd.f32 %v879_v12, %v878_v7 }
 0x118   : > { %v882_v21 = vadd.f32 %v881_v15, %v880_v16  ;;  %v783_v22 = vadd.f32 %v782_v19, %v781_v6 }
 0x11a   : > { %v785_v27 = vadd.f32 %v784_v20, %v783_v22  ;;  %v884_v29 = vadd.f32 %v883_v23, %v882_v21 }
 0x11c   : > { %v886_v30 = vadd.f32 %v885_v25, %v884_v29  ;;  %v787_v31 = vadd.f32 %v786_v0, %v785_v27 }
 0x11e   : > { %v789_v38 = vadd.f32 %v788_v18, %v787_v31  ;;  %v888_v39 = vadd.f32 %v887_v32, %v886_v30 }
 0x120   : > { %v890_v42 = vadd.f32 %v889_v35, %v888_v39  ;;  %v791_v43 = vadd.f32 %v790_v41, %v789_v38 }
 0x122   : > { %v793_v49 = vadd.f32 %v792_v14, %v791_v43  ;;  %v892_v51 = vadd.f32 %v891_v33, %v890_v42 }
 0x124   : > { %v894_v28 = vadd.f32 %v893_v46, %v892_v51  ;;  %v795_v53 = vadd.f32 %v794_v52, %v793_v49 }
 0x126   : > { %v797_v59 = vadd.f32 %v796_v40, %v795_v53  ;;  %v896_v60 = vadd.f32 %v895_v48, %v894_v28 }
 0x128   : > { %v898_v61 = vadd.f32 %v897_v56, %v896_v60  ;;  %v799_v63 = vadd.f32 %v798_v62, %v797_v59 }
 0x12a   : > { %v801_v54 = vadd.f32 %v800_v45, %v799_v63  ;;  %v900_v4 = vadd.f32 %v899_v3, %v898_v61 }
 0x12c   : > { %v803_v5 = vadd.f32 %v802_v9, %v801_v54  ;;  %v902_v1 = vadd.f32 %v901_v36, %v900_v4 }
 0x12e   : > { %v804_v2 = vrot.slane %v803_v5, 4  ;;  %v904_v7 = vadd.f32 %v903_v17, %v902_v1 }
 0x130   : > { %v805_v8 = vadd.f32 %v804_v2, %v803_v5  ;;  %v905_v10 = vrot.slane %v904_v7, 4 }
 0x132   : > { %v806_v12 = vrot.slane %v805_v8, 2  ;;  %v906_v58 = vadd.f32 %v905_v10, %v904_v7 }
 0x134   : > { %v807_v11 = vadd.f32 %v806_v12, %v805_v8  ;;  %v907_v13 = vrot.slane %v906_v58, 2 }
 0x136   : > { %v808_v15 = vrot.slane %v807_v11, 1  ;;  %v908_v50 = vadd.f32 %v907_v13, %v906_v58 }
 0x138   : > { %v909_v6 = vrot.slane %v908_v50, 1  ;;  %v809_v9 = vadd.f32 %v808_v15, %v807_v11 }
 0x13a   : > { %v910_v16 = vadd.f32 %v909_v6, %v908_v50 }
 0x13c   : > { %v912_v17 = vsel %vm911_vm3, %v809_v9, %v910_v16 }
 0x13d   : > { %914 = vst.msk [vmem:[%s238_s12] sm:$0x3] %vm913_vm4, %v912_v17 }
 0x13e PF: > { %s16_s18 = sadd.s32 1, %s1148_s18  }
 0x13f   : > { %p13_p5 = scmp.ge.s32.totalorder %s16_s18, 4  }
 0x141   :  { %15 = sbr.rel (!%p13_p5) target bundleno = 1 (0x1), region = 78 }

// kernel: bottleneck_forward.4
= control target key start
LH: loop header
LB: loop body
LE: loop exit
PB: predicated region body
PF: predicated region fallthrough
CT: control target
= control target key end

     0   :  { %s1007_s12 = smov 0   ;;  %s1337_s0 = inlined_call_operand.vmem [shape: f32[512,16], index: 0, kind: input, shape index: {}]   ;;  %s1338_s1 = inlined_call_operand.vmem [shape: f32[16,4], index: 1, kind: input, shape index: {}]   ;;  %s1339_s2 = inlined_call_operand.vmem [shape: f32[512,4], index: 2, kind: output, shape index: {0}]   ;;  %s1340_s3 = inlined_call_operand.vmem [shape: f32[2,2,4], index: 3, kind: output, shape index: {1}]  }
   0x1 LB: > { %s1013_s13 = sadd.s32 4294967295, %s985_s12   ;;  %p839_p0 = scmp.ge.s32.totalorder %s985_s12, 1  ;;  %s985_s12 = sphi %s1007_s12, %s14_s12  }
   0x2   : > { %p141_p1 = scmp.lt.s32.totalorder %s985_s12, 3 }
   0x4   : > { %p142_p2 = pnand %p839_p0, %p141_p1 }
   0x5   : > { %v217_v0 = vld [vmem:[%s1338_s1] sm:$0xff] (!%p142_p2)  ;;  %v218_v1 = vld [vmem:[%s1338_s1 + $0x8] sm:$0xff] (!%p142_p2)  ;;  %s840_s18 = sshll.u32 (!%p142_p2), %s1013_s13, 5  ;;  %vm219_vm0 = vcmask (!%p142_p2), 130048   ;;  %vm541_vm1 = vcmask (!%p142_p2), 31744   ;;  %p181_p4 = scmp.lt.s32.totalorder (!%p142_p2), %s1013_s13, 1 }
   0x6   : > { %145 = sbr.rel (%p142_p2) target bundleno = 312 (0x138), region = 28  ;;  %v965_v2 = vpack.c.bf16 (!%p142_p2), %v218_v1, %v217_v0  ;;  %p170_p3 = scmp.lt.s32.totalorder (!%p142_p2), %s840_s18, 63  ;;  %vm744_vm2 = vcmask (!%p142_p2), 1040384   ;;  %vm746_vm3 = vcmask (!%p142_p2), 25600  }
   0x8   : > { %966 = vmatprep.subr.bf16.mxu0 (!%p142_p2), %v965_v2  ;;  %969 = vmatprep.subr.bf16.mxu1 (!%p142_p2), %v965_v2 }
   0x9   : > { %968 = vmatpush3.bf16.msra.mxu0 (!%p142_p2), %v965_v2  ;;  %970 = vmatpush3.bf16.msra.mxu1 (!%p142_p2), %v965_v2 }
   0xd   : > { %s1342_s18 = smov (!%p170_p3, %s840_s18), 63  ;;  %s1344_s13 = smov (!%p181_p4, %s1013_s13), 1 }
   0xe   : > { %s841_s19 = sshll.u32 %s1342_s18, 3  ;;  %s844_s26 = sshll.u32 %s1344_s13, 1 }
   0xf   : > { %s1032_s22 = scalar_lea.vmem %s1337_s0, %s841_s19  ;;  %s1103_s25 = scalar_lea.vmem %s1339_s2, %s841_s19 }
  0x10   : > { %v185_v3 = vld [vmem:[%s1032_s22] sm:$0xff]  ;;  %v186_v4 = vld [vmem:[%s1032_s22 + $0x8] sm:$0xff]  ;;  %v187_v5 = vld [vmem:[%s1032_s22 + $0x10] sm:$0xff]  ;;  %s184_s29 = scalar_lea.vmem %s1340_s3, %s844_s26 }
  0x11   : > { %917 = vmatprep.mubr.msk.f32.mxu0 %vm219_vm0, %v185_v3  ;;  %v188_v6 = vld [vmem:[%s1032_s22 + $0x18] sm:$0xff]  ;;  %v189_v7 = vld [vmem:[%s1032_s22 + $0x20] sm:$0xff]  ;;  %v202_v9 = vld [vmem:[%s1032_s22 + $0x88] sm:$0xff] }
  0x12   : > { %918 = vmatmul.mubr.msk.f32.vlgmr.msra.gmra.mrb[0].mxu0 %vm219_vm0, %v186_v4  ;;  %v201_v8 = vld [vmem:[%s1032_s22 + $0x80] sm:$0xff]  ;;  %v203_v10 = vld [vmem:[%s1032_s22 + $0x90] sm:$0xff]  ;;  %v190_v11 = vld [vmem:[%s1032_s22 + $0x28] sm:$0xff] }
  0x13   : > { %920 = vmatprep.mubr.msk.f32.mxu0 %vm219_vm0, %v187_v5  ;;  %941 = vmatprep.mubr.msk.f32.mxu1 %vm219_vm0, %v201_v8  ;;  %v191_v12 = vld [vmem:[%s1032_s22 + $0x30] sm:$0xff]  ;;  %v204_v13 = vld [vmem:[%s1032_s22 + $0x98] sm:$0xff]  ;;  %v205_v14 = vld [vmem:[%s1032_s22 + $0xa0] sm:$0xff] }
  0x14   : > { %942 = vmatmul.mubr.msk.f32.vlgmr.msra.gmra.mrb[0].mxu1 %vm219_vm0, %v202_v9  ;;  %v192_v15 = vld [vmem:[%s1032_s22 + $0x38] sm:$0xff]  ;;  %v193_v16 = vld [vmem:[%s1032_s22 + $0x40] sm:$0xff]  ;;  %v206_v17 = vld [vmem:[%s1032_s22 + $0xa8] sm:$0xff] }
  0x15   : > { %944 = vmatprep.mubr.msk.f32.mxu1 %vm219_vm0, %v203_v10  ;;  %v207_v18 = vld [vmem:[%s1032_s22 + $0xb0] sm:$0xff]  ;;  %v194_v19 = vld [vmem:[%s1032_s22 + $0x48] sm:$0xff]  ;;  %v208_v21 = vld [vmem:[%s1032_s22 + $0xb8] sm:$0xff] }
  0x16   : > { %921 = vmatmul.mubr.msk.f32.gmra.mrb[2].mxu0 %vm219_vm0, %v188_v6  ;;  %v195_v20 = vld [vmem:[%s1032_s22 + $0x50] sm:$0xff]  ;;  %v209_v22 = vld [vmem:[%s1032_s22 + $0xc0] sm:$0xff]  ;;  %v196_v23 = vld [vmem:[%s1032_s22 + $0x58] sm:$0xff] }
  0x17   : > { %923 = vmatprep.mubr.msk.f32.mxu0 %vm219_vm0, %v189_v7  ;;  %v197_v24 = vld [vmem:[%s1032_s22 + $0x60] sm:$0xff]  ;;  %v210_v25 = vld [vmem:[%s1032_s22 + $0xc8] sm:$0xff]  ;;  %v211_v26 = vld [vmem:[%s1032_s22 + $0xd0] sm:$0xff] }
  0x18   : > { %945 = vmatmul.mubr.msk.f32.gmra.mrb[2].mxu1 %vm219_vm0, %v204_v13  ;;  %v198_v27 = vld [vmem:[%s1032_s22 + $0x68] sm:$0xff]  ;;  %v199_v28 = vld [vmem:[%s1032_s22 + $0x70] sm:$0xff]  ;;  %v212_v29 = vld [vmem:[%s1032_s22 + $0xd8] sm:$0xff] }
  0x19   : > { %947 = vmatprep.mubr.msk.f32.mxu1 %vm219_vm0, %v205_v14  ;;  %v213_v30 = vld [vmem:[%s1032_s22 + $0xe0] sm:$0xff]  ;;  %v200_v31 = vld [vmem:[%s1032_s22 + $0x78] sm:$0xff]  ;;  %v214_v32 = vld [vmem:[%s1032_s22 + $0xe8] sm:$0xff] }
  0x1a   : > { %924 = vmatmul.mubr.msk.f32.gmra.mrb[4].mxu0 %vm219_vm0, %v190_v11  ;;  %v215_v33 = vld [vmem:[%s1032_s22 + $0xf0] sm:$0xff]  ;;  %v216_v34 = vld [vmem:[%s1032_s22 + $0xf8] sm:$0xff] }
  0x1b   : > { %926 = vmatprep.mubr.msk.f32.mxu0 %vm219_vm0, %v191_v12 }
  0x1c   : > { %948 = vmatmul.mubr.msk.f32.gmra.mrb[4].mxu1 %vm219_vm0, %v206_v17 }
  0x1d   : > { %950 = vmatprep.mubr.msk.f32.mxu1 %vm219_vm0, %v207_v18 }
  0x1e   : > { %927 = vmatmul.mubr.msk.f32.gmra.mrb[6].mxu0 %vm219_vm0, %v192_v15 }
  0x1f   : > { %929 = vmatprep.mubr.msk.f32.mxu0 %vm219_vm0, %v193_v16 }
  0x20   : > { %951 = vmatmul.mubr.msk.f32.gmra.mrb[6].mxu1 %vm219_vm0, %v208_v21 }
  0x21   : > { %953 = vmatprep.mubr.msk.f32.mxu1 %vm219_vm0, %v209_v22 }
  0x22   : > { %930 = vmatmul.mubr.msk.f32.gmra.mrb[8].mxu0 %vm219_vm0, %v194_v19 }
  0x23   : > { %932 = vmatprep.mubr.msk.f32.mxu0 %vm219_vm0, %v195_v20 }
  0x24   : > { %954 = vmatmul.mubr.msk.f32.gmra.mrb[8].mxu1 %vm219_vm0, %v210_v25 }
  0x25   : > { %956 = vmatprep.mubr.msk.f32.mxu1 %vm219_vm0, %v211_v26 }
  0x26   : > { %933 = vmatmul.mubr.msk.f32.gmra.mrb[10].mxu0 %vm219_vm0, %v196_v23 }
  0x27   : > { %935 = vmatprep.mubr.msk.f32.mxu0 %vm219_vm0, %v197_v24 }
  0x28   : > { %957 = vmatmul.mubr.msk.f32.gmra.mrb[10].mxu1 %vm219_vm0, %v212_v29 }
  0x29   : > { %959 = vmatprep.mubr.msk.f32.mxu1 %vm219_vm0, %v213_v30 }
  0x2a   : > { %936 = vmatmul.mubr.msk.f32.gmra.mrb[12].mxu0 %vm219_vm0, %v198_v27 }
  0x2b   : > { %938 = vmatprep.mubr.msk.f32.mxu0 %vm219_vm0, %v199_v28 }
  0x2c   : > { %960 = vmatmul.mubr.msk.f32.gmra.mrb[12].mxu1 %vm219_vm0, %v214_v32 }
  0x2d   : > { %962 = vmatprep.mubr.msk.f32.mxu1 %vm219_vm0, %v215_v33 }
  0x2e   : > { %939 = vmatmul.mubr.msk.f32.gmra.mrb[14].mxu0 %vm219_vm0, %v200_v31 }
  0x30   : > { %963 = vmatmul.mubr.msk.f32.gmra.mrb[14].mxu1 %vm219_vm0, %v216_v34 }
  0xe5   : > { %v919_v35 = vpop.f32.mrb[0].mxu0 }
  0xe6   : > { %543 = vst.msk [vmem:[%s1103_s25 + $0x8] sm:$0xff] %vm541_vm1, %v919_v35  ;;  %v575_v36 = vsel %vm541_vm1, %v919_v35, 0.0  ;;  %v644_v37 = vmul.f32 %v919_v35, %v919_v35  ;;  %v382_v38 = vpop.f32.mrb[1].mxu0 }
  0xe7   : > { %542 = vst.msk [vmem:[%s1103_s25] sm:$0xff] %vm541_vm1, %v382_v38  ;;  %v574_v39 = vsel %vm541_vm1, %v382_v38, 0.0  ;;  %v643_v40 = vmul.f32 %v382_v38, %v382_v38  ;;  %v1115_v47 = vpop.f32.mrb[0].mxu1 }
  0xe8   : > { %v676_v41 = vsel %vm541_vm1, %v644_v37, 0.0  ;;  %v576_v42 = vadd.f32 %v575_v36, %v574_v39  ;;  %559 = vst.msk [vmem:[%s1103_s25 + $0x88] sm:$0xff] %vm541_vm1, %v1115_v47  ;;  %v1123_v51 = vpop.f32.mrb[1].mxu1 }
  0xe9   : > { %v675_v43 = vsel %vm541_vm1, %v643_v40, 0.0  ;;  %v922_v44 = vpop.f32.mrb[2].mxu0  ;;  %558 = vst.msk [vmem:[%s1103_s25 + $0x80] sm:$0xff] %vm541_vm1, %v1123_v51 }
  0xea   : > { %v677_v45 = vadd.f32 %v676_v41, %v675_v43  ;;  %545 = vst.msk [vmem:[%s1103_s25 + $0x18] sm:$0xff] %vm541_vm1, %v922_v44  ;;  %v392_v46 = vpop.f32.mrb[3].mxu0  ;;  %v646_v48 = vmul.f32 %v922_v44, %v922_v44  ;;  %v579_v53 = vsel %vm541_vm1, %v922_v44, 0.0 }
  0xeb   : > { %544 = vst.msk [vmem:[%s1103_s25 + $0x10] sm:$0xff] %vm541_vm1, %v392_v46  ;;  %v577_v49 = vsel %vm541_vm1, %v392_v46, 0.0  ;;  %v645_v50 = vmul.f32 %v392_v46, %v392_v46  ;;  %v1132_v59 = vpop.f32.mrb[2].mxu1 }
  0xec   : > { %v578_v52 = vadd.f32 %v577_v49, %v576_v42  ;;  %v680_v60 = vsel %vm541_vm1, %v646_v48, 0.0  ;;  %561 = vst.msk [vmem:[%s1103_s25 + $0x98] sm:$0xff] %vm541_vm1, %v1132_v59  ;;  %v1141_v0 = vpop.f32.mrb[3].mxu1 }
  0xed   : > { %v678_v54 = vsel %vm541_vm1, %v645_v50, 0.0  ;;  %v925_v55 = vpop.f32.mrb[4].mxu0  ;;  %560 = vst.msk [vmem:[%s1103_s25 + $0x90] sm:$0xff] %vm541_vm1, %v1141_v0 }
  0xee   : > { %v679_v56 = vadd.f32 %v678_v54, %v677_v45  ;;  %547 = vst.msk [vmem:[%s1103_s25 + $0x28] sm:$0xff] %vm541_vm1, %v925_v55  ;;  %v402_v57 = vpop.f32.mrb[5].mxu0  ;;  %v580_v58 = vadd.f32 %v579_v53, %v578_v52  ;;  %v648_v61 = vmul.f32 %v925_v55, %v925_v55  ;;  %v583_v3 = vsel %vm541_vm1, %v925_v55, 0.0 }
  0xef   : > { %546 = vst.msk [vmem:[%s1103_s25 + $0x20] sm:$0xff] %vm541_vm1, %v402_v57  ;;  %v581_v62 = vsel %vm541_vm1, %v402_v57, 0.0  ;;  %v647_v63 = vmul.f32 %v402_v57, %v402_v57  ;;  %v1150_v9 = vpop.f32.mrb[4].mxu1 }
  0xf0   : > { %v582_v1 = vadd.f32 %v581_v62, %v580_v58  ;;  %v681_v2 = vadd.f32 %v680_v60, %v679_v56  ;;  %v684_v10 = vsel %vm541_vm1, %v648_v61, 0.0  ;;  %563 = vst.msk [vmem:[%s1103_s25 + $0xa8] sm:$0xff] %vm541_vm1, %v1150_v9  ;;  %v1159_v14 = vpop.f32.mrb[5].mxu1 }
  0xf1   : > { %v682_v4 = vsel %vm541_vm1, %v647_v63, 0.0  ;;  %v928_v5 = vpop.f32.mrb[6].mxu0  ;;  %562 = vst.msk [vmem:[%s1103_s25 + $0xa0] sm:$0xff] %vm541_vm1, %v1159_v14 }
  0xf2   : > { %v683_v6 = vadd.f32 %v682_v4, %v681_v2  ;;  %549 = vst.msk [vmem:[%s1103_s25 + $0x38] sm:$0xff] %vm541_vm1, %v928_v5  ;;  %v412_v7 = vpop.f32.mrb[7].mxu0  ;;  %v584_v8 = vadd.f32 %v583_v3, %v582_v1  ;;  %v650_v11 = vmul.f32 %v928_v5, %v928_v5  ;;  %v587_v17 = vsel %vm541_vm1, %v928_v5, 0.0 }
  0xf3   : > { %548 = vst.msk [vmem:[%s1103_s25 + $0x30] sm:$0xff] %vm541_vm1, %v412_v7  ;;  %v585_v12 = vsel %vm541_vm1, %v412_v7, 0.0  ;;  %v649_v13 = vmul.f32 %v412_v7, %v412_v7  ;;  %v1168_v23 = vpop.f32.mrb[6].mxu1  ;;  %v659_v5 = vmul.f32 %v1123_v51, %v1123_v51 }
  0xf4   : > { %v586_v15 = vadd.f32 %v585_v12, %v584_v8  ;;  %v685_v16 = vadd.f32 %v684_v10, %v683_v6  ;;  %v688_v24 = vsel %vm541_vm1, %v650_v11, 0.0  ;;  %565 = vst.msk [vmem:[%s1103_s25 + $0xb8] sm:$0xff] %vm541_vm1, %v1168_v23  ;;  %v1177_v28 = vpop.f32.mrb[7].mxu1 }
  0xf5   : > { %v686_v18 = vsel %vm541_vm1, %v649_v13, 0.0  ;;  %v931_v19 = vpop.f32.mrb[8].mxu0  ;;  %564 = vst.msk [vmem:[%s1103_s25 + $0xb0] sm:$0xff] %vm541_vm1, %v1177_v28 }
  0xf6   : > { %v687_v20 = vadd.f32 %v686_v18, %v685_v16  ;;  %551 = vst.msk [vmem:[%s1103_s25 + $0x48] sm:$0xff] %vm541_vm1, %v931_v19  ;;  %v422_v21 = vpop.f32.mrb[9].mxu0  ;;  %v588_v22 = vadd.f32 %v587_v17, %v586_v15  ;;  %v652_v25 = vmul.f32 %v931_v19, %v931_v19  ;;  %v591_v31 = vsel %vm541_vm1, %v931_v19, 0.0 }
  0xf7   : > { %550 = vst.msk [vmem:[%s1103_s25 + $0x40] sm:$0xff] %vm541_vm1, %v422_v21  ;;  %v589_v26 = vsel %vm541_vm1, %v422_v21, 0.0  ;;  %v651_v27 = vmul.f32 %v422_v21, %v422_v21  ;;  %v1186_v37 = vpop.f32.mrb[8].mxu1  ;;  %v605_v18 = vsel %vm541_vm1, %v1123_v51, 0.0  ;;  %v660_v21 = vmul.f32 %v1115_v47, %v1115_v47 }
  0xf8   : > { %v590_v29 = vadd.f32 %v589_v26, %v588_v22  ;;  %v689_v30 = vadd.f32 %v688_v24, %v687_v20  ;;  %v692_v38 = vsel %vm541_vm1, %v652_v25, 0.0  ;;  %567 = vst.msk [vmem:[%s1103_s25 + $0xc8] sm:$0xff] %vm541_vm1, %v1186_v37  ;;  %v1195_v42 = vpop.f32.mrb[9].mxu1  ;;  %v706_v22 = vsel %vm541_vm1, %v659_v5, 0.0 }
  0xf9   : > { %v690_v32 = vsel %vm541_vm1, %v651_v27, 0.0  ;;  %v934_v33 = vpop.f32.mrb[10].mxu0  ;;  %566 = vst.msk [vmem:[%s1103_s25 + $0xc0] sm:$0xff] %vm541_vm1, %v1195_v42  ;;  %v661_v26 = vmul.f32 %v1141_v0, %v1141_v0 }
  0xfa   : > { %v691_v34 = vadd.f32 %v690_v32, %v689_v30  ;;  %553 = vst.msk [vmem:[%s1103_s25 + $0x58] sm:$0xff] %vm541_vm1, %v934_v33  ;;  %v432_v35 = vpop.f32.mrb[11].mxu0  ;;  %v592_v36 = vadd.f32 %v591_v31, %v590_v29  ;;  %v654_v39 = vmul.f32 %v934_v33, %v934_v33  ;;  %v595_v45 = vsel %vm541_vm1, %v934_v33, 0.0 }
  0xfb   : > { %552 = vst.msk [vmem:[%s1103_s25 + $0x50] sm:$0xff] %vm541_vm1, %v432_v35  ;;  %v593_v40 = vsel %vm541_vm1, %v432_v35, 0.0  ;;  %v653_v41 = vmul.f32 %v432_v35, %v432_v35  ;;  %v1204_v53 = vpop.f32.mrb[10].mxu1  ;;  %v607_v32 = vsel %vm541_vm1, %v1115_v47, 0.0  ;;  %v609_v33 = vsel %vm541_vm1, %v1141_v0, 0.0 }
  0xfc   : > { %v594_v43 = vadd.f32 %v593_v40, %v592_v36  ;;  %v693_v44 = vadd.f32 %v692_v38, %v691_v34  ;;  %v696_v54 = vsel %vm541_vm1, %v654_v39, 0.0  ;;  %569 = vst.msk [vmem:[%s1103_s25 + $0xd8] sm:$0xff] %vm541_vm1, %v1204_v53  ;;  %v1213_v58 = vpop.f32.mrb[11].mxu1  ;;  %v708_v38 = vsel %vm541_vm1, %v660_v21, 0.0 }
  0xfd   : > { %v694_v46 = vsel %vm541_vm1, %v653_v41, 0.0  ;;  %v937_v48 = vpop.f32.mrb[12].mxu0  ;;  %568 = vst.msk [vmem:[%s1103_s25 + $0xd0] sm:$0xff] %vm541_vm1, %v1213_v58  ;;  %v662_v39 = vmul.f32 %v1132_v59, %v1132_v59  ;;  %v710_v40 = vsel %vm541_vm1, %v661_v26, 0.0  ;;  %v663_v41 = vmul.f32 %v1159_v14, %v1159_v14 }
  0xfe   : > { %v695_v49 = vadd.f32 %v694_v46, %v693_v44  ;;  %555 = vst.msk [vmem:[%s1103_s25 + $0x68] sm:$0xff] %vm541_vm1, %v937_v48  ;;  %v442_v50 = vpop.f32.mrb[13].mxu0  ;;  %v596_v52 = vadd.f32 %v595_v45, %v594_v43  ;;  %v656_v55 = vmul.f32 %v937_v48, %v937_v48  ;;  %v599_v62 = vsel %vm541_vm1, %v937_v48, 0.0 }
  0xff   : > { %554 = vst.msk [vmem:[%s1103_s25 + $0x60] sm:$0xff] %vm541_vm1, %v442_v50  ;;  %v597_v56 = vsel %vm541_vm1, %v442_v50, 0.0  ;;  %v655_v57 = vmul.f32 %v442_v50, %v442_v50  ;;  %v1224_v6 = vpop.f32.mrb[12].mxu1  ;;  %v611_v0 = vsel %vm541_vm1, %v1132_v59, 0.0  ;;  %v613_v44 = vsel %vm541_vm1, %v1159_v14, 0.0 }
 0x100   : > { %v598_v60 = vadd.f32 %v597_v56, %v596_v52  ;;  %v697_v61 = vadd.f32 %v696_v54, %v695_v49  ;;  %v700_v7 = vsel %vm541_vm1, %v656_v55, 0.0  ;;  %571 = vst.msk [vmem:[%s1103_s25 + $0xe8] sm:$0xff] %vm541_vm1, %v1224_v6  ;;  %v1233_v12 = vpop.f32.mrb[13].mxu1  ;;  %v712_v48 = vsel %vm541_vm1, %v662_v39, 0.0 }
 0x101   : > { %v698_v63 = vsel %vm541_vm1, %v655_v57, 0.0  ;;  %v940_v1 = vpop.f32.mrb[14].mxu0  ;;  %570 = vst.msk [vmem:[%s1103_s25 + $0xe0] sm:$0xff] %vm541_vm1, %v1233_v12  ;;  %v664_v49 = vmul.f32 %v1150_v9, %v1150_v9  ;;  %v714_v50 = vsel %vm541_vm1, %v663_v41, 0.0  ;;  %v665_v52 = vmul.f32 %v1177_v28, %v1177_v28 }
 0x102   : > { %v699_v2 = vadd.f32 %v698_v63, %v697_v61  ;;  %557 = vst.msk [vmem:[%s1103_s25 + $0x78] sm:$0xff] %vm541_vm1, %v940_v1  ;;  %v452_v3 = vpop.f32.mrb[15].mxu0  ;;  %v600_v4 = vadd.f32 %v599_v62, %v598_v60  ;;  %v658_v8 = vmul.f32 %v940_v1, %v940_v1  ;;  %v603_v16 = vsel %vm541_vm1, %v940_v1, 0.0 }
 0x103   : > { %556 = vst.msk [vmem:[%s1103_s25 + $0x70] sm:$0xff] %vm541_vm1, %v452_v3  ;;  %v601_v10 = vsel %vm541_vm1, %v452_v3, 0.0  ;;  %v657_v11 = vmul.f32 %v452_v3, %v452_v3  ;;  %v964_v24 = vpop.f32.mrb[14].mxu1  ;;  %v615_v59 = vsel %vm541_vm1, %v1150_v9, 0.0  ;;  %v617_v14 = vsel %vm541_vm1, %v1177_v28, 0.0 }
 0x104   : > { %v602_v13 = vadd.f32 %v601_v10, %v600_v4  ;;  %v701_v15 = vadd.f32 %v700_v7, %v699_v2  ;;  %v704_v25 = vsel %vm541_vm1, %v658_v8, 0.0  ;;  %573 = vst.msk [vmem:[%s1103_s25 + $0xf8] sm:$0xff] %vm541_vm1, %v964_v24  ;;  %v1251_v27 = vsel %vm541_vm1, %v964_v24, 0.0  ;;  %v1253_v51 = vpop.f32.mrb[15].mxu1 }
 0x105   : > { %v702_v17 = vsel %vm541_vm1, %v657_v11, 0.0  ;;  %v674_v29 = vmul.f32 %v964_v24, %v964_v24  ;;  %572 = vst.msk [vmem:[%s1103_s25 + $0xf0] sm:$0xff] %vm541_vm1, %v1253_v51  ;;  %v716_v60 = vsel %vm541_vm1, %v664_v49, 0.0  ;;  %v666_v61 = vmul.f32 %v1168_v23, %v1168_v23 }
 0x106   : > { %v604_v19 = vadd.f32 %v603_v16, %v602_v13  ;;  %v703_v20 = vadd.f32 %v702_v17, %v701_v15  ;;  %v718_v62 = vsel %vm541_vm1, %v665_v52, 0.0  ;;  %v667_v63 = vmul.f32 %v1195_v42, %v1195_v42 }
 0x107   : > { %v1263_v34 = vsel %vm541_vm1, %v674_v29, 0.0  ;;  %v619_v9 = vsel %vm541_vm1, %v1168_v23, 0.0  ;;  %v621_v28 = vsel %vm541_vm1, %v1195_v42, 0.0  ;;  %v720_v5 = vsel %vm541_vm1, %v666_v61, 0.0 }
 0x108   : > { %v705_v30 = vadd.f32 %v704_v25, %v703_v20  ;;  %v606_v31 = vadd.f32 %v605_v18, %v604_v19  ;;  %v668_v7 = vmul.f32 %v1186_v37, %v1186_v37  ;;  %v722_v8 = vsel %vm541_vm1, %v667_v63, 0.0 }
 0x109   : > { %v669_v10 = vmul.f32 %v1213_v58, %v1213_v58  ;;  %v623_v23 = vsel %vm541_vm1, %v1186_v37, 0.0  ;;  %v625_v42 = vsel %vm541_vm1, %v1213_v58, 0.0  ;;  %v670_v18 = vmul.f32 %v1204_v53, %v1204_v53 }
 0x10a   : > { %v707_v35 = vadd.f32 %v706_v22, %v705_v30  ;;  %v608_v36 = vadd.f32 %v607_v32, %v606_v31  ;;  %v724_v17 = vsel %vm541_vm1, %v668_v7, 0.0  ;;  %v671_v20 = vmul.f32 %v1233_v12, %v1233_v12 }
 0x10b   : > { %v726_v19 = vsel %vm541_vm1, %v669_v10, 0.0  ;;  %v627_v37 = vsel %vm541_vm1, %v1204_v53, 0.0  ;;  %v629_v58 = vsel %vm541_vm1, %v1233_v12, 0.0  ;;  %v728_v26 = vsel %vm541_vm1, %v670_v18, 0.0 }
 0x10c   : > { %v610_v43 = vadd.f32 %v609_v33, %v608_v36  ;;  %v709_v47 = vadd.f32 %v708_v38, %v707_v35  ;;  %v672_v29 = vmul.f32 %v1224_v6, %v1224_v6  ;;  %v730_v30 = vsel %vm541_vm1, %v671_v20, 0.0 }
 0x10d   : > { %v673_v31 = vmul.f32 %v1253_v51, %v1253_v51  ;;  %v631_v53 = vsel %vm541_vm1, %v1224_v6, 0.0  ;;  %v633_v12 = vsel %vm541_vm1, %v1253_v51, 0.0 }
 0x10e   : > { %v711_v45 = vadd.f32 %v710_v40, %v709_v47  ;;  %v612_v46 = vadd.f32 %v611_v0, %v610_v43  ;;  %v732_v38 = vsel %vm541_vm1, %v672_v29, 0.0 }
 0x10f   : > { %v734_v39 = vsel %vm541_vm1, %v673_v31, 0.0 }
 0x110   : > { %v614_v54 = vadd.f32 %v613_v44, %v612_v46  ;;  %v713_v55 = vadd.f32 %v712_v48, %v711_v45 }
 0x112   : > { %v715_v56 = vadd.f32 %v714_v50, %v713_v55  ;;  %v616_v57 = vadd.f32 %v615_v59, %v614_v54 }
 0x114   : > { %v618_v1 = vadd.f32 %v617_v14, %v616_v57  ;;  %v717_v2 = vadd.f32 %v716_v60, %v715_v56 }
 0x116   : > { %v719_v3 = vadd.f32 %v718_v62, %v717_v2  ;;  %v620_v4 = vadd.f32 %v619_v9, %v618_v1 }
 0x118   : > { %v622_v11 = vadd.f32 %v621_v28, %v620_v4  ;;  %v721_v13 = vadd.f32 %v720_v5, %v719_v3 }
 0x11a   : > { %v723_v15 = vadd.f32 %v722_v8, %v721_v13  ;;  %v624_v16 = vadd.f32 %v623_v23, %v622_v11 }
 0x11c   : > { %v626_v21 = vadd.f32 %v625_v42, %v624_v16  ;;  %v725_v22 = vadd.f32 %v724_v17, %v723_v15 }
 0x11e   : > { %v727_v24 = vadd.f32 %v726_v19, %v725_v22  ;;  %v628_v25 = vadd.f32 %v627_v37, %v626_v21 }
 0x120   : > { %v630_v32 = vadd.f32 %v629_v58, %v628_v25  ;;  %v729_v33 = vadd.f32 %v728_v26, %v727_v24 }
 0x122   : > { %v731_v35 = vadd.f32 %v730_v30, %v729_v33  ;;  %v632_v36 = vadd.f32 %v631_v53, %v630_v32 }
 0x124   : > { %v634_v40 = vadd.f32 %v633_v12, %v632_v36  ;;  %v733_v41 = vadd.f32 %v732_v38, %v731_v35 }
 0x126   : > { %v636_v43 = vadd.f32 %v1251_v27, %v634_v40  ;;  %v735_v47 = vadd.f32 %v734_v39, %v733_v41 }
 0x128   : > { %v637_v0 = vrot.slane %v636_v43, 4  ;;  %v737_v44 = vadd.f32 %v1263_v34, %v735_v47 }
 0x12a   : > { %v638_v6 = vadd.f32 %v637_v0, %v636_v43  ;;  %v738_v45 = vrot.slane %v737_v44, 4 }
 0x12c   : > { %v639_v46 = vrot.slane %v638_v6, 2  ;;  %v739_v51 = vadd.f32 %v738_v45, %v737_v44 }
 0x12e   : > { %v640_v48 = vadd.f32 %v639_v46, %v638_v6  ;;  %v740_v49 = vrot.slane %v739_v51, 2 }
 0x130   : > { %v641_v50 = vrot.slane %v640_v48, 1  ;;  %v741_v52 = vadd.f32 %v740_v49, %v739_v51 }
 0x132   : > { %v742_v54 = vrot.slane %v741_v52, 1  ;;  %v642_v27 = vadd.f32 %v641_v50, %v640_v48 }
 0x134   : > { %v743_v55 = vadd.f32 %v742_v54, %v741_v52 }
 0x136   : > { %v745_v34 = vsel %vm744_vm2, %v642_v27, %v743_v55 }
 0x137   : > { %747 = vst.msk [vmem:[%s184_s29] sm:$0x3] %vm746_vm3, %v745_v34 }
 0x138 PF: > { %s14_s12 = sadd.s32 1, %s985_s12  }
 0x139   : > { %p11_p5 = scmp.ge.s32.totalorder %s14_s12, 4  }
 0x13b   :  { %13 = sbr.rel (!%p11_p5) target bundleno = 1 (0x1), region = 70 }

// kernel: bottleneck_forward.5
= control target key start
LH: loop header
LB: loop body
LE: loop exit
PB: predicated region body
PF: predicated region fallthrough
CT: control target
= control target key end

     0   :  { %s3191_s21 = smov 0   ;;  %s5342_s0 = inlined_call_operand.vmem [shape: f32[2,256,4], index: 0, kind: input, shape index: {}]   ;;  %s5343_s1 = inlined_call_operand.vmem [shape: f32[1,4], index: 1, kind: input, shape index: {}]   ;;  %s5344_s2 = inlined_call_operand.vmem [shape: f32[1,4], index: 2, kind: input, shape index: {}]   ;;  %s5345_s3 = inlined_call_operand.vmem [shape: f32[256,2], index: 3, kind: input, shape index: {}]   ;;  %s5346_s4 = inlined_call_operand.vmem [shape: f32[36,4], index: 4, kind: input, shape index: {}]   ;;  %s5347_s5 = inlined_call_operand.vmem [shape: f32[2,256,4], index: 5, kind: output, shape index: {0}]   ;;  %s5348_s6 = inlined_call_operand.vmem [shape: f32[2,2,4], index: 6, kind: output, shape index: {1}]  }
   0x1 LB: > { %s2956_s22 = sadd.s32 4294967295, %s3143_s21   ;;  %p2960_p0 = scmp.ge.s32.totalorder %s3143_s21, 1  ;;  %s3143_s21 = sphi %s3191_s21, %s17_s21  }
   0x2   : > { %p215_p1 = scmp.lt.s32.totalorder %s3143_s21, 3 }
   0x4   : > { %p216_p2 = pnand %p2960_p0, %p215_p1 }
   0x6   : > { %219 = sbr.rel (%p216_p2) target bundleno = 1012 (0x3f4), region = 40 }
   0xd   : > { %v3202_v0 = vld [vmem:[%s5345_s3 + $0x10] sm:$0xff]  ;;  %v3207_v1 = vld [vmem:[%s5345_s3] sm:$0xff]  ;;  %v3145_v2 = vmov 0   ;;  %v3214_v3 = vld [vmem:[%s5345_s3 + $0x18] sm:$0xff]  ;;  %p249_p3 = scmp.lt.s32.totalorder %s2956_s22, 1  ;;  %v3146_v41 = vmov 1  }
   0xe   : > { %3134 = vset.pattern.permute.xlu1 %v3145_v2  ;;  %3133 = vset.pattern.permute.xlu0 %v3145_v2  ;;  %v3219_v4 = vld [vmem:[%s5345_s3 + $0x8] sm:$0xff]  ;;  %v3231_v6 = vld [vmem:[%s5345_s3 + $0x20] sm:$0xff]  ;;  %v3238_v7 = vld [vmem:[%s5345_s3 + $0x38] sm:$0xff]  ;;  %vm751_vm0 = vcmask 1046528   ;;  %v5349_v2 = vmov 0.0   ;;  %s3148_s30 = smov 4  }
   0xf   : > { %570 = vperm.xlu1 %3134, %v3202_v0   ;;  %560 = vperm.xlu0 %3133, %v3207_v1   ;;  %v3226_v5 = vld [vmem:[%s5345_s3 + $0x28] sm:$0xff]  ;;  %v3243_v8 = vld [vmem:[%s5345_s3 + $0x30] sm:$0xff]  ;;  %v3255_v10 = vld [vmem:[%s5345_s3 + $0x40] sm:$0xff]  ;;  %s5839_s22 = smov (!%p249_p3, %s2956_s22), 1  ;;  %s3149_s7 = smov 8   ;;  %vm467_vm1 = vcmask 1040384  }
  0x10   : > { %v3250_v9 = vld [vmem:[%s5345_s3 + $0x48] sm:$0xff]  ;;  %v3262_v11 = vld [vmem:[%s5345_s3 + $0x58] sm:$0xff]  ;;  %v3267_v12 = vld [vmem:[%s5345_s3 + $0x50] sm:$0xff]  ;;  %s3003_s27 = sshll.u32 %s5839_s22, 8  ;;  %s3150_s8 = smov 12   ;;  %vm2436_vm2 = vcmask 1043456  }
  0x11   : > { %v3274_v13 = vld [vmem:[%s5345_s3 + $0x68] sm:$0xff]  ;;  %v3279_v14 = vld [vmem:[%s5345_s3 + $0x60] sm:$0xff]  ;;  %v3286_v15 = vld [vmem:[%s5345_s3 + $0x78] sm:$0xff]  ;;  %s3340_s10 = scalar_lea.vmem %s5342_s0, %s3003_s27  ;;  %s3151_s9 = smov 16   ;;  %vm2070_vm3 = vcmask 31744   ;;  %vm2103_vm4 = vcmask 64512  }
  0x12   : > { %v3291_v16 = vld [vmem:[%s5345_s3 + $0x70] sm:$0xff]  ;;  %v3298_v17 = vld [vmem:[%s5345_s3 + $0x88] sm:$0xff]  ;;  %v421_v18 = vld [vmem:[%s5345_s3 + $0x80] sm:$0xff]  ;;  %s3153_s11 = smov 24   ;;  %s3154_s16 = smov 28   ;;  %vm2136_vm5 = vcmask 97280  }
  0x13   : > { %575 = vperm.xlu1 %3134, %v3214_v3   ;;  %565 = vperm.xlu0 %3133, %v3219_v4   ;;  %v424_v19 = vld [vmem:[%s5345_s3 + $0x98] sm:$0xff]  ;;  %v423_v20 = vld [vmem:[%s5345_s3 + $0x90] sm:$0xff]  ;;  %v426_v21 = vld [vmem:[%s5345_s3 + $0xa8] sm:$0xff]  ;;  %s3155_s23 = smov 32   ;;  %vm2169_vm6 = vcmask 130048   ;;  %vm2202_vm7 = vcmask 162816   ;;  %s5104_s29 = scalar_lea.vmem %s5347_s5, %s3003_s27 }
  0x14   : > { %v425_v22 = vld [vmem:[%s5345_s3 + $0xa0] sm:$0xff]  ;;  %v428_v23 = vld [vmem:[%s5345_s3 + $0xb8] sm:$0xff]  ;;  %v427_v24 = vld [vmem:[%s5345_s3 + $0xb0] sm:$0xff]  ;;  %vm2235_vm8 = vcmask 195584   ;;  %vm2268_vm9 = vcmask 228352   ;;  %vm2301_vm10 = vcmask 261120  }
  0x15   : > { %v430_v25 = vld [vmem:[%s5345_s3 + $0xc8] sm:$0xff]  ;;  %v429_v26 = vld [vmem:[%s5345_s3 + $0xc0] sm:$0xff]  ;;  %v293_v28 = vld [vmem:[%s3340_s10 + $0xf0] sm:$0xff]  ;;  %vm2339_vm11 = vcmask 293888   ;;  %s2965_s27 = sshll.u32 %s5839_s22, 1  ;;  %vm2868_vm12 = vcmask 25600  }
  0x16   : > { %v3345_v27 = vld [vmem:[%s5343_s1] ss:$0 sm:$0xff]  ;;  %v294_v29 = vld [vmem:[%s3340_s10 + $0xf8] sm:$0xff]  ;;  %v431_v33 = vld [vmem:[%s5345_s3 + $0xd0] sm:$0xff] }
  0x17   : > { %585 = vperm.xlu1 %3134, %v3226_v5   ;;  %580 = vperm.xlu0 %3133, %v3231_v6   ;;  %v332_v30 = vmul.f32 %v3345_v27, %v293_v28  ;;  %v333_v31 = vmul.f32 %v3345_v27, %v294_v29  ;;  %v432_v32 = vld [vmem:[%s5345_s3 + $0xd8] sm:$0xff]  ;;  %v3360_v34 = vld [vmem:[%s5344_s2] ss:$0 sm:$0xff]  ;;  %v434_v37 = vld [vmem:[%s5345_s3 + $0xe8] sm:$0xff] }
  0x18   : > { %v433_v38 = vld [vmem:[%s5345_s3 + $0xe0] sm:$0xff]  ;;  %v436_v39 = vld [vmem:[%s5345_s3 + $0xf8] sm:$0xff]  ;;  %v435_v40 = vld [vmem:[%s5345_s3 + $0xf0] sm:$0xff] }
  0x19   : > { %v371_v35 = vadd.f32 %v3360_v34, %v332_v30  ;;  %v372_v36 = vadd.f32 %v3360_v34, %v333_v31  ;;  %v263_v42 = vld [vmem:[%s3340_s10] sm:$0xff]  ;;  %v264_v48 = vld [vmem:[%s3340_s10 + $0x8] sm:$0xff]  ;;  %v265_v49 = vld [vmem:[%s3340_s10 + $0x10] sm:$0xff] }
  0x1a   : > { %v302_v45 = vmul.f32 %v3345_v27, %v263_v42  ;;  %v266_v52 = vld [vmem:[%s3340_s10 + $0x18] sm:$0xff]  ;;  %v303_v53 = vmul.f32 %v3345_v27, %v264_v48  ;;  %v304_v54 = vmul.f32 %v3345_v27, %v265_v49  ;;  %v267_v56 = vld [vmem:[%s3340_s10 + $0x20] sm:$0xff]  ;;  %v276_v42 = vld [vmem:[%s3340_s10 + $0x68] sm:$0xff] }
  0x1b   : > { %595 = vperm.xlu1 %3134, %v3238_v7   ;;  %590 = vperm.xlu0 %3133, %v3243_v8   ;;  %v3394_v43 = vmax.f32 %v371_v35, 0.0  ;;  %v3396_v44 = vmax.f32 %v372_v36, 0.0  ;;  %v305_v57 = vmul.f32 %v3345_v27, %v266_v52  ;;  %v306_v59 = vmul.f32 %v3345_v27, %v267_v56  ;;  %v274_v31 = vld [vmem:[%s3340_s10 + $0x58] sm:$0xff] }
  0x1c   : > { %v341_v55 = vadd.f32 %v3360_v34, %v302_v45  ;;  %v342_v60 = vadd.f32 %v3360_v34, %v303_v53  ;;  %v343_v61 = vadd.f32 %v3360_v34, %v304_v54  ;;  %v313_v36 = vmul.f32 %v3345_v27, %v274_v31 }
  0x1d   : > { %5531 = vst [vmem:[#allocation2_spill] sm:$0xff] %v3394_v43  ;;  %5532 = vst [vmem:[#allocation3_spill] sm:$0xff] %v3396_v44  ;;  %v5350_v46 = vrot.slane %v3394_v43, 1  ;;  %v1044_v47 = vrot.slane %v3396_v44, 1  ;;  %v315_v48 = vmul.f32 %v3345_v27, %v276_v42 }
  0x1e   : > { %v3422_v62 = vmax.f32 %v341_v55, 0.0  ;;  %v352_v53 = vadd.f32 %v3360_v34, %v313_v36 }
  0x1f   : > { %605 = vperm.xlu1 %3134, %v3250_v9   ;;  %600 = vperm.xlu0 %3133, %v3255_v10   ;;  %v3406_v50 = vsel %vm751_vm0, %v5350_v46, %v1044_v47  ;;  %v3409_v51 = vsel %vm751_vm0, %v1044_v47, 0.0  ;;  %v277_v47 = vld [vmem:[%s3340_s10 + $0x70] sm:$0xff] }
  0x20   : > { %5533 = vst [vmem:[#allocation4_spill] sm:$0xff] %v3406_v50  ;;  %5534 = vst [vmem:[#allocation5_spill] sm:$0xff] %v3409_v51  ;;  %v316_v49 = vmul.f32 %v3345_v27, %v277_v47  ;;  %v291_v51 = vld [vmem:[%s3340_s10 + $0xe0] sm:$0xff] }
  0x21   : > { %v330_v44 = vmul.f32 %v3345_v27, %v291_v51 }
  0x23   : > { %615 = vperm.xlu1 %3134, %v3262_v11   ;;  %610 = vperm.xlu0 %3133, %v3267_v12  }
  0x27   : > { %625 = vperm.xlu1 %3134, %v3274_v13   ;;  %620 = vperm.xlu0 %3133, %v3279_v14  }
  0x2b   : > { %635 = vperm.xlu1 %3134, %v3286_v15   ;;  %630 = vperm.xlu0 %3133, %v3291_v16  }
  0x2f   : > { %645 = vperm.xlu1 %3134, %v3298_v17   ;;  %640 = vperm.xlu0 %3133, %v421_v18  }
  0x33   : > { %655 = vperm.xlu1 %3134, %v424_v19   ;;  %650 = vperm.xlu0 %3133, %v423_v20  }
  0x37   : > { %665 = vperm.xlu1 %3134, %v426_v21   ;;  %660 = vperm.xlu0 %3133, %v425_v22  }
  0x3b   : > { %675 = vperm.xlu1 %3134, %v428_v23   ;;  %670 = vperm.xlu0 %3133, %v427_v24  }
  0x3f   : > { %685 = vperm.xlu1 %3134, %v430_v25   ;;  %680 = vperm.xlu0 %3133, %v429_v26  }
  0x43   : > { %695 = vperm.xlu1 %3134, %v432_v32   ;;  %690 = vperm.xlu0 %3133, %v431_v33  }
  0x47   : > { %705 = vperm.xlu1 %3134, %v434_v37   ;;  %700 = vperm.xlu0 %3133, %v433_v38  }
  0x4b   : > { %715 = vperm.xlu1 %3134, %v436_v39   ;;  %710 = vperm.xlu0 %3133, %v435_v40  }
  0x4f   : > { %3136 = vset.pattern.permute.xlu1 %v3146_v41  ;;  %3135 = vset.pattern.permute.xlu0 %v3146_v41 }
  0x50   : > { %850 = vperm.xlu1 %3136, %v3219_v4   ;;  %846 = vperm.xlu0 %3135, %v3207_v1   ;;  %v269_v1 = vld [vmem:[%s3340_s10 + $0x30] sm:$0xff] }
  0x51   : > { %v308_v4 = vmul.f32 %v3345_v27, %v269_v1  ;;  %v3524_v1 = vmax.f32 %v352_v53, 0.0  ;;  %v285_v53 = vld [vmem:[%s3340_s10 + $0xb0] sm:$0xff] }
  0x53   : > { %5541 = vst [vmem:[#allocation12_spill] sm:$0xff] %v3524_v1 }
  0x54   : > { %854 = vperm.xlu1 %3136, %v3202_v0   ;;  %858 = vperm.xlu0 %3135, %v3214_v3   ;;  %v268_v0 = vld [vmem:[%s3340_s10 + $0x28] sm:$0xff] }
  0x55   : > { %v307_v3 = vmul.f32 %v3345_v27, %v268_v0 }
  0x58   : > { %862 = vperm.xlu1 %3136, %v3231_v6   ;;  %866 = vperm.xlu0 %3135, %v3226_v5   ;;  %v344_v5 = vadd.f32 %v3360_v34, %v305_v57  ;;  %v345_v6 = vadd.f32 %v3360_v34, %v306_v59  ;;  %v278_v59 = vld [vmem:[%s3340_s10 + $0x78] sm:$0xff] }
  0x59   : > { %v317_v0 = vmul.f32 %v3345_v27, %v278_v59 }
  0x5c   : > { %870 = vperm.xlu1 %3136, %v3243_v8   ;;  %874 = vperm.xlu0 %3135, %v3238_v7   ;;  %v3436_v7 = vmax.f32 %v342_v60, 0.0  ;;  %v3438_v8 = vmax.f32 %v343_v61, 0.0  ;;  %v279_v60 = vld [vmem:[%s3340_s10 + $0x80] sm:$0xff]  ;;  %v354_v61 = vadd.f32 %v3360_v34, %v315_v48  ;;  %v284_v48 = vld [vmem:[%s3340_s10 + $0xa8] sm:$0xff] }
  0x5d   : > { %v323_v59 = vmul.f32 %v3345_v27, %v284_v48  ;;  %v288_v48 = vld [vmem:[%s3340_s10 + $0xc8] sm:$0xff] }
  0x60   : > { %878 = vperm.xlu1 %3136, %v3255_v10   ;;  %882 = vperm.xlu0 %3135, %v3250_v9  }
  0x64   : > { %886 = vperm.xlu1 %3136, %v3267_v12   ;;  %890 = vperm.xlu0 %3135, %v3262_v11   ;;  %v270_v11 = vld [vmem:[%s3340_s10 + $0x38] sm:$0xff]  ;;  %v271_v12 = vld [vmem:[%s3340_s10 + $0x40] sm:$0xff] }
  0x68   : > { %894 = vperm.xlu1 %3136, %v3279_v14   ;;  %898 = vperm.xlu0 %3135, %v3274_v13   ;;  %v346_v13 = vadd.f32 %v3360_v34, %v307_v3  ;;  %v309_v14 = vmul.f32 %v3345_v27, %v270_v11  ;;  %v318_v11 = vmul.f32 %v3345_v27, %v279_v60 }
  0x6c   : > { %902 = vperm.xlu1 %3136, %v3291_v16   ;;  %906 = vperm.xlu0 %3135, %v3286_v15   ;;  %v3452_v15 = vmax.f32 %v344_v5, 0.0  ;;  %v3454_v16 = vmax.f32 %v345_v6, 0.0  ;;  %v355_v5 = vadd.f32 %v3360_v34, %v316_v49 }
  0x70   : > { %910 = vperm.xlu1 %3136, %v421_v18   ;;  %914 = vperm.xlu0 %3135, %v3298_v17   ;;  %v347_v18 = vadd.f32 %v3360_v34, %v308_v4 }
  0x74   : > { %918 = vperm.xlu1 %3136, %v423_v20   ;;  %922 = vperm.xlu0 %3135, %v424_v19   ;;  %v310_v20 = vmul.f32 %v3345_v27, %v271_v12  ;;  %v280_v12 = vld [vmem:[%s3340_s10 + $0x88] sm:$0xff] }
  0x76   : > { %v349_v29 = vadd.f32 %v3360_v34, %v310_v20  ;;  %v3543_v20 = vmax.f32 %v355_v5, 0.0 }
  0x78   : > { %926 = vperm.xlu1 %3136, %v425_v22   ;;  %930 = vperm.xlu0 %3135, %v426_v21   ;;  %v272_v21 = vld [vmem:[%s3340_s10 + $0x48] sm:$0xff]  ;;  %v273_v22 = vld [vmem:[%s3340_s10 + $0x50] sm:$0xff] }
  0x79   : > { %v311_v28 = vmul.f32 %v3345_v27, %v272_v21 }
  0x7c   : > { %934 = vperm.xlu1 %3136, %v427_v24   ;;  %938 = vperm.xlu0 %3135, %v428_v23   ;;  %v3468_v23 = vmax.f32 %v346_v13, 0.0  ;;  %v348_v24 = vadd.f32 %v3360_v34, %v309_v14  ;;  %v281_v13 = vld [vmem:[%s3340_s10 + $0x90] sm:$0xff]  ;;  %v3540_v14 = vmax.f32 %v354_v61, 0.0 }
  0x7d   : > { %v320_v31 = vmul.f32 %v3345_v27, %v281_v13  ;;  %v324_v13 = vmul.f32 %v3345_v27, %v285_v53 }
  0x7e   : > { %v3486_v35 = vmax.f32 %v348_v24, 0.0  ;;  %v357_v24 = vadd.f32 %v3360_v34, %v318_v11 }
  0x80   : > { %942 = vperm.xlu1 %3136, %v429_v26   ;;  %946 = vperm.xlu0 %3135, %v430_v25   ;;  %v3471_v25 = vmax.f32 %v347_v18, 0.0  ;;  %v356_v18 = vadd.f32 %v3360_v34, %v317_v0 }
  0x84   : > { %950 = vperm.xlu1 %3136, %v431_v33   ;;  %954 = vperm.xlu0 %3135, %v432_v32   ;;  %v312_v32 = vmul.f32 %v3345_v27, %v273_v22  ;;  %v275_v33 = vld [vmem:[%s3340_s10 + $0x60] sm:$0xff]  ;;  %v319_v22 = vmul.f32 %v3345_v27, %v280_v12  ;;  %v286_v12 = vld [vmem:[%s3340_s10 + $0xb8] sm:$0xff] }
  0x85   : > { %v314_v45 = vmul.f32 %v3345_v27, %v275_v33  ;;  %v3558_v33 = vmax.f32 %v356_v18, 0.0  ;;  %v287_v18 = vld [vmem:[%s3340_s10 + $0xc0] sm:$0xff] }
  0x87   : > { %v353_v56 = vadd.f32 %v3360_v34, %v314_v45  ;;  %v359_v45 = vadd.f32 %v3360_v34, %v320_v31 }
  0x88   : > { %958 = vperm.xlu1 %3136, %v433_v38   ;;  %962 = vperm.xlu0 %3135, %v434_v37   ;;  %v350_v37 = vadd.f32 %v3360_v34, %v311_v28  ;;  %v3490_v38 = vmax.f32 %v349_v29, 0.0  ;;  %v282_v29 = vld [vmem:[%s3340_s10 + $0x98] sm:$0xff] }
  0x89   : > { %v3526_v3 = vmax.f32 %v353_v56, 0.0  ;;  %v321_v36 = vmul.f32 %v3345_v27, %v282_v29  ;;  %v3580_v61 = vmax.f32 %v359_v45, 0.0  ;;  %v326_v45 = vmul.f32 %v3345_v27, %v287_v18 }
  0x8a   : > { %v3506_v52 = vmax.f32 %v350_v37, 0.0  ;;  %v358_v37 = vadd.f32 %v3360_v34, %v319_v22  ;;  %v362_v22 = vadd.f32 %v3360_v34, %v323_v59 }
  0x8b   : > { %v360_v56 = vadd.f32 %v3360_v34, %v321_v36  ;;  %5547 = vst [vmem:[#allocation18_spill] sm:$0xff] %v3580_v61  ;;  %v363_v36 = vadd.f32 %v3360_v34, %v324_v13  ;;  %v365_v13 = vadd.f32 %v3360_v34, %v326_v45 }
  0x8c   : > { %966 = vperm.xlu1 %3136, %v435_v40   ;;  %970 = vperm.xlu0 %3135, %v436_v39   ;;  %v351_v40 = vadd.f32 %v3360_v34, %v312_v32  ;;  %5539 = vst [vmem:[#allocation10_spill] sm:$0xff] %v3506_v52  ;;  %v283_v32 = vld [vmem:[%s3340_s10 + $0xa0] sm:$0xff]  ;;  %v3578_v60 = vmax.f32 %v358_v37, 0.0  ;;  %v3612_v53 = vmax.f32 %v362_v22, 0.0 }
  0x8d   : > { %v322_v49 = vmul.f32 %v3345_v27, %v283_v32  ;;  %v3596_v29 = vmax.f32 %v360_v56, 0.0  ;;  %v3615_v59 = vmax.f32 %v363_v36, 0.0 }
  0x8e   : > { %v3417_v58 = vpop.permute.xlu1 %570  ;;  %v3424_v63 = vpop.permute.xlu0 %560  ;;  %v3509_v54 = vmax.f32 %v351_v40, 0.0  ;;  %v3562_v40 = vmax.f32 %v357_v24, 0.0  ;;  %v325_v24 = vmul.f32 %v3345_v27, %v286_v12  ;;  %5553 = vst [vmem:[#allocation24_spill] sm:$0xff] %v3612_v53  ;;  %v327_v12 = vmul.f32 %v3345_v27, %v288_v48 }
  0x8f   : > { %5535 = vst [vmem:[#allocation6_spill] sm:$0xff] %v3417_v58  ;;  %5536 = vst [vmem:[#allocation7_spill] sm:$0xff] %v3424_v63  ;;  %v361_v5 = vadd.f32 %v3360_v34, %v322_v49  ;;  %v289_v49 = vld [vmem:[%s3340_s10 + $0xd0] sm:$0xff]  ;;  %v3634_v48 = vmax.f32 %v365_v13, 0.0 }
  0x90   : > { %1148 = vrot.lane.b32.xlu1 %v5349_v2, %s3148_s30  ;;  %1150 = vrot.lane.b32.xlu0 %v3422_v62, %s3148_s30  ;;  %5540 = vst [vmem:[#allocation11_spill] sm:$0xff] %v3509_v54  ;;  %v364_v56 = vadd.f32 %v3360_v34, %v325_v24  ;;  %5554 = vst [vmem:[#allocation25_spill] sm:$0xff] %v3615_v59  ;;  %v290_v2 = vld [vmem:[%s3340_s10 + $0xd8] sm:$0xff]  ;;  %v328_v46 = vmul.f32 %v3345_v27, %v289_v49 }
  0x91   : > { %v3598_v31 = vmax.f32 %v361_v5, 0.0  ;;  %v329_v24 = vmul.f32 %v3345_v27, %v290_v2  ;;  %v366_v36 = vadd.f32 %v3360_v34, %v327_v12  ;;  %5558 = vst [vmem:[#allocation29_spill] sm:$0xff] %v3634_v48 }
  0x92   : > { %v3440_v9 = vpop.permute.xlu1 %575  ;;  %v3442_v10 = vpop.permute.xlu0 %565  ;;  %v3630_v22 = vmax.f32 %v364_v56, 0.0  ;;  %v367_v50 = vadd.f32 %v3360_v34, %v328_v46 }
  0x93   : > { %5537 = vst [vmem:[#allocation8_spill] sm:$0xff] %v3440_v9  ;;  %5538 = vst [vmem:[#allocation9_spill] sm:$0xff] %v3442_v10  ;;  %v368_v2 = vadd.f32 %v3360_v34, %v329_v24  ;;  %v3648_v56 = vmax.f32 %v366_v36, 0.0 }
  0x94   : > { %1152 = vrot.lane.b32.xlu1 %v3436_v7, %s3148_s30  ;;  %1154 = vrot.lane.b32.xlu0 %v3438_v8, %s3148_s30  ;;  %5550 = vst [vmem:[#allocation21_spill] sm:$0xff] %v3598_v31  ;;  %5557 = vst [vmem:[#allocation28_spill] sm:$0xff] %v3630_v22  ;;  %v3650_v12 = vmax.f32 %v367_v50, 0.0 }
  0x95   : > { %5561 = vst [vmem:[#allocation32_spill] sm:$0xff] %v3648_v56 }
  0x96   : > { %v3456_v17 = vpop.permute.xlu1 %585  ;;  %v3459_v19 = vpop.permute.xlu0 %580  ;;  %5562 = vst [vmem:[#allocation33_spill] sm:$0xff] %v3650_v12 }
  0x98   : > { %1156 = vrot.lane.b32.xlu1 %v3452_v15, %s3148_s30  ;;  %1158 = vrot.lane.b32.xlu0 %v3454_v16, %s3148_s30 }
  0x9a   : > { %v3473_v26 = vpop.permute.xlu1 %595  ;;  %v3477_v30 = vpop.permute.xlu0 %590 }
  0x9c   : > { %1160 = vrot.lane.b32.xlu1 %v3468_v23, %s3148_s30  ;;  %1162 = vrot.lane.b32.xlu0 %v3471_v25, %s3148_s30 }
  0x9e   : > { %v3492_v39 = vpop.permute.xlu1 %605  ;;  %v3495_v41 = vpop.permute.xlu0 %600 }
  0xa0   : > { %1164 = vrot.lane.b32.xlu1 %v3486_v35, %s3148_s30  ;;  %1166 = vrot.lane.b32.xlu0 %v3490_v38, %s3148_s30 }
  0xa2   : > { %v3511_v55 = vpop.permute.xlu1 %615  ;;  %v3514_v57 = vpop.permute.xlu0 %610 }
  0xa4   : > { %1168 = vrot.lane.b32.xlu1 %v3506_v52, %s3148_s30  ;;  %1170 = vrot.lane.b32.xlu0 %v3509_v54, %s3148_s30 }
  0xa6   : > { %v3528_v4 = vpop.permute.xlu1 %625  ;;  %v3531_v6 = vpop.permute.xlu0 %620 }
  0xa7   : > { %5542 = vst [vmem:[#allocation13_spill] sm:$0xff] %v3528_v4 }
  0xa8   : > { %1172 = vrot.lane.b32.xlu1 %v3524_v1, %s3148_s30  ;;  %1174 = vrot.lane.b32.xlu0 %v3526_v3, %s3148_s30 }
  0xaa   : > { %v3545_v21 = vpop.permute.xlu1 %635  ;;  %v3549_v28 = vpop.permute.xlu0 %630 }
  0xab   : > { %5543 = vst [vmem:[#allocation14_spill] sm:$0xff] %v3545_v21  ;;  %5544 = vst [vmem:[#allocation15_spill] sm:$0xff] %v3549_v28 }
  0xac   : > { %1176 = vrot.lane.b32.xlu1 %v3540_v14, %s3148_s30  ;;  %1178 = vrot.lane.b32.xlu0 %v3543_v20, %s3148_s30 }
  0xae   : > { %v3564_v42 = vpop.permute.xlu1 %645  ;;  %v3567_v47 = vpop.permute.xlu0 %640 }
  0xaf   : > { %5545 = vst [vmem:[#allocation16_spill] sm:$0xff] %v3564_v42  ;;  %5546 = vst [vmem:[#allocation17_spill] sm:$0xff] %v3567_v47  ;;  %v763_v47 = vrot.slane %v3471_v25, 1 }
  0xb0   : > { %1180 = vrot.lane.b32.xlu1 %v3558_v33, %s3148_s30  ;;  %1182 = vrot.lane.b32.xlu0 %v3562_v40, %s3148_s30 }
  0xb2   : > { %v3582_v0 = vpop.permute.xlu1 %655  ;;  %v3585_v11 = vpop.permute.xlu0 %650 }
  0xb3   : > { %5548 = vst [vmem:[#allocation19_spill] sm:$0xff] %v3582_v0  ;;  %5549 = vst [vmem:[#allocation20_spill] sm:$0xff] %v3585_v11 }
  0xb4   : > { %1184 = vrot.lane.b32.xlu1 %v3578_v60, %s3148_s30  ;;  %1186 = vrot.lane.b32.xlu0 %v3580_v61, %s3148_s30 }
  0xb6   : > { %v3600_v32 = vpop.permute.xlu1 %665  ;;  %v3603_v37 = vpop.permute.xlu0 %660 }
  0xb7   : > { %5551 = vst [vmem:[#allocation22_spill] sm:$0xff] %v3600_v32  ;;  %5552 = vst [vmem:[#allocation23_spill] sm:$0xff] %v3603_v37 }
  0xb8   : > { %1188 = vrot.lane.b32.xlu1 %v3596_v29, %s3148_s30  ;;  %1190 = vrot.lane.b32.xlu0 %v3598_v31, %s3148_s30 }
  0xba   : > { %v3617_v5 = vpop.permute.xlu1 %675  ;;  %v3621_v18 = vpop.permute.xlu0 %670 }
  0xbb   : > { %5555 = vst [vmem:[#allocation26_spill] sm:$0xff] %v3617_v5  ;;  %5556 = vst [vmem:[#allocation27_spill] sm:$0xff] %v3621_v18  ;;  %v292_v5 = vld [vmem:[%s3340_s10 + $0xe8] sm:$0xff]  ;;  %v759_v18 = vrot.slane %v3454_v16, 1  ;;  %s3152_s10 = smov 20  }
  0xbc   : > { %1192 = vrot.lane.b32.xlu1 %v3612_v53, %s3148_s30  ;;  %1194 = vrot.lane.b32.xlu0 %v3615_v59, %s3148_s30  ;;  %v331_v46 = vmul.f32 %v3345_v27, %v292_v5 }
  0xbe   : > { %v3636_v45 = vpop.permute.xlu1 %685  ;;  %v3639_v49 = vpop.permute.xlu0 %680  ;;  %v370_v24 = vadd.f32 %v3360_v34, %v331_v46  ;;  %v753_v46 = vrot.slane %v3436_v7, 1 }
  0xbf   : > { %5559 = vst [vmem:[#allocation30_spill] sm:$0xff] %v3636_v45  ;;  %5560 = vst [vmem:[#allocation31_spill] sm:$0xff] %v3639_v49  ;;  %v369_v45 = vadd.f32 %v3360_v34, %v330_v44  ;;  %v3662_v49 = vmax.f32 %v368_v2, 0.0  ;;  %v752_v34 = vrot.slane %v3422_v62, 1 }
  0xc0   : > { %1196 = vrot.lane.b32.xlu1 %v3630_v22, %s3148_s30  ;;  %1198 = vrot.lane.b32.xlu0 %v3634_v48, %s3148_s30  ;;  %v3675_v27 = vmax.f32 %v370_v24, 0.0 }
  0xc1   : > { %5565 = vst [vmem:[#allocation36_spill] sm:$0xff] %v3662_v49  ;;  %v3665_v50 = vmax.f32 %v369_v45, 0.0  ;;  %v844_v45 = vsel %vm751_vm0, 0.0, %v752_v34 }
  0xc2   : > { %v3652_v13 = vpop.permute.xlu1 %695  ;;  %v3656_v51 = vpop.permute.xlu0 %690  ;;  %5569 = vst [vmem:[#allocation40_spill] sm:$0xff] %v3675_v27 }
  0xc3   : > { %5563 = vst [vmem:[#allocation34_spill] sm:$0xff] %v3652_v13  ;;  %5564 = vst [vmem:[#allocation35_spill] sm:$0xff] %v3656_v51  ;;  %v757_v51 = vrot.slane %v3452_v15, 1 }
  0xc4   : > { %1200 = vrot.lane.b32.xlu1 %v3648_v56, %s3148_s30  ;;  %1202 = vrot.lane.b32.xlu0 %v3650_v12, %s3148_s30  ;;  %5566 = vst [vmem:[#allocation37_spill] sm:$0xff] %v3665_v50 }
  0xc5   : > { %v3712_v11 = vsel %vm751_vm0, %v757_v51, %v759_v18 }
  0xc6   : > { %v3667_v36 = vpop.permute.xlu1 %705  ;;  %v3669_v13 = vpop.permute.xlu0 %700 }
  0xc7   : > { %5567 = vst [vmem:[#allocation38_spill] sm:$0xff] %v3667_v36  ;;  %5568 = vst [vmem:[#allocation39_spill] sm:$0xff] %v3669_v13  ;;  %v755_v36 = vrot.slane %v3438_v8, 1 }
  0xc8   : > { %1204 = vrot.lane.b32.xlu1 %v3662_v49, %s3148_s30  ;;  %1206 = vrot.lane.b32.xlu0 %v3665_v50, %s3148_s30 }
  0xc9   : > { %v3715_v42 = vsel %vm751_vm0, %v755_v36, %v757_v51 }
  0xca   : > { %v3677_v44 = vpop.permute.xlu1 %715  ;;  %v3679_v5 = vpop.permute.xlu0 %710 }
  0xcb   : > { %5570 = vst [vmem:[#allocation41_spill] sm:$0xff] %v3677_v44  ;;  %5571 = vst [vmem:[#allocation42_spill] sm:$0xff] %v3679_v5  ;;  %v3695_v5 = vsel %vm751_vm0, %v753_v46, %v755_v36 }
  0xcc   : > { %1208 = vrot.lane.b32.xlu1 %v3675_v27, %s3148_s30 }
  0xcf   : > { %v3685_v2 = vpop.permute.xlu1 %850  ;;  %v3689_v13 = vpop.permute.xlu0 %846 }
  0xd0   : > { %v973_v24 = vmul.f32 0.0, %v3689_v13  ;;  %v974_v44 = vmul.f32 %v3685_v2, %v844_v45  ;;  %v3707_v45 = vsel %vm751_vm0, %v752_v34, %v753_v46 }
  0xd2   : > { %1273 = vrot.lane.b32.xlu0 %v973_v24, %s3149_s7  ;;  %1275 = vrot.lane.b32.xlu1 %v974_v44, %s3149_s7  ;;  %v761_v44 = vrot.slane %v3468_v23, 1 }
  0xd3   : > { %v3700_v32 = vpop.permute.xlu1 %854  ;;  %v3702_v37 = vpop.permute.xlu0 %858 }
  0xd4   : > { %5572 = vst [vmem:[#allocation43_spill] sm:$0xff] %v3700_v32  ;;  %5573 = vst [vmem:[#allocation44_spill] sm:$0xff] %v3702_v37  ;;  %v976_v0 = vmul.f32 %v3702_v37, %v3695_v5  ;;  %v975_v24 = vmul.f32 %v3700_v32, %v3707_v45  ;;  %v3730_v51 = vsel %vm751_vm0, %v759_v18, %v761_v44 }
  0xd5   : > { %5576 = vst [vmem:[#allocation47_spill] sm:$0xff] %v3730_v51  ;;  %v3733_v36 = vsel %vm751_vm0, %v761_v44, %v763_v47 }
  0xd6   : > { %1279 = vrot.lane.b32.xlu1 %v976_v0, %s3149_s7  ;;  %1277 = vrot.lane.b32.xlu0 %v975_v24, %s3149_s7  ;;  %5577 = vst [vmem:[#allocation48_spill] sm:$0xff] %v3733_v36  ;;  %v765_v0 = vrot.slane %v3486_v35, 1  ;;  %v767_v24 = vrot.slane %v3490_v38, 1 }
  0xd7   : > { %v3721_v21 = vpop.permute.xlu1 %862  ;;  %v3723_v34 = vpop.permute.xlu0 %866 }
  0xd8   : > { %5574 = vst [vmem:[#allocation45_spill] sm:$0xff] %v3721_v21  ;;  %5575 = vst [vmem:[#allocation46_spill] sm:$0xff] %v3723_v34  ;;  %v977_v46 = vmul.f32 %v3721_v21, %v3715_v42  ;;  %v978_v28 = vmul.f32 %v3723_v34, %v3712_v11  ;;  %v3748_v44 = vsel %vm751_vm0, %v763_v47, %v765_v0 }
  0xd9   : > { %5580 = vst [vmem:[#allocation51_spill] sm:$0xff] %v3748_v44  ;;  %v3751_v37 = vsel %vm751_vm0, %v765_v0, %v767_v24 }
  0xda   : > { %1283 = vrot.lane.b32.xlu1 %v978_v28, %s3149_s7  ;;  %1281 = vrot.lane.b32.xlu0 %v977_v46, %s3149_s7  ;;  %5581 = vst [vmem:[#allocation52_spill] sm:$0xff] %v3751_v37  ;;  %v769_v28 = vrot.slane %v3506_v52, 1  ;;  %v771_v46 = vrot.slane %v3509_v54, 1 }
  0xdb   : > { %v3739_v4 = vpop.permute.xlu1 %870  ;;  %v3741_v21 = vpop.permute.xlu0 %874 }
  0xdc   : > { %5578 = vst [vmem:[#allocation49_spill] sm:$0xff] %v3739_v4  ;;  %5579 = vst [vmem:[#allocation50_spill] sm:$0xff] %v3741_v21  ;;  %v979_v34 = vmul.f32 %v3739_v4, %v3730_v51  ;;  %v980_v18 = vmul.f32 %v3741_v21, %v3733_v36  ;;  %v3766_v0 = vsel %vm751_vm0, %v767_v24, %v769_v28 }
  0xdd   : > { %5584 = vst [vmem:[#allocation55_spill] sm:$0xff] %v3766_v0  ;;  %v3769_v36 = vsel %vm751_vm0, %v769_v28, %v771_v46 }
  0xde   : > { %1287 = vrot.lane.b32.xlu1 %v980_v18, %s3149_s7  ;;  %1285 = vrot.lane.b32.xlu0 %v979_v34, %s3149_s7  ;;  %5585 = vst [vmem:[#allocation56_spill] sm:$0xff] %v3769_v36  ;;  %v773_v18 = vrot.slane %v3524_v1, 1  ;;  %v775_v34 = vrot.slane %v3526_v3, 1 }
  0xdf   : > { %v3757_v32 = vpop.permute.xlu1 %878  ;;  %v3759_v4 = vpop.permute.xlu0 %882 }
  0xe0   : > { %5582 = vst [vmem:[#allocation53_spill] sm:$0xff] %v3757_v32  ;;  %5583 = vst [vmem:[#allocation54_spill] sm:$0xff] %v3759_v4  ;;  %v981_v21 = vmul.f32 %v3757_v32, %v3748_v44  ;;  %v982_v47 = vmul.f32 %v3759_v4, %v3751_v37  ;;  %v3784_v28 = vsel %vm751_vm0, %v771_v46, %v773_v18 }
  0xe1   : > { %5588 = vst [vmem:[#allocation59_spill] sm:$0xff] %v3784_v28  ;;  %v3787_v37 = vsel %vm751_vm0, %v773_v18, %v775_v34 }
  0xe2   : > { %1291 = vrot.lane.b32.xlu1 %v982_v47, %s3149_s7  ;;  %1289 = vrot.lane.b32.xlu0 %v981_v21, %s3149_s7  ;;  %5589 = vst [vmem:[#allocation60_spill] sm:$0xff] %v3787_v37  ;;  %v777_v47 = vrot.slane %v3540_v14, 1  ;;  %v779_v21 = vrot.slane %v3543_v20, 1 }
  0xe3   : > { %v3775_v51 = vpop.permute.xlu1 %886  ;;  %v3777_v32 = vpop.permute.xlu0 %890 }
  0xe4   : > { %5586 = vst [vmem:[#allocation57_spill] sm:$0xff] %v3775_v51  ;;  %5587 = vst [vmem:[#allocation58_spill] sm:$0xff] %v3777_v32  ;;  %v983_v4 = vmul.f32 %v3775_v51, %v3766_v0  ;;  %v984_v24 = vmul.f32 %v3777_v32, %v3769_v36  ;;  %v3802_v18 = vsel %vm751_vm0, %v775_v34, %v777_v47 }
  0xe5   : > { %5592 = vst [vmem:[#allocation63_spill] sm:$0xff] %v3802_v18  ;;  %v3805_v36 = vsel %vm751_vm0, %v777_v47, %v779_v21 }
  0xe6   : > { %1295 = vrot.lane.b32.xlu1 %v984_v24, %s3149_s7  ;;  %1293 = vrot.lane.b32.xlu0 %v983_v4, %s3149_s7  ;;  %5593 = vst [vmem:[#allocation64_spill] sm:$0xff] %v3805_v36  ;;  %v781_v24 = vrot.slane %v3558_v33, 1  ;;  %v783_v4 = vrot.slane %v3562_v40, 1 }
  0xe7   : > { %v3793_v44 = vpop.permute.xlu1 %894  ;;  %v3795_v51 = vpop.permute.xlu0 %898 }
  0xe8   : > { %5590 = vst [vmem:[#allocation61_spill] sm:$0xff] %v3793_v44  ;;  %5591 = vst [vmem:[#allocation62_spill] sm:$0xff] %v3795_v51  ;;  %v985_v32 = vmul.f32 %v3793_v44, %v3784_v28  ;;  %v986_v46 = vmul.f32 %v3795_v51, %v3787_v37  ;;  %v3820_v47 = vsel %vm751_vm0, %v779_v21, %v781_v24 }
  0xe9   : > { %5596 = vst [vmem:[#allocation67_spill] sm:$0xff] %v3820_v47  ;;  %v3823_v37 = vsel %vm751_vm0, %v781_v24, %v783_v4 }
  0xea   : > { %1299 = vrot.lane.b32.xlu1 %v986_v46, %s3149_s7  ;;  %1297 = vrot.lane.b32.xlu0 %v985_v32, %s3149_s7  ;;  %5597 = vst [vmem:[#allocation68_spill] sm:$0xff] %v3823_v37  ;;  %v785_v46 = vrot.slane %v3578_v60, 1  ;;  %v787_v32 = vrot.slane %v3580_v61, 1 }
  0xeb   : > { %v3811_v0 = vpop.permute.xlu1 %902  ;;  %v3813_v44 = vpop.permute.xlu0 %906 }
  0xec   : > { %5594 = vst [vmem:[#allocation65_spill] sm:$0xff] %v3811_v0  ;;  %5595 = vst [vmem:[#allocation66_spill] sm:$0xff] %v3813_v44  ;;  %v987_v51 = vmul.f32 %v3811_v0, %v3802_v18  ;;  %v988_v34 = vmul.f32 %v3813_v44, %v3805_v36  ;;  %v3838_v24 = vsel %vm751_vm0, %v783_v4, %v785_v46 }
  0xed   : > { %5600 = vst [vmem:[#allocation71_spill] sm:$0xff] %v3838_v24  ;;  %v3841_v36 = vsel %vm751_vm0, %v785_v46, %v787_v32 }
  0xee   : > { %1303 = vrot.lane.b32.xlu1 %v988_v34, %s3149_s7  ;;  %1301 = vrot.lane.b32.xlu0 %v987_v51, %s3149_s7  ;;  %5601 = vst [vmem:[#allocation72_spill] sm:$0xff] %v3841_v36  ;;  %v789_v34 = vrot.slane %v3596_v29, 1  ;;  %v791_v51 = vrot.slane %v3598_v31, 1 }
  0xef   : > { %v3829_v28 = vpop.permute.xlu1 %910  ;;  %v3831_v0 = vpop.permute.xlu0 %914 }
  0xf0   : > { %5598 = vst [vmem:[#allocation69_spill] sm:$0xff] %v3829_v28  ;;  %5599 = vst [vmem:[#allocation70_spill] sm:$0xff] %v3831_v0  ;;  %v989_v44 = vmul.f32 %v3829_v28, %v3820_v47  ;;  %v990_v21 = vmul.f32 %v3831_v0, %v3823_v37  ;;  %v3856_v46 = vsel %vm751_vm0, %v787_v32, %v789_v34 }
  0xf1   : > { %5604 = vst [vmem:[#allocation75_spill] sm:$0xff] %v3856_v46  ;;  %v3859_v37 = vsel %vm751_vm0, %v789_v34, %v791_v51 }
  0xf2   : > { %1307 = vrot.lane.b32.xlu1 %v990_v21, %s3149_s7  ;;  %1305 = vrot.lane.b32.xlu0 %v989_v44, %s3149_s7  ;;  %5605 = vst [vmem:[#allocation76_spill] sm:$0xff] %v3859_v37  ;;  %v793_v21 = vrot.slane %v3612_v53, 1  ;;  %v795_v44 = vrot.slane %v3615_v59, 1  ;;  %v2334_v59 = vld [vmem:[%s5346_s4] sm:$0xff] }
  0xf3   : > { %v3847_v18 = vpop.permute.xlu1 %918  ;;  %v3849_v28 = vpop.permute.xlu0 %922 }
  0xf4   : > { %5602 = vst [vmem:[#allocation73_spill] sm:$0xff] %v3847_v18  ;;  %5603 = vst [vmem:[#allocation74_spill] sm:$0xff] %v3849_v28  ;;  %v991_v0 = vmul.f32 %v3847_v18, %v3838_v24  ;;  %v992_v4 = vmul.f32 %v3849_v28, %v3841_v36  ;;  %v3874_v34 = vsel %vm751_vm0, %v791_v51, %v793_v21 }
  0xf5   : > { %5608 = vst [vmem:[#allocation79_spill] sm:$0xff] %v3874_v34  ;;  %v3877_v36 = vsel %vm751_vm0, %v793_v21, %v795_v44 }
  0xf6   : > { %1311 = vrot.lane.b32.xlu1 %v992_v4, %s3149_s7  ;;  %1309 = vrot.lane.b32.xlu0 %v991_v0, %s3149_s7  ;;  %5609 = vst [vmem:[#allocation80_spill] sm:$0xff] %v3877_v36  ;;  %v797_v4 = vrot.slane %v3630_v22, 1  ;;  %v799_v0 = vrot.slane %v3634_v48, 1  ;;  %v1049_v22 = vmul.f32 %v3689_v13, %v3707_v45 }
  0xf7   : > { %v3865_v47 = vpop.permute.xlu1 %926  ;;  %v3867_v18 = vpop.permute.xlu0 %930 }
  0xf8   : > { %5606 = vst [vmem:[#allocation77_spill] sm:$0xff] %v3865_v47  ;;  %5607 = vst [vmem:[#allocation78_spill] sm:$0xff] %v3867_v18  ;;  %v993_v28 = vmul.f32 %v3865_v47, %v3856_v46  ;;  %v994_v32 = vmul.f32 %v3867_v18, %v3859_v37  ;;  %v3892_v21 = vsel %vm751_vm0, %v795_v44, %v797_v4 }
  0xf9   : > { %5612 = vst [vmem:[#allocation83_spill] sm:$0xff] %v3892_v21  ;;  %v3895_v37 = vsel %vm751_vm0, %v797_v4, %v799_v0 }
  0xfa   : > { %1315 = vrot.lane.b32.xlu1 %v994_v32, %s3149_s7  ;;  %1313 = vrot.lane.b32.xlu0 %v993_v28, %s3149_s7  ;;  %5613 = vst [vmem:[#allocation84_spill] sm:$0xff] %v3895_v37  ;;  %v801_v32 = vrot.slane %v3648_v56, 1  ;;  %v803_v28 = vrot.slane %v3650_v12, 1  ;;  %v489_v12 = vrot.slane %v3524_v1, 7  ;;  %v5511_v1 = vrot.slane %v3526_v3, 7 }
  0xfb   : > { %v3883_v24 = vpop.permute.xlu1 %934  ;;  %v3885_v47 = vpop.permute.xlu0 %938 }
  0xfc   : > { %5610 = vst [vmem:[#allocation81_spill] sm:$0xff] %v3883_v24  ;;  %5611 = vst [vmem:[#allocation82_spill] sm:$0xff] %v3885_v47  ;;  %v995_v18 = vmul.f32 %v3883_v24, %v3874_v34  ;;  %v996_v51 = vmul.f32 %v3885_v47, %v3877_v36  ;;  %v3910_v4 = vsel %vm751_vm0, %v799_v0, %v801_v32 }
  0xfd   : > { %5616 = vst [vmem:[#allocation87_spill] sm:$0xff] %v3910_v4  ;;  %v3913_v36 = vsel %vm751_vm0, %v801_v32, %v803_v28 }
  0xfe   : > { %1319 = vrot.lane.b32.xlu1 %v996_v51, %s3149_s7  ;;  %1317 = vrot.lane.b32.xlu0 %v995_v18, %s3149_s7  ;;  %5617 = vst [vmem:[#allocation88_spill] sm:$0xff] %v3913_v36  ;;  %v805_v51 = vrot.slane %v3662_v49, 1  ;;  %v807_v18 = vrot.slane %v3665_v50, 1  ;;  %v487_v49 = vrot.slane %v3509_v54, 7 }
  0xff   : > { %v3901_v46 = vpop.permute.xlu1 %942  ;;  %v3903_v24 = vpop.permute.xlu0 %946 }
 0x100   : > { %5614 = vst [vmem:[#allocation85_spill] sm:$0xff] %v3901_v46  ;;  %5615 = vst [vmem:[#allocation86_spill] sm:$0xff] %v3903_v24  ;;  %v997_v47 = vmul.f32 %v3901_v46, %v3892_v21  ;;  %v998_v44 = vmul.f32 %v3903_v24, %v3895_v37  ;;  %v3928_v32 = vsel %vm751_vm0, %v803_v28, %v805_v51 }
 0x101   : > { %5620 = vst [vmem:[#allocation91_spill] sm:$0xff] %v3928_v32  ;;  %v3931_v37 = vsel %vm751_vm0, %v805_v51, %v807_v18 }
 0x102   : > { %1323 = vrot.lane.b32.xlu1 %v998_v44, %s3149_s7  ;;  %1321 = vrot.lane.b32.xlu0 %v997_v47, %s3149_s7  ;;  %5621 = vst [vmem:[#allocation92_spill] sm:$0xff] %v3931_v37  ;;  %v809_v44 = vrot.slane %v3675_v27, 1 }
 0x103   : > { %v3919_v34 = vpop.permute.xlu1 %950  ;;  %v3921_v46 = vpop.permute.xlu0 %954 }
 0x104   : > { %5618 = vst [vmem:[#allocation89_spill] sm:$0xff] %v3919_v34  ;;  %5619 = vst [vmem:[#allocation90_spill] sm:$0xff] %v3921_v46  ;;  %v999_v24 = vmul.f32 %v3919_v34, %v3910_v4  ;;  %v1000_v0 = vmul.f32 %v3921_v46, %v3913_v36  ;;  %v468_v46 = vrot.slane %v3422_v62, 7  ;;  %v3946_v51 = vsel %vm751_vm0, %v807_v18, %v809_v44 }
 0x105   : > { %5624 = vst [vmem:[#allocation95_spill] sm:$0xff] %v3946_v51  ;;  %v477_v4 = vrot.slane %v3468_v23, 7 }
 0x106   : > { %1327 = vrot.lane.b32.xlu1 %v1000_v0, %s3149_s7  ;;  %1325 = vrot.lane.b32.xlu0 %v999_v24, %s3149_s7  ;;  %v5625_v0 = vrot.slane %v3394_v43, 1  ;;  %v471_v43 = vrot.slane %v3438_v8, 7 }
 0x107   : > { %v3936_v47 = vpop.permute.xlu1 %958  ;;  %v3938_v21 = vpop.permute.xlu0 %962 }
 0x108   : > { %5622 = vst [vmem:[#allocation93_spill] sm:$0xff] %v3936_v47  ;;  %5623 = vst [vmem:[#allocation94_spill] sm:$0xff] %v3938_v21  ;;  %v1001_v34 = vmul.f32 %v3936_v47, %v3928_v32  ;;  %v1002_v28 = vmul.f32 %v3938_v21, %v3931_v37  ;;  %v3951_v24 = vsel %vm751_vm0, %v809_v44, %v5625_v0  ;;  %v469_v21 = vrot.slane %v3436_v7, 7 }
 0x109   : > { %5626 = vst [vmem:[#allocation96_spill] sm:$0xff] %v3951_v24  ;;  %v3966_v44 = vsel %vm467_vm1, 0.0, %v468_v46  ;;  %v475_v32 = vrot.slane %v3454_v16, 7 }
 0x10a   : > { %1331 = vrot.lane.b32.xlu1 %v1002_v28, %s3149_s7  ;;  %1329 = vrot.lane.b32.xlu0 %v1001_v34, %s3149_s7  ;;  %5629 = vst [vmem:[#allocation99_spill] sm:$0xff] %v3966_v44  ;;  %v3969_v28 = vsel %vm467_vm1, %v468_v46, %v469_v21 }
 0x10b   : > { %v3955_v36 = vpop.permute.xlu1 %966  ;;  %v3957_v47 = vpop.permute.xlu0 %970  ;;  %5630 = vst [vmem:[#allocation100_spill] sm:$0xff] %v3969_v28 }
 0x10c   : > { %5627 = vst [vmem:[#allocation97_spill] sm:$0xff] %v3955_v36  ;;  %5628 = vst [vmem:[#allocation98_spill] sm:$0xff] %v3957_v47  ;;  %v1003_v37 = vmul.f32 %v3955_v36, %v3946_v51  ;;  %v1004_v18 = vmul.f32 %v3957_v47, %v3951_v24  ;;  %v473_v36 = vrot.slane %v3452_v15, 7  ;;  %v1012_v47 = vmul.f32 %v3424_v63, %v3966_v44 }
 0x10d   : > { %v1013_v24 = vmul.f32 %v3442_v10, %v3969_v28  ;;  %v3983_v51 = vsel %vm467_vm1, %v469_v21, %v471_v43  ;;  %v479_v28 = vrot.slane %v3471_v25, 7 }
 0x10e   : > { %1335 = vrot.lane.b32.xlu1 %v1004_v18, %s3149_s7  ;;  %1333 = vrot.lane.b32.xlu0 %v1003_v37, %s3149_s7  ;;  %5633 = vst [vmem:[#allocation103_spill] sm:$0xff] %v3983_v51  ;;  %v3986_v46 = vsel %vm467_vm1, %v471_v43, %v473_v36  ;;  %v1014_v21 = vmul.f32 %v3417_v58, %v3983_v51 }
 0x10f   : > { %v3973_v34 = vpop.permute.xlu1 %1148  ;;  %v3975_v0 = vpop.permute.xlu0 %1150  ;;  %5634 = vst [vmem:[#allocation104_spill] sm:$0xff] %v3986_v46  ;;  %v1015_v43 = vmul.f32 %v3440_v9, %v3986_v46 }
 0x110   : > { %5631 = vst [vmem:[#allocation101_spill] sm:$0xff] %v3973_v34  ;;  %5632 = vst [vmem:[#allocation102_spill] sm:$0xff] %v3975_v0  ;;  %v481_v0 = vrot.slane %v3486_v35, 7  ;;  %v485_v34 = vrot.slane %v3506_v52, 7 }
 0x112   : > { %1401 = vrot.lane.b32.xlu0 %v1012_v47, %s3150_s8  ;;  %1403 = vrot.lane.b32.xlu1 %v1013_v24, %s3150_s8 }
 0x113   : > { %v3990_v37 = vpop.permute.xlu1 %1152  ;;  %v3992_v18 = vpop.permute.xlu0 %1154 }
 0x114   : > { %5635 = vst [vmem:[#allocation105_spill] sm:$0xff] %v3990_v37  ;;  %5636 = vst [vmem:[#allocation106_spill] sm:$0xff] %v3992_v18  ;;  %v4007_v18 = vsel %vm467_vm1, %v473_v36, %v475_v32  ;;  %v4010_v37 = vsel %vm467_vm1, %v475_v32, %v477_v4  ;;  %v4025_v32 = vsel %vm467_vm1, %v479_v28, %v481_v0 }
 0x115   : > { %5639 = vst [vmem:[#allocation109_spill] sm:$0xff] %v4007_v18  ;;  %v1017_v44 = vmul.f32 %v3456_v17, %v4010_v37  ;;  %v1019_v27 = vmul.f32 %v3473_v26, %v4025_v32 }
 0x116   : > { %1405 = vrot.lane.b32.xlu0 %v1014_v21, %s3150_s8  ;;  %1407 = vrot.lane.b32.xlu1 %v1015_v43, %s3150_s8  ;;  %v1016_v21 = vmul.f32 %v3459_v19, %v4007_v18 }
 0x117   : > { %v4002_v47 = vpop.permute.xlu1 %1156  ;;  %v4004_v24 = vpop.permute.xlu0 %1158 }
 0x118   : > { %5637 = vst [vmem:[#allocation107_spill] sm:$0xff] %v4002_v47  ;;  %5638 = vst [vmem:[#allocation108_spill] sm:$0xff] %v4004_v24  ;;  %v4028_v24 = vsel %vm467_vm1, %v477_v4, %v479_v28  ;;  %v483_v47 = vrot.slane %v3490_v38, 7 }
 0x11a   : > { %1409 = vrot.lane.b32.xlu0 %v1016_v21, %s3150_s8  ;;  %1411 = vrot.lane.b32.xlu1 %v1017_v44, %s3150_s8  ;;  %v1018_v44 = vmul.f32 %v3477_v30, %v4028_v24  ;;  %v4043_v4 = vsel %vm467_vm1, %v483_v47, %v485_v34  ;;  %v4046_v28 = vsel %vm467_vm1, %v481_v0, %v483_v47 }
 0x11b   : > { %v4020_v43 = vpop.permute.xlu1 %1160  ;;  %v4022_v36 = vpop.permute.xlu0 %1162  ;;  %v1021_v56 = vmul.f32 %v3492_v39, %v4043_v4  ;;  %v4061_v0 = vsel %vm467_vm1, %v487_v49, %v489_v12  ;;  %v4064_v47 = vsel %vm467_vm1, %v485_v34, %v487_v49  ;;  %v4080_v49 = vsel %vm467_vm1, %v489_v12, %v5511_v1 }
 0x11c   : > { %v1023_v54 = vmul.f32 %v3511_v55, %v4061_v0  ;;  %v1024_v34 = vmul.f32 %v3531_v6, %v4080_v49  ;;  %v1050_v1 = vmul.f32 %v3685_v2, %v3695_v5  ;;  %v2335_v5 = vld [vmem:[%s5346_s4 + $0x8] sm:$0xff] }
 0x11e   : > { %1413 = vrot.lane.b32.xlu0 %v1018_v44, %s3150_s8  ;;  %1415 = vrot.lane.b32.xlu1 %v1019_v27, %s3150_s8  ;;  %v1020_v27 = vmul.f32 %v3495_v41, %v4046_v28 }
 0x11f   : > { %v4038_v21 = vpop.permute.xlu1 %1164  ;;  %v4040_v50 = vpop.permute.xlu0 %1166 }
 0x122   : > { %1417 = vrot.lane.b32.xlu0 %v1020_v27, %s3150_s8  ;;  %1419 = vrot.lane.b32.xlu1 %v1021_v56, %s3150_s8  ;;  %v1022_v27 = vmul.f32 %v3514_v57, %v4064_v47 }
 0x123   : > { %v4056_v44 = vpop.permute.xlu1 %1168  ;;  %v4058_v48 = vpop.permute.xlu0 %1170 }
 0x126   : > { %1421 = vrot.lane.b32.xlu0 %v1022_v27, %s3150_s8  ;;  %1423 = vrot.lane.b32.xlu1 %v1023_v54, %s3150_s8 }
 0x127   : > { %v4073_v56 = vpop.permute.xlu1 %1172  ;;  %v4075_v52 = vpop.permute.xlu0 %1174 }
 0x12a   : > { %1425 = vrot.lane.b32.xlu0 %v1024_v34, %s3150_s8  ;;  %1497 = vrot.lane.b32.xlu1 %v3422_v62, %s3151_s9  ;;  %v1083_v62 = vmul.f32 %v3424_v63, %v3983_v51  ;;  %v3100_v51 = vpack.c.bf16 %v2335_v5, %v2334_v59  ;;  %v2337_v59 = vld [vmem:[%s5346_s4 + $0x18] sm:$0xff]  ;;  %v1115_v63 = vmul.f32 %v3689_v13, %v3715_v42 }
 0x12b   : > { %v4087_v27 = vpop.permute.xlu1 %1176  ;;  %v4089_v54 = vpop.permute.xlu0 %1178  ;;  %v1116_v13 = vmul.f32 %v3685_v2, %v3712_v11 }
 0x12c   : > { %3101 = vmatprep.subr.bf16.mxu0 %v3100_v51  ;;  %3108 = vmatprep.subr.bf16.mxu1 %v3100_v51 }
 0x12d   : > { %3103 = vmatpush3.bf16.msra.mxu0 %v3100_v51  ;;  %3111 = vmatpush3.bf16.msra.mxu1 %v3100_v51 }
 0x12e   : > { %1499 = vrot.lane.b32.xlu0 %v3436_v7, %s3151_s9  ;;  %1625 = vrot.lane.b32.xlu1 %v1049_v22, %s3152_s10  ;;  %v1084_v22 = vmul.f32 %v3442_v10, %v3986_v46  ;;  %v2336_v46 = vld [vmem:[%s5346_s4 + $0x10] sm:$0xff] }
 0x12f   : > { %v4096_v12 = vpop.permute.xlu1 %1180  ;;  %v4098_v34 = vpop.permute.xlu0 %1182 }
 0x132   : > { %1627 = vrot.lane.b32.xlu0 %v1050_v1, %s3152_s10  ;;  %1753 = vrot.lane.b32.xlu1 %v1083_v62, %s3153_s11 }
 0x133   : > { %v4106_v45 = vpop.permute.xlu1 %1184  ;;  %v4108_v7 = vpop.permute.xlu0 %1186 }
 0x136   : > { %1755 = vrot.lane.b32.xlu0 %v1084_v22, %s3153_s11  ;;  %1849 = vrot.lane.b32.xlu1 %v3438_v8, %s3154_s16  ;;  %v3104_v22 = vpack.c.bf16 %v2337_v59, %v2336_v46  ;;  %v2338_v46 = vld [vmem:[%s5346_s4 + $0x20] sm:$0xf]  ;;  %v5643_v59 = vld [vmem:[#allocation43_spill] sm:$0xff] }
 0x137   : > { %v4121_v1 = vpop.permute.xlu1 %1188  ;;  %v4123_v62 = vpop.permute.xlu0 %1190 }
 0x138   : > { %3105 = vmatprep.subr.bf16.mxu0 %v3104_v22  ;;  %3109 = vmatprep.subr.bf16.mxu1 %v3104_v22 }
 0x139   : > { %3107 = vmatpush3.bf16.msra.mxu0 %v3104_v22  ;;  %3112 = vmatpush3.bf16.msra.mxu1 %v3104_v22 }
 0x13a   : > { %1501 = vrot.lane.b32.xlu0 %v3438_v8, %s3151_s9  ;;  %1851 = vrot.lane.b32.xlu1 %v3452_v15, %s3154_s16 }
 0x13b   : > { %v4135_v5 = vpop.permute.xlu1 %1192  ;;  %v4137_v10 = vpop.permute.xlu0 %1194  ;;  %3050 = vmatprep.subr.msk.mxu0 %vm2436_vm2, %v2338_v46  ;;  %3110 = vmatprep.subr.msk.mxu1 %vm2436_vm2, %v2338_v46 }
 0x13c   : > { %5640 = vst [vmem:[#allocation110_spill] sm:$0xff] %v4137_v10 }
 0x13d   : > { %3051 = vmatpush3.msk.msra.mxu0 %vm2436_vm2, %v2338_v46  ;;  %3113 = vmatpush3.msk.msra.mxu1 %vm2436_vm2, %v2338_v46  ;;  %v1086_v46 = vmul.f32 %v3440_v9, %v4010_v37 }
 0x13e   : > { %1974 = vrot.lane.b32.xlu0 %v1115_v63, %s3155_s23  ;;  %1503 = vrot.lane.b32.xlu1 %v3452_v15, %s3151_s9  ;;  %v1051_v63 = vmul.f32 %v5643_v59, %v3715_v42 }
 0x13f   : > { %v4144_v8 = vpop.permute.xlu1 %1196  ;;  %v4146_v51 = vpop.permute.xlu0 %1198 }
 0x140   : > { %5641 = vst [vmem:[#allocation111_spill] sm:$0xff] %v4144_v8  ;;  %5642 = vst [vmem:[#allocation112_spill] sm:$0xff] %v4146_v51  ;;  %v1085_v51 = vmul.f32 %v3417_v58, %v4007_v18  ;;  %v5644_v8 = vld [vmem:[#allocation44_spill] sm:$0xff] }
 0x141   : > { %v1052_v10 = vmul.f32 %v5644_v8, %v3712_v11 }
 0x142   : > { %1629 = vrot.lane.b32.xlu0 %v1051_v63, %s3152_s10  ;;  %1976 = vrot.lane.b32.xlu1 %v1116_v13, %s3155_s23 }
 0x143   : > { %v4157_v15 = vpop.permute.xlu1 %1200  ;;  %v4159_v22 = vpop.permute.xlu0 %1202 }
 0x146   : > { %1631 = vrot.lane.b32.xlu0 %v1052_v10, %s3152_s10  ;;  %1757 = vrot.lane.b32.xlu1 %v1085_v51, %s3153_s11  ;;  %v5647_v51 = vld [vmem:[#allocation47_spill] sm:$0xff] }
 0x147   : > { %v4167_v42 = vpop.permute.xlu1 %1204  ;;  %v4169_v2 = vpop.permute.xlu0 %1206 }
 0x14a   : > { %1759 = vrot.lane.b32.xlu0 %v1086_v46, %s3153_s11  ;;  %1853 = vrot.lane.b32.xlu1 %v3454_v16, %s3154_s16  ;;  %v1117_v46 = vmul.f32 %v5643_v59, %v5647_v51 }
 0x14b   : > { %v4176_v13 = vpop.permute.xlu1 %1208  ;;  %v4178_v63 = vpop.permute.xlu0 %1273 }
 0x14c   : > { %5645 = vst [vmem:[#allocation43_spill] sm:$0xff] %v4178_v63  ;;  %v5651_v63 = vld [vmem:[#allocation45_spill] sm:$0xff] }
 0x14e   : > { %1505 = vrot.lane.b32.xlu0 %v3454_v16, %s3151_s9  ;;  %1855 = vrot.lane.b32.xlu1 %v3468_v23, %s3154_s16  ;;  %v5650_v16 = vld [vmem:[#allocation48_spill] sm:$0xff] }
 0x14f   : > { %v4184_v10 = vpop.permute.xlu1 %1275  ;;  %v4186_v11 = vpop.permute.xlu0 %1277  ;;  %v1118_v58 = vmul.f32 %v5644_v8, %v5650_v16  ;;  %v726_v8 = vmul.f32 %v3495_v41, %v4028_v24 }
 0x150   : > { %5646 = vst [vmem:[#allocation44_spill] sm:$0xff] %v4184_v10  ;;  %v1053_v10 = vmul.f32 %v5651_v63, %v5647_v51 }
 0x152   : > { %1978 = vrot.lane.b32.xlu0 %v1117_v46, %s3155_s23  ;;  %1507 = vrot.lane.b32.xlu1 %v3468_v23, %s3151_s9  ;;  %v1087_v23 = vmul.f32 %v3459_v19, %v4028_v24 }
 0x153   : > { %v4193_v18 = vpop.permute.xlu1 %1279  ;;  %v4195_v9 = vpop.permute.xlu0 %1281 }
 0x154   : > { %5648 = vst [vmem:[#allocation47_spill] sm:$0xff] %v4193_v18  ;;  %5649 = vst [vmem:[#allocation113_spill] sm:$0xff] %v4195_v9  ;;  %v725_v9 = vmul.f32 %v3473_v26, %v4010_v37  ;;  %v5654_v18 = vld [vmem:[#allocation46_spill] sm:$0xff] }
 0x155   : > { %v1054_v51 = vmul.f32 %v5654_v18, %v5650_v16  ;;  %v1088_v16 = vmul.f32 %v3456_v17, %v4025_v32 }
 0x156   : > { %1633 = vrot.lane.b32.xlu0 %v1053_v10, %s3152_s10  ;;  %1980 = vrot.lane.b32.xlu1 %v1118_v58, %s3155_s23  ;;  %v2078_v58 = vsel %vm2070_vm3, %v725_v9, %v4020_v43  ;;  %v2079_v10 = vsel %vm2070_vm3, %v726_v8, %v4022_v36  ;;  %v727_v9 = vmul.f32 %v3492_v39, %v4025_v32 }
 0x157   : > { %v4203_v59 = vpop.permute.xlu1 %1283  ;;  %v4205_v46 = vpop.permute.xlu0 %1285  ;;  %v728_v43 = vmul.f32 %v3514_v57, %v4046_v28 }
 0x158   : > { %5652 = vst [vmem:[#allocation48_spill] sm:$0xff] %v4203_v59  ;;  %5653 = vst [vmem:[#allocation45_spill] sm:$0xff] %v4205_v46  ;;  %v2080_v36 = vsel %vm2070_vm3, %v727_v9, %v4038_v21  ;;  %v730_v21 = vmul.f32 %v3531_v6, %v4064_v47 }
 0x15a   : > { %1635 = vrot.lane.b32.xlu0 %v1054_v51, %s3152_s10  ;;  %1761 = vrot.lane.b32.xlu1 %v1087_v23, %s3153_s11  ;;  %v2081_v23 = vsel %vm2070_vm3, %v728_v43, %v4040_v50  ;;  %v493_v50 = vrot.slane %v3540_v14, 7  ;;  %v495_v43 = vrot.slane %v3543_v20, 7 }
 0x15b   : > { %v1288_v46 = vpop.permute.xlu1 %1287  ;;  %v1290_v37 = vpop.permute.xlu0 %1289 }
 0x15c   : > { %v4222_v59 = vsel %vm2103_vm4, %v2078_v58, %v1288_v46  ;;  %v4225_v24 = vsel %vm2103_vm4, %v2079_v10, %v1290_v37  ;;  %v729_v58 = vmul.f32 %v3511_v55, %v4043_v4  ;;  %v2083_v37 = vsel %vm2070_vm3, %v730_v21, %v4058_v48  ;;  %v5662_v48 = vld [vmem:[#allocation15_spill] sm:$0xff] }
 0x15d   : > { %5655 = vst [vmem:[#allocation46_spill] sm:$0xff] %v4222_v59  ;;  %5656 = vst [vmem:[#allocation114_spill] sm:$0xff] %v4225_v24  ;;  %v5664_v21 = vrot.slane %v3526_v3, 7 }
 0x15e   : > { %1763 = vrot.lane.b32.xlu0 %v1088_v16, %s3153_s11  ;;  %1857 = vrot.lane.b32.xlu1 %v3471_v25, %s3154_s16  ;;  %v2082_v10 = vsel %vm2070_vm3, %v729_v58, %v4056_v44  ;;  %v5661_v44 = vld [vmem:[#allocation13_spill] sm:$0xff] }
 0x15f   : > { %v1292_v46 = vpop.permute.xlu1 %1291  ;;  %v1294_v8 = vpop.permute.xlu0 %1293 }
 0x160   : > { %v4241_v51 = vsel %vm2103_vm4, %v2080_v36, %v1292_v46  ;;  %v4244_v32 = vsel %vm2103_vm4, %v2081_v23, %v1294_v8  ;;  %v731_v46 = vmul.f32 %v5661_v44, %v4061_v0  ;;  %v732_v8 = vmul.f32 %v5662_v48, %v4080_v49 }
 0x161   : > { %5657 = vst [vmem:[#allocation115_spill] sm:$0xff] %v4241_v51  ;;  %5658 = vst [vmem:[#allocation116_spill] sm:$0xff] %v4244_v32  ;;  %v4275_v32 = vsel %vm467_vm1, %v5664_v21, %v493_v50  ;;  %v499_v21 = vrot.slane %v3562_v40, 7 }
 0x162   : > { %1509 = vrot.lane.b32.xlu0 %v3471_v25, %s3151_s9  ;;  %1859 = vrot.lane.b32.xlu1 %v3486_v35, %s3154_s16  ;;  %v5663_v25 = vld [vmem:[#allocation51_spill] sm:$0xff] }
 0x163   : > { %v1296_v16 = vpop.permute.xlu1 %1295  ;;  %v1298_v9 = vpop.permute.xlu0 %1297  ;;  %v1119_v58 = vmul.f32 %v5651_v63, %v5663_v25 }
 0x164   : > { %v4261_v36 = vsel %vm2103_vm4, %v2082_v10, %v1296_v16  ;;  %v4264_v23 = vsel %vm2103_vm4, %v2083_v37, %v1298_v9  ;;  %v497_v10 = vrot.slane %v3558_v33, 7  ;;  %v2084_v37 = vsel %vm2070_vm3, %v731_v46, %v4073_v56 }
 0x165   : > { %5659 = vst [vmem:[#allocation117_spill] sm:$0xff] %v4261_v36  ;;  %5660 = vst [vmem:[#allocation118_spill] sm:$0xff] %v4264_v23  ;;  %v2085_v16 = vsel %vm2070_vm3, %v732_v8, %v4075_v52  ;;  %v4286_v23 = vsel %vm467_vm1, %v493_v50, %v495_v43  ;;  %v5667_v52 = vld [vmem:[#allocation14_spill] sm:$0xff]  ;;  %v5668_v8 = vld [vmem:[#allocation17_spill] sm:$0xff] }
 0x166   : > { %1982 = vrot.lane.b32.xlu0 %v1119_v58, %s3155_s23  ;;  %1511 = vrot.lane.b32.xlu1 %v3486_v35, %s3151_s9  ;;  %v733_v46 = vmul.f32 %v5667_v52, %v4275_v32  ;;  %v734_v58 = vmul.f32 %v5668_v8, %v4286_v23  ;;  %v5669_v35 = vld [vmem:[#allocation52_spill] sm:$0xff]  ;;  %v5670_v50 = vld [vmem:[#allocation49_spill] sm:$0xff]  ;;  %v4304_v59 = vsel %vm467_vm1, %v495_v43, %v497_v10  ;;  %v503_v43 = vrot.slane %v3580_v61, 7 }
 0x167   : > { %v1300_v9 = vpop.permute.xlu1 %1299  ;;  %v1302_v63 = vpop.permute.xlu0 %1301  ;;  %v1120_v51 = vmul.f32 %v5654_v18, %v5669_v35  ;;  %v1055_v24 = vmul.f32 %v5670_v50, %v5663_v25  ;;  %v505_v61 = vrot.slane %v3596_v29, 7 }
 0x168   : > { %v4290_v36 = vsel %vm2103_vm4, %v2084_v37, %v1300_v9  ;;  %v4293_v56 = vsel %vm2103_vm4, %v2085_v16, %v1302_v63  ;;  %v501_v37 = vrot.slane %v3578_v60, 7  ;;  %v2086_v16 = vsel %vm2070_vm3, %v733_v46, %v4087_v27 }
 0x169   : > { %5665 = vst [vmem:[#allocation13_spill] sm:$0xff] %v4290_v36  ;;  %5666 = vst [vmem:[#allocation15_spill] sm:$0xff] %v4293_v56  ;;  %v2087_v9 = vsel %vm2070_vm3, %v734_v58, %v4089_v54  ;;  %v4314_v56 = vsel %vm467_vm1, %v497_v10, %v499_v21  ;;  %v1089_v27 = vmul.f32 %v3477_v30, %v4046_v28  ;;  %v5673_v54 = vld [vmem:[#allocation16_spill] sm:$0xff]  ;;  %v5675_v10 = vld [vmem:[#allocation50_spill] sm:$0xff] }
 0x16a   : > { %1637 = vrot.lane.b32.xlu0 %v1055_v24, %s3152_s10  ;;  %1984 = vrot.lane.b32.xlu1 %v1120_v51, %s3155_s23  ;;  %v735_v24 = vmul.f32 %v5673_v54, %v4304_v59  ;;  %v5674_v51 = vld [vmem:[#allocation20_spill] sm:$0xff]  ;;  %v1056_v58 = vmul.f32 %v5675_v10, %v5669_v35  ;;  %v4343_v35 = vsel %vm467_vm1, %v501_v37, %v503_v43 }
 0x16b   : > { %v1304_v63 = vpop.permute.xlu1 %1303  ;;  %v1306_v18 = vpop.permute.xlu0 %1305  ;;  %v736_v46 = vmul.f32 %v5674_v51, %v4314_v56 }
 0x16c   : > { %v4318_v25 = vsel %vm2103_vm4, %v2086_v16, %v1304_v63  ;;  %v4321_v36 = vsel %vm2103_vm4, %v2087_v9, %v1306_v18  ;;  %v507_v16 = vrot.slane %v3598_v31, 7  ;;  %v2088_v9 = vsel %vm2070_vm3, %v735_v24, %v4096_v12  ;;  %v5678_v24 = vld [vmem:[#allocation19_spill] sm:$0xff]  ;;  %v5693_v31 = vld [vmem:[#allocation32_spill] sm:$0xff] }
 0x16d   : > { %5671 = vst [vmem:[#allocation51_spill] sm:$0xff] %v4318_v25  ;;  %5672 = vst [vmem:[#allocation14_spill] sm:$0xff] %v4321_v36  ;;  %v2089_v63 = vsel %vm2070_vm3, %v736_v46, %v4098_v34  ;;  %v4340_v36 = vsel %vm467_vm1, %v499_v21, %v501_v37  ;;  %v1090_v34 = vmul.f32 %v3473_v26, %v4043_v4  ;;  %v5679_v46 = vld [vmem:[#allocation23_spill] sm:$0xff]  ;;  %v509_v37 = vrot.slane %v3612_v53, 7  ;;  %v5685_v53 = vld [vmem:[#allocation28_spill] sm:$0xff] }
 0x16e   : > { %1639 = vrot.lane.b32.xlu0 %v1056_v58, %s3152_s10  ;;  %1765 = vrot.lane.b32.xlu1 %v1089_v27, %s3153_s11  ;;  %v737_v27 = vmul.f32 %v5678_v24, %v4340_v36  ;;  %v738_v58 = vmul.f32 %v5679_v46, %v4343_v35  ;;  %v4358_v21 = vsel %vm467_vm1, %v503_v43, %v505_v61  ;;  %v5680_v43 = vld [vmem:[#allocation25_spill] sm:$0xff] }
 0x16f   : > { %v1308_v28 = vpop.permute.xlu1 %1307  ;;  %v1310_v18 = vpop.permute.xlu0 %1309 }
 0x170   : > { %v4346_v25 = vsel %vm2103_vm4, %v2088_v9, %v1308_v28  ;;  %v4349_v12 = vsel %vm2103_vm4, %v2089_v63, %v1310_v18  ;;  %v2090_v9 = vsel %vm2070_vm3, %v737_v27, %v4106_v45  ;;  %v2091_v63 = vsel %vm2070_vm3, %v738_v58, %v4108_v7  ;;  %v5683_v7 = vld [vmem:[#allocation22_spill] sm:$0xff] }
 0x171   : > { %5676 = vst [vmem:[#allocation17_spill] sm:$0xff] %v4346_v25  ;;  %5677 = vst [vmem:[#allocation52_spill] sm:$0xff] %v4349_v12  ;;  %v4369_v28 = vsel %vm467_vm1, %v505_v61, %v507_v16  ;;  %v511_v18 = vrot.slane %v5680_v43, 7  ;;  %v739_v27 = vmul.f32 %v5683_v7, %v4358_v21  ;;  %v4383_v25 = vsel %vm467_vm1, %v507_v16, %v509_v37  ;;  %v5687_v16 = vld [vmem:[#allocation29_spill] sm:$0xff] }
 0x172   : > { %1767 = vrot.lane.b32.xlu0 %v1090_v34, %s3153_s11  ;;  %1861 = vrot.lane.b32.xlu1 %v3490_v38, %s3154_s16  ;;  %v5684_v34 = vld [vmem:[#allocation27_spill] sm:$0xff]  ;;  %v513_v61 = vrot.slane %v5685_v53, 7 }
 0x173   : > { %v1312_v26 = vpop.permute.xlu1 %1311  ;;  %v1314_v4 = vpop.permute.xlu0 %1313  ;;  %v740_v58 = vmul.f32 %v5684_v34, %v4369_v28  ;;  %v2092_v43 = vsel %vm2070_vm3, %v739_v27, %v4121_v1  ;;  %v5692_v34 = vld [vmem:[#allocation55_spill] sm:$0xff] }
 0x174   : > { %v4373_v12 = vsel %vm2103_vm4, %v2090_v9, %v1312_v26  ;;  %v4376_v45 = vsel %vm2103_vm4, %v2091_v63, %v1314_v4  ;;  %v5686_v63 = vld [vmem:[#allocation10_spill] sm:$0xff]  ;;  %v1121_v7 = vmul.f32 %v5670_v50, %v5692_v34 }
 0x175   : > { %5681 = vst [vmem:[#allocation49_spill] sm:$0xff] %v4373_v12  ;;  %5682 = vst [vmem:[#allocation16_spill] sm:$0xff] %v4376_v45  ;;  %v2093_v9 = vsel %vm2070_vm3, %v740_v58, %v4123_v62  ;;  %v4395_v45 = vsel %vm467_vm1, %v509_v37, %v511_v18  ;;  %v515_v12 = vrot.slane %v5687_v16, 7  ;;  %v5690_v62 = vld [vmem:[#allocation26_spill] sm:$0xff]  ;;  %v4411_v37 = vsel %vm467_vm1, %v511_v18, %v513_v61  ;;  %v5696_v18 = vld [vmem:[#allocation33_spill] sm:$0xff] }
 0x176   : > { %1513 = vrot.lane.b32.xlu0 %v3490_v38, %s3151_s9  ;;  %1863 = vrot.lane.b32.xlu1 %v5686_v63, %s3154_s16  ;;  %v741_v27 = vmul.f32 %v5690_v62, %v4383_v25  ;;  %v5691_v38 = vld [vmem:[#allocation31_spill] sm:$0xff]  ;;  %v517_v16 = vrot.slane %v5693_v31, 7 }
 0x177   : > { %v1316_v26 = vpop.permute.xlu1 %1315  ;;  %v1318_v4 = vpop.permute.xlu0 %1317  ;;  %v742_v58 = vmul.f32 %v5691_v38, %v4395_v45  ;;  %v4422_v50 = vsel %vm467_vm1, %v513_v61, %v515_v12  ;;  %v5702_v61 = vld [vmem:[#allocation53_spill] sm:$0xff] }
 0x178   : > { %v4399_v53 = vsel %vm2103_vm4, %v2092_v43, %v1316_v26  ;;  %v4402_v1 = vsel %vm2103_vm4, %v2093_v9, %v1318_v4  ;;  %v2094_v43 = vsel %vm2070_vm3, %v741_v27, %v4135_v5  ;;  %v5694_v26 = vld [vmem:[#allocation110_spill] sm:$0xff]  ;;  %5695 = vst [vmem:[#allocation19_spill] sm:$0xff] %v4422_v50  ;;  %v1057_v62 = vmul.f32 %v5702_v61, %v5692_v34  ;;  %v5706_v34 = vld [vmem:[#allocation37_spill] sm:$0xff] }
 0x179   : > { %5688 = vst [vmem:[#allocation20_spill] sm:$0xff] %v4399_v53  ;;  %5689 = vst [vmem:[#allocation50_spill] sm:$0xff] %v4402_v1  ;;  %v2095_v9 = vsel %vm2070_vm3, %v742_v58, %v5694_v26  ;;  %v519_v53 = vrot.slane %v5696_v18, 7  ;;  %v5699_v27 = vld [vmem:[#allocation30_spill] sm:$0xff]  ;;  %v4440_v18 = vsel %vm467_vm1, %v515_v12, %v517_v16  ;;  %v523_v12 = vrot.slane %v5706_v34, 7 }
 0x17a   : > { %1986 = vrot.lane.b32.xlu0 %v1121_v7, %s3155_s23  ;;  %1515 = vrot.lane.b32.xlu1 %v5686_v63, %s3151_s9  ;;  %v743_v58 = vmul.f32 %v5699_v27, %v4411_v37  ;;  %v5700_v7 = vld [vmem:[#allocation35_spill] sm:$0xff]  ;;  %v5701_v63 = vld [vmem:[#allocation56_spill] sm:$0xff] }
 0x17b   : > { %v1320_v4 = vpop.permute.xlu1 %1319  ;;  %v1322_v1 = vpop.permute.xlu0 %1321  ;;  %v744_v26 = vmul.f32 %v5700_v7, %v4422_v50  ;;  %v1122_v38 = vmul.f32 %v5675_v10, %v5701_v63  ;;  %v4450_v27 = vsel %vm467_vm1, %v517_v16, %v519_v53  ;;  %v5711_v16 = vld [vmem:[#allocation54_spill] sm:$0xff] }
 0x17c   : > { %v4426_v31 = vsel %vm2103_vm4, %v2094_v43, %v1320_v4  ;;  %v4429_v5 = vsel %vm2103_vm4, %v2095_v9, %v1322_v1  ;;  %v5703_v43 = vld [vmem:[#allocation36_spill] sm:$0xff] }
 0x17d   : > { %5697 = vst [vmem:[#allocation23_spill] sm:$0xff] %v4426_v31  ;;  %5698 = vst [vmem:[#allocation10_spill] sm:$0xff] %v4429_v5  ;;  %v521_v4 = vrot.slane %v5703_v43, 7  ;;  %v5704_v31 = vld [vmem:[#allocation111_spill] sm:$0xff]  ;;  %v5705_v9 = vld [vmem:[#allocation112_spill] sm:$0xff] }
 0x17e   : > { %v2096_v1 = vsel %vm2070_vm3, %v743_v58, %v5704_v31  ;;  %v2097_v5 = vsel %vm2070_vm3, %v744_v26, %v5705_v9  ;;  %1641 = vrot.lane.b32.xlu0 %v1057_v62, %s3152_s10  ;;  %1988 = vrot.lane.b32.xlu1 %v1122_v38, %s3155_s23  ;;  %v1091_v31 = vmul.f32 %v3495_v41, %v4064_v47  ;;  %v5709_v62 = vld [vmem:[#allocation34_spill] sm:$0xff]  ;;  %v5710_v38 = vld [vmem:[#allocation39_spill] sm:$0xff] }
 0x17f   : > { %v1324_v7 = vpop.permute.xlu1 %1323  ;;  %v1326_v10 = vpop.permute.xlu0 %1325  ;;  %v745_v58 = vmul.f32 %v5709_v62, %v4440_v18  ;;  %v746_v26 = vmul.f32 %v5710_v38, %v4450_v27  ;;  %v1058_v9 = vmul.f32 %v5711_v16, %v5701_v63  ;;  %v4468_v34 = vsel %vm467_vm1, %v519_v53, %v521_v4 }
 0x180   : > { %v4454_v50 = vsel %vm2103_vm4, %v2096_v1, %v1324_v7  ;;  %v4457_v43 = vsel %vm2103_vm4, %v2097_v5, %v1326_v10  ;;  %v5712_v1 = vld [vmem:[#allocation40_spill] sm:$0xff] }
 0x181   : > { %5707 = vst [vmem:[#allocation55_spill] sm:$0xff] %v4454_v50  ;;  %5708 = vst [vmem:[#allocation110_spill] sm:$0xff] %v4457_v43  ;;  %v2098_v7 = vsel %vm2070_vm3, %v745_v58, %v4157_v15  ;;  %v2099_v5 = vsel %vm2070_vm3, %v746_v26, %v4159_v22  ;;  %v5529_v10 = vrot.slane %v5712_v1, 7  ;;  %v4478_v43 = vsel %vm467_vm1, %v521_v4, %v523_v12  ;;  %v5715_v22 = vld [vmem:[#allocation38_spill] sm:$0xff] }
 0x182   : > { %1643 = vrot.lane.b32.xlu0 %v1058_v9, %s3152_s10  ;;  %1769 = vrot.lane.b32.xlu1 %v1091_v31, %s3153_s11  ;;  %v1092_v15 = vmul.f32 %v3492_v39, %v4061_v0  ;;  %v747_v58 = vmul.f32 %v5715_v22, %v4468_v34  ;;  %v5716_v31 = vld [vmem:[#allocation42_spill] sm:$0xff] }
 0x183   : > { %v1328_v41 = vpop.permute.xlu1 %1327  ;;  %v1330_v47 = vpop.permute.xlu0 %1329  ;;  %v748_v26 = vmul.f32 %v5716_v31, %v4478_v43  ;;  %v4502_v39 = vsel %vm467_vm1, %v523_v12, %v5529_v10  ;;  %v5725_v10 = vld [vmem:[#allocation57_spill] sm:$0xff] }
 0x184   : > { %v4481_v53 = vsel %vm2103_vm4, %v2098_v7, %v1328_v41  ;;  %v4484_v63 = vsel %vm2103_vm4, %v2099_v5, %v1330_v47  ;;  %v2100_v9 = vsel %vm2070_vm3, %v747_v58, %v4167_v42  ;;  %v5717_v7 = vld [vmem:[#allocation11_spill] sm:$0xff]  ;;  %v5721_v58 = vld [vmem:[#allocation12_spill] sm:$0xff] }
 0x185   : > { %5713 = vst [vmem:[#allocation56_spill] sm:$0xff] %v4481_v53  ;;  %5714 = vst [vmem:[#allocation53_spill] sm:$0xff] %v4484_v63  ;;  %v2101_v4 = vsel %vm2070_vm3, %v748_v26, %v4169_v2  ;;  %v5720_v2 = vld [vmem:[#allocation41_spill] sm:$0xff]  ;;  %v5730_v53 = vld [vmem:[#allocation62_spill] sm:$0xff] }
 0x186   : > { %1771 = vrot.lane.b32.xlu0 %v1092_v15, %s3153_s11  ;;  %1865 = vrot.lane.b32.xlu1 %v5717_v7, %s3154_s16  ;;  %v749_v47 = vmul.f32 %v5720_v2, %v4502_v39 }
 0x187   : > { %v1332_v5 = vpop.permute.xlu1 %1331  ;;  %v1334_v41 = vpop.permute.xlu0 %1333 }
 0x188   : > { %v4505_v0 = vsel %vm2103_vm4, %v2100_v9, %v1332_v5  ;;  %v4508_v42 = vsel %vm2103_vm4, %v2101_v4, %v1334_v41  ;;  %v2102_v15 = vsel %vm2070_vm3, %v749_v47, %v4176_v13  ;;  %v5723_v5 = vld [vmem:[#allocation59_spill] sm:$0xff] }
 0x189   : > { %5718 = vst [vmem:[#allocation111_spill] sm:$0xff] %v4505_v0  ;;  %5719 = vst [vmem:[#allocation112_spill] sm:$0xff] %v4508_v42  ;;  %v1123_v4 = vmul.f32 %v5702_v61, %v5723_v5  ;;  %v1059_v42 = vmul.f32 %v5725_v10, %v5723_v5 }
 0x18a   : > { %1517 = vrot.lane.b32.xlu0 %v5717_v7, %s3151_s9  ;;  %1867 = vrot.lane.b32.xlu1 %v5721_v58, %s3154_s16  ;;  %v5724_v7 = vld [vmem:[#allocation60_spill] sm:$0xff] }
 0x18b   : > { %v1336_v12 = vpop.permute.xlu1 %1335  ;;  %v1402_v26 = vpop.permute.xlu0 %1401  ;;  %v1124_v47 = vmul.f32 %v5711_v16, %v5724_v7 }
 0x18c   : > { %v4519_v9 = vsel %vm2103_vm4, %v2102_v15, %v1336_v12  ;;  %v5726_v12 = vld [vmem:[#allocation58_spill] sm:$0xff] }
 0x18d   : > { %5722 = vst [vmem:[#allocation34_spill] sm:$0xff] %v4519_v9 }
 0x18e   : > { %1990 = vrot.lane.b32.xlu0 %v1123_v4, %s3155_s23  ;;  %1519 = vrot.lane.b32.xlu1 %v5721_v58, %s3151_s9  ;;  %v1093_v58 = vmul.f32 %v3514_v57, %v4080_v49  ;;  %v1060_v4 = vmul.f32 %v5726_v12, %v5724_v7  ;;  %v1025_v7 = vmul.f32 %v5661_v44, %v4275_v32 }
 0x18f   : > { %v4526_v13 = vpop.permute.xlu0 %1405  ;;  %v4528_v41 = vpop.permute.xlu1 %1403 }
 0x192   : > { %1645 = vrot.lane.b32.xlu0 %v1059_v42, %s3152_s10  ;;  %1992 = vrot.lane.b32.xlu1 %v1124_v47, %s3155_s23  ;;  %v1094_v42 = vmul.f32 %v3511_v55, %v4275_v32 }
 0x193   : > { %v4536_v61 = vpop.permute.xlu0 %1409  ;;  %v4538_v15 = vpop.permute.xlu1 %1407 }
 0x196   : > { %1647 = vrot.lane.b32.xlu0 %v1060_v4, %s3152_s10  ;;  %1773 = vrot.lane.b32.xlu1 %v1093_v58, %s3153_s11  ;;  %v5727_v58 = vld [vmem:[#allocation63_spill] sm:$0xff] }
 0x197   : > { %v4546_v16 = vpop.permute.xlu0 %1413  ;;  %v4548_v5 = vpop.permute.xlu1 %1411  ;;  %v1125_v4 = vmul.f32 %v5725_v10, %v5727_v58  ;;  %v5729_v10 = vld [vmem:[#allocation64_spill] sm:$0xff] }
 0x198   : > { %v1126_v63 = vmul.f32 %v5726_v12, %v5729_v10 }
 0x19a   : > { %1775 = vrot.lane.b32.xlu0 %v1094_v42, %s3153_s11  ;;  %1869 = vrot.lane.b32.xlu1 %v3526_v3, %s3154_s16 }
 0x19b   : > { %v4555_v57 = vpop.permute.xlu0 %1417  ;;  %v4557_v49 = vpop.permute.xlu1 %1415 }
 0x19e   : > { %1427 = vrot.lane.b32.xlu0 %v1025_v7, %s3150_s8  ;;  %1521 = vrot.lane.b32.xlu1 %v3526_v3, %s3151_s9  ;;  %v5728_v7 = vld [vmem:[#allocation61_spill] sm:$0xff] }
 0x19f   : > { %v4564_v47 = vpop.permute.xlu0 %1421  ;;  %v4566_v55 = vpop.permute.xlu1 %1419  ;;  %v1061_v9 = vmul.f32 %v5728_v7, %v5727_v58  ;;  %v1095_v58 = vmul.f32 %v3531_v6, %v4286_v23  ;;  %v5733_v6 = vld [vmem:[#allocation43_spill] sm:$0xff] }
 0x1a2   : > { %1871 = vrot.lane.b32.xlu0 %v3540_v14, %s3154_s16  ;;  %1994 = vrot.lane.b32.xlu1 %v1125_v4, %s3155_s23  ;;  %v1062_v4 = vmul.f32 %v5730_v53, %v5729_v10 }
 0x1a3   : > { %v4573_v42 = vpop.permute.xlu0 %1425  ;;  %v4575_v32 = vpop.permute.xlu1 %1423 }
 0x1a6   : > { %1523 = vrot.lane.b32.xlu0 %v3540_v14, %s3151_s9  ;;  %1649 = vrot.lane.b32.xlu1 %v1061_v9, %s3152_s10  ;;  %v1026_v14 = vmul.f32 %v5662_v48, %v4286_v23  ;;  %v5731_v9 = vld [vmem:[#allocation7_spill] sm:$0xff] }
 0x1a7   : > { %v1500_v3 = vpop.permute.xlu0 %1499  ;;  %v1498_v0 = vpop.permute.xlu1 %1497  ;;  %v718_v31 = vmul.f32 0.0, %v5731_v9 }
 0x1aa   : > { %1996 = vrot.lane.b32.xlu0 %v1126_v63, %s3155_s23  ;;  %1651 = vrot.lane.b32.xlu1 %v1062_v4, %s3152_s10  ;;  %v1096_v63 = vmul.f32 %v5661_v44, %v4304_v59  ;;  %v5732_v4 = vld [vmem:[#allocation101_spill] sm:$0xff] }
 0x1ab   : > { %v1628_v50 = vpop.permute.xlu0 %1627  ;;  %v1626_v2 = vpop.permute.xlu1 %1625  ;;  %v2071_v1 = vsel %vm2070_vm3, %v718_v31, %v5732_v4  ;;  %v1027_v31 = vmul.f32 %v5667_v52, %v4304_v59  ;;  %v5735_v59 = vld [vmem:[#allocation67_spill] sm:$0xff] }
 0x1ac   : > { %v2104_v22 = vsel %vm2103_vm4, %v2071_v1, %v5733_v6 }
 0x1ad   : > { %v2137_v23 = vsel %vm2136_vm5, %v2104_v22, %v1402_v26  ;;  %v5734_v22 = vld [vmem:[#allocation9_spill] sm:$0xff] }
 0x1ae   : > { %1777 = vrot.lane.b32.xlu0 %v1095_v58, %s3153_s11  ;;  %1429 = vrot.lane.b32.xlu1 %v1026_v14, %s3150_s8  ;;  %v2170_v44 = vsel %vm2169_vm6, %v2137_v23, %v1498_v0  ;;  %v719_v26 = vmul.f32 0.0, %v5734_v22 }
 0x1af   : > { %v1756_v12 = vpop.permute.xlu0 %1755  ;;  %v1754_v10 = vpop.permute.xlu1 %1753  ;;  %v2203_v9 = vsel %vm2202_vm7, %v2170_v44, %v1626_v2  ;;  %v1127_v2 = vmul.f32 %v5728_v7, %v5735_v59  ;;  %v5736_v44 = vld [vmem:[#allocation44_spill] sm:$0xff] }
 0x1b0   : > { %v2236_v1 = vsel %vm2235_vm8, %v2203_v9, %v1754_v10  ;;  %v2072_v10 = vsel %vm2070_vm3, %v719_v26, %v5732_v4 }
 0x1b2   : > { %1779 = vrot.lane.b32.xlu0 %v1096_v63, %s3153_s11  ;;  %1873 = vrot.lane.b32.xlu1 %v3543_v20, %s3154_s16 }
 0x1b3   : > { %v1502_v58 = vpop.permute.xlu0 %1501  ;;  %v1850_v14 = vpop.permute.xlu1 %1849 }
 0x1b4   : > { %v2269_v63 = vsel %vm2268_vm9, %v2236_v1, %v1850_v14  ;;  %v2105_v14 = vsel %vm2103_vm4, %v2072_v10, %v5736_v44  ;;  %v5737_v1 = vld [vmem:[#allocation65_spill] sm:$0xff] }
 0x1b5   : > { %v1063_v4 = vmul.f32 %v5737_v1, %v5735_v59  ;;  %v5739_v59 = vld [vmem:[#allocation66_spill] sm:$0xff] }
 0x1b6   : > { %1431 = vrot.lane.b32.xlu0 %v1027_v31, %s3150_s8  ;;  %1525 = vrot.lane.b32.xlu1 %v3543_v20, %s3151_s9  ;;  %v2138_v31 = vsel %vm2136_vm5, %v2105_v14, %v4528_v41  ;;  %v1097_v14 = vmul.f32 %v5662_v48, %v4314_v56 }
 0x1b7   : > { %v1975_v0 = vpop.permute.xlu0 %1974  ;;  %v1852_v6 = vpop.permute.xlu1 %1851  ;;  %v2171_v7 = vsel %vm2169_vm6, %v2138_v31, %v1500_v3  ;;  %v5742_v31 = vld [vmem:[#allocation102_spill] sm:$0xff] }
 0x1b8   : > { %v2302_v23 = vsel %vm2301_vm10, %v2269_v63, %v1975_v0  ;;  %v2204_v22 = vsel %vm2202_vm7, %v2171_v7, %v1628_v50  ;;  %v5740_v50 = vld [vmem:[#allocation99_spill] sm:$0xff] }
 0x1b9   : > { %3052 = vmatprep.mubr.msk.f32.mxu0 %vm2339_vm11, %v2302_v23  ;;  %v2237_v26 = vsel %vm2235_vm8, %v2204_v22, %v1756_v12  ;;  %v5741_v12 = vld [vmem:[#allocation6_spill] sm:$0xff] }
 0x1ba   : > { %1875 = vrot.lane.b32.xlu0 %v3558_v33, %s3154_s16  ;;  %1998 = vrot.lane.b32.xlu1 %v1127_v2, %s3155_s23  ;;  %v2270_v63 = vsel %vm2268_vm9, %v2237_v26, %v1852_v6  ;;  %v5738_v2 = vld [vmem:[#allocation68_spill] sm:$0xff]  ;;  %v720_v6 = vmul.f32 %v5741_v12, %v5740_v50 }
 0x1bb   : > { %v1630_v20 = vpop.permute.xlu0 %1629  ;;  %v1504_v9 = vpop.permute.xlu1 %1503  ;;  %v1128_v3 = vmul.f32 %v5730_v53, %v5738_v2  ;;  %v1064_v10 = vmul.f32 %v5739_v59, %v5738_v2  ;;  %v1028_v53 = vmul.f32 %v5668_v8, %v4314_v56  ;;  %v1098_v56 = vmul.f32 %v5667_v52, %v4340_v36  ;;  %v5743_v2 = vld [vmem:[#allocation100_spill] sm:$0xff] }
 0x1bc   : > { %v2073_v7 = vsel %vm2070_vm3, %v720_v6, %v5742_v31  ;;  %v1029_v52 = vmul.f32 %v5673_v54, %v4340_v36  ;;  %v5746_v6 = vld [vmem:[#allocation47_spill] sm:$0xff] }
 0x1be   : > { %1527 = vrot.lane.b32.xlu0 %v3558_v33, %s3151_s9  ;;  %1653 = vrot.lane.b32.xlu1 %v1063_v4, %s3152_s10  ;;  %v2106_v4 = vsel %vm2103_vm4, %v2073_v7, %v4186_v11  ;;  %v5744_v11 = vld [vmem:[#allocation8_spill] sm:$0xff]  ;;  %v5747_v7 = vld [vmem:[#allocation71_spill] sm:$0xff] }
 0x1bf   : > { %v1632_v41 = vpop.permute.xlu0 %1631  ;;  %v1977_v0 = vpop.permute.xlu1 %1976  ;;  %v2139_v22 = vsel %vm2136_vm5, %v2106_v4, %v4526_v13  ;;  %v1129_v4 = vmul.f32 %v5737_v1, %v5747_v7  ;;  %v5749_v1 = vld [vmem:[#allocation103_spill] sm:$0xff] }
 0x1c0   : > { %v2303_v23 = vsel %vm2301_vm10, %v2270_v63, %v1977_v0  ;;  %v2172_v48 = vsel %vm2169_vm6, %v2139_v22, %v1502_v58 }
 0x1c1   : > { %3053 = vmatmul.mubr.msk.f32.vlgmr.msra.gmra.mrb[0].mxu0 %vm2339_vm11, %v2303_v23  ;;  %v2205_v0 = vsel %vm2202_vm7, %v2172_v48, %v1630_v20  ;;  %v5745_v20 = vld [vmem:[#allocation105_spill] sm:$0xff] }
 0x1c2   : > { %2000 = vrot.lane.b32.xlu0 %v1128_v3, %s3155_s23  ;;  %1655 = vrot.lane.b32.xlu1 %v1064_v10, %s3152_s10  ;;  %v721_v3 = vmul.f32 %v5744_v11, %v5743_v2  ;;  %v5750_v2 = vld [vmem:[#allocation72_spill] sm:$0xff] }
 0x1c3   : > { %v1760_v33 = vpop.permute.xlu0 %1759  ;;  %v1758_v44 = vpop.permute.xlu1 %1757  ;;  %v1130_v11 = vmul.f32 %v5739_v59, %v5750_v2 }
 0x1c4   : > { %v2238_v23 = vsel %vm2235_vm8, %v2205_v0, %v1758_v44  ;;  %v2074_v12 = vsel %vm2070_vm3, %v721_v3, %v5745_v20  ;;  %v5751_v3 = vld [vmem:[#allocation70_spill] sm:$0xff] }
 0x1c5   : > { %v2107_v44 = vsel %vm2103_vm4, %v2074_v12, %v5746_v6  ;;  %v1099_v12 = vmul.f32 %v5668_v8, %v4343_v35  ;;  %v1030_v6 = vmul.f32 %v5674_v51, %v4343_v35  ;;  %v1100_v35 = vmul.f32 %v5673_v54, %v4358_v21 }
 0x1c6   : > { %1781 = vrot.lane.b32.xlu0 %v1097_v14, %s3153_s11  ;;  %1433 = vrot.lane.b32.xlu1 %v1028_v53, %s3150_s8  ;;  %v2140_v14 = vsel %vm2136_vm5, %v2107_v44, %v4538_v15 }
 0x1c7   : > { %v1506_v26 = vpop.permute.xlu0 %1505  ;;  %v1854_v63 = vpop.permute.xlu1 %1853  ;;  %v2173_v36 = vsel %vm2169_vm6, %v2140_v14, %v1504_v9  ;;  %v5748_v9 = vld [vmem:[#allocation69_spill] sm:$0xff] }
 0x1c8   : > { %v2271_v13 = vsel %vm2268_vm9, %v2238_v23, %v1854_v63  ;;  %v2206_v22 = vsel %vm2202_vm7, %v2173_v36, %v1632_v41  ;;  %v1065_v0 = vmul.f32 %v5748_v9, %v5747_v7  ;;  %v722_v41 = vmul.f32 %v3459_v19, %v5749_v1  ;;  %v5754_v36 = vld [vmem:[#allocation104_spill] sm:$0xff] }
 0x1c9   : > { %v2239_v63 = vsel %vm2235_vm8, %v2206_v22, %v1760_v33  ;;  %v5755_v22 = vld [vmem:[#allocation107_spill] sm:$0xff]  ;;  %v1031_v1 = vmul.f32 %v5678_v24, %v4358_v21  ;;  %v5759_v21 = vld [vmem:[#allocation109_spill] sm:$0xff] }
 0x1ca   : > { %1783 = vrot.lane.b32.xlu0 %v1098_v56, %s3153_s11  ;;  %1877 = vrot.lane.b32.xlu1 %v3562_v40, %s3154_s16 }
 0x1cb   : > { %v1979_v10 = vpop.permute.xlu0 %1978  ;;  %v1856_v50 = vpop.permute.xlu1 %1855 }
 0x1cc   : > { %v2304_v58 = vsel %vm2301_vm10, %v2271_v13, %v1979_v10  ;;  %v2272_v48 = vsel %vm2268_vm9, %v2239_v63, %v1856_v50  ;;  %v1066_v13 = vmul.f32 %v5751_v3, %v5750_v2  ;;  %v5752_v10 = vld [vmem:[#allocation106_spill] sm:$0xff]  ;;  %v5756_v63 = vld [vmem:[#allocation48_spill] sm:$0xff] }
 0x1cd   : > { %3055 = vmatprep.mubr.msk.f32.mxu0 %vm2339_vm11, %v2304_v58  ;;  %v2075_v50 = vsel %vm2070_vm3, %v722_v41, %v5752_v10  ;;  %v5753_v58 = vld [vmem:[#allocation113_spill] sm:$0xff]  ;;  %v5758_v10 = vld [vmem:[#allocation75_spill] sm:$0xff] }
 0x1ce   : > { %1435 = vrot.lane.b32.xlu0 %v1029_v52, %s3150_s8  ;;  %1529 = vrot.lane.b32.xlu1 %v3562_v40, %s3151_s9  ;;  %v2108_v52 = vsel %vm2103_vm4, %v2075_v50, %v5753_v58  ;;  %v5760_v58 = vld [vmem:[#allocation73_spill] sm:$0xff] }
 0x1cf   : > { %v1634_v53 = vpop.permute.xlu0 %1633  ;;  %v1508_v31 = vpop.permute.xlu1 %1507  ;;  %v2141_v19 = vsel %vm2136_vm5, %v2108_v52, %v4536_v61  ;;  %v723_v61 = vmul.f32 %v3456_v17, %v5754_v36  ;;  %v1067_v52 = vmul.f32 %v5760_v58, %v5758_v10 }
 0x1d0   : > { %v2174_v59 = vsel %vm2169_vm6, %v2141_v19, %v1506_v26  ;;  %v5761_v19 = vld [vmem:[#allocation108_spill] sm:$0xff] }
 0x1d1   : > { %v2207_v44 = vsel %vm2202_vm7, %v2174_v59, %v1634_v53  ;;  %v2076_v53 = vsel %vm2070_vm3, %v723_v61, %v5755_v22  ;;  %v5762_v59 = vld [vmem:[#allocation45_spill] sm:$0xff]  ;;  %v5764_v61 = vld [vmem:[#allocation74_spill] sm:$0xff] }
 0x1d2   : > { %1879 = vrot.lane.b32.xlu0 %v3578_v60, %s3154_s16  ;;  %2002 = vrot.lane.b32.xlu1 %v1129_v4, %s3155_s23  ;;  %v2109_v17 = vsel %vm2103_vm4, %v2076_v53, %v5756_v63  ;;  %v5765_v22 = vld [vmem:[#allocation46_spill] sm:$0xff] }
 0x1d3   : > { %v1636_v15 = vpop.permute.xlu0 %1635  ;;  %v1981_v40 = vpop.permute.xlu1 %1980  ;;  %v2144_v53 = vsel %vm2136_vm5, %v5765_v22, %v4557_v49  ;;  %v5766_v49 = vld [vmem:[#allocation21_spill] sm:$0xff] }
 0x1d4   : > { %v2305_v56 = vsel %vm2301_vm10, %v2272_v48, %v1981_v40  ;;  %v2142_v48 = vsel %vm2136_vm5, %v2109_v17, %v4548_v5  ;;  %v5757_v40 = vld [vmem:[#allocation18_spill] sm:$0xff] }
 0x1d5   : > { %3056 = vmatmul.mubr.msk.f32.gmra.mrb[2].mxu0 %vm2339_vm11, %v2305_v56  ;;  %v2175_v54 = vsel %vm2169_vm6, %v2142_v48, %v1508_v31  ;;  %v1131_v31 = vmul.f32 %v5748_v9, %v5758_v10 }
 0x1d6   : > { %1531 = vrot.lane.b32.xlu0 %v3578_v60, %s3151_s9  ;;  %1657 = vrot.lane.b32.xlu1 %v1065_v0, %s3152_s10  ;;  %v2208_v41 = vsel %vm2202_vm7, %v2175_v54, %v1636_v15  ;;  %v724_v15 = vmul.f32 %v3477_v30, %v5759_v21 }
 0x1d7   : > { %v1764_v33 = vpop.permute.xlu0 %1763  ;;  %v1762_v23 = vpop.permute.xlu1 %1761 }
 0x1d8   : > { %v2240_v14 = vsel %vm2235_vm8, %v2207_v44, %v1762_v23  ;;  %v2241_v23 = vsel %vm2235_vm8, %v2208_v41, %v1764_v33 }
 0x1da   : > { %2004 = vrot.lane.b32.xlu0 %v1130_v11, %s3155_s23  ;;  %1659 = vrot.lane.b32.xlu1 %v1066_v13, %s3152_s10 }
 0x1db   : > { %v1510_v60 = vpop.permute.xlu0 %1509  ;;  %v1858_v20 = vpop.permute.xlu1 %1857 }
 0x1dc   : > { %v2273_v7 = vsel %vm2268_vm9, %v2240_v14, %v1858_v20  ;;  %v2077_v20 = vsel %vm2070_vm3, %v724_v15, %v5761_v19  ;;  %v5763_v14 = vld [vmem:[#allocation76_spill] sm:$0xff] }
 0x1dd   : > { %v2110_v9 = vsel %vm2103_vm4, %v2077_v20, %v5762_v59  ;;  %v1132_v36 = vmul.f32 %v5751_v3, %v5763_v14  ;;  %v1101_v3 = vmul.f32 %v5674_v51, %v4369_v28  ;;  %v1102_v51 = vmul.f32 %v5678_v24, %v4383_v25 }
 0x1de   : > { %1785 = vrot.lane.b32.xlu0 %v1099_v12, %s3153_s11  ;;  %1437 = vrot.lane.b32.xlu1 %v1030_v6, %s3150_s8  ;;  %v2143_v12 = vsel %vm2136_vm5, %v2110_v9, %v4546_v16  ;;  %v5772_v9 = vld [vmem:[#allocation80_spill] sm:$0xff] }
 0x1df   : > { %v1983_v26 = vpop.permute.xlu0 %1982  ;;  %v1860_v4 = vpop.permute.xlu1 %1859  ;;  %v2176_v44 = vsel %vm2169_vm6, %v2143_v12, %v1510_v60  ;;  %v1134_v12 = vmul.f32 %v5764_v61, %v5772_v9 }
 0x1e0   : > { %v2306_v8 = vsel %vm2301_vm10, %v2273_v7, %v1983_v26  ;;  %v2274_v2 = vsel %vm2268_vm9, %v2241_v23, %v1860_v4  ;;  %v1068_v7 = vmul.f32 %v5764_v61, %v5763_v14  ;;  %v1103_v61 = vmul.f32 %v5679_v46, %v4395_v45 }
 0x1e1   : > { %3058 = vmatprep.mubr.msk.f32.mxu0 %vm2339_vm11, %v2306_v8 }
 0x1e2   : > { %1787 = vrot.lane.b32.xlu0 %v1100_v35, %s3153_s11  ;;  %1881 = vrot.lane.b32.xlu1 %v5757_v40, %s3154_s16  ;;  %v1032_v35 = vmul.f32 %v5679_v46, %v4369_v28 }
 0x1e3   : > { %v1638_v56 = vpop.permute.xlu0 %1637  ;;  %v1512_v0 = vpop.permute.xlu1 %1511 }
 0x1e4   : > { %v2209_v26 = vsel %vm2202_vm7, %v2176_v44, %v1638_v56  ;;  %v2177_v48 = vsel %vm2169_vm6, %v2144_v53, %v1512_v0  ;;  %v5767_v0 = vld [vmem:[#allocation22_spill] sm:$0xff]  ;;  %v5774_v44 = vld [vmem:[#allocation115_spill] sm:$0xff] }
 0x1e5   : > { %v1033_v23 = vmul.f32 %v5767_v0, %v4383_v25  ;;  %v2146_v14 = vsel %vm2136_vm5, %v5774_v44, %v4566_v55  ;;  %v1104_v46 = vmul.f32 %v5767_v0, %v4411_v37  ;;  %v5781_v0 = vld [vmem:[#allocation81_spill] sm:$0xff] }
 0x1e6   : > { %1439 = vrot.lane.b32.xlu0 %v1031_v1, %s3150_s8  ;;  %1533 = vrot.lane.b32.xlu1 %v5757_v40, %s3151_s9 }
 0x1e7   : > { %v1640_v5 = vpop.permute.xlu0 %1639  ;;  %v1985_v11 = vpop.permute.xlu1 %1984 }
 0x1e8   : > { %v2307_v13 = vsel %vm2301_vm10, %v2274_v2, %v1985_v11  ;;  %v2210_v40 = vsel %vm2202_vm7, %v2177_v48, %v1640_v5  ;;  %v5768_v5 = vld [vmem:[#allocation79_spill] sm:$0xff] }
 0x1e9   : > { %3059 = vmatmul.mubr.msk.f32.gmra.mrb[4].mxu0 %vm2339_vm11, %v2307_v13  ;;  %v1133_v11 = vmul.f32 %v5760_v58, %v5768_v5  ;;  %v5769_v13 = vld [vmem:[#allocation114_spill] sm:$0xff] }
 0x1ea   : > { %1883 = vrot.lane.b32.xlu0 %v3596_v29, %s3154_s16  ;;  %2006 = vrot.lane.b32.xlu1 %v1131_v31, %s3155_s23  ;;  %v2145_v10 = vsel %vm2136_vm5, %v5769_v13, %v4555_v57  ;;  %v5770_v31 = vld [vmem:[#allocation24_spill] sm:$0xff] }
 0x1eb   : > { %v1768_v33 = vpop.permute.xlu0 %1767  ;;  %v1766_v50 = vpop.permute.xlu1 %1765 }
 0x1ec   : > { %v2242_v4 = vsel %vm2235_vm8, %v2209_v26, %v1766_v50  ;;  %v2243_v28 = vsel %vm2235_vm8, %v2210_v40, %v1768_v33  ;;  %v5771_v33 = vld [vmem:[#allocation77_spill] sm:$0xff]  ;;  %v5778_v40 = vld [vmem:[#allocation83_spill] sm:$0xff] }
 0x1ed   : > { %v1069_v50 = vmul.f32 %v5771_v33, %v5768_v5  ;;  %v5782_v5 = vld [vmem:[#allocation117_spill] sm:$0xff] }
 0x1ee   : > { %1535 = vrot.lane.b32.xlu0 %v3596_v29, %s3151_s9  ;;  %1661 = vrot.lane.b32.xlu1 %v1067_v52, %s3152_s10 }
 0x1ef   : > { %v1514_v30 = vpop.permute.xlu0 %1513  ;;  %v1862_v6 = vpop.permute.xlu1 %1861 }
 0x1f0   : > { %v2275_v16 = vsel %vm2268_vm9, %v2242_v4, %v1862_v6  ;;  %v2178_v15 = vsel %vm2169_vm6, %v2145_v10, %v1514_v30  ;;  %v5773_v30 = vld [vmem:[#allocation78_spill] sm:$0xff]  ;;  %v5775_v4 = vld [vmem:[#allocation27_spill] sm:$0xff] }
 0x1f1   : > { %v1070_v6 = vmul.f32 %v5773_v30, %v5772_v9 }
 0x1f2   : > { %2008 = vrot.lane.b32.xlu0 %v1132_v36, %s3155_s23  ;;  %1663 = vrot.lane.b32.xlu1 %v1068_v7, %s3152_s10 }
 0x1f3   : > { %v1987_v29 = vpop.permute.xlu0 %1986  ;;  %v1864_v8 = vpop.permute.xlu1 %1863 }
 0x1f4   : > { %v2308_v60 = vsel %vm2301_vm10, %v2275_v16, %v1987_v29  ;;  %v2276_v56 = vsel %vm2268_vm9, %v2243_v28, %v1864_v8  ;;  %v1034_v16 = vmul.f32 %v5775_v4, %v4395_v45  ;;  %v5776_v45 = vld [vmem:[#allocation25_spill] sm:$0xff]  ;;  %v1135_v28 = vmul.f32 %v5771_v33, %v5778_v40  ;;  %v5784_v33 = vld [vmem:[#allocation82_spill] sm:$0xff] }
 0x1f5   : > { %3061 = vmatprep.mubr.msk.f32.mxu0 %vm2339_vm11, %v2308_v60 }
 0x1f6   : > { %1789 = vrot.lane.b32.xlu0 %v1101_v3, %s3153_s11  ;;  %1441 = vrot.lane.b32.xlu1 %v1032_v35, %s3150_s8 }
 0x1f7   : > { %v1642_v63 = vpop.permute.xlu0 %1641  ;;  %v1516_v17 = vpop.permute.xlu1 %1515 }
 0x1f8   : > { %v2211_v52 = vsel %vm2202_vm7, %v2178_v15, %v1642_v63  ;;  %v2179_v26 = vsel %vm2169_vm6, %v2146_v14, %v1516_v17  ;;  %v5777_v63 = vld [vmem:[#allocation26_spill] sm:$0xff] }
 0x1f9   : > { %v1035_v17 = vmul.f32 %v5777_v63, %v4411_v37  ;;  %v1106_v14 = vmul.f32 %v5777_v63, %v4440_v18 }
 0x1fa   : > { %1791 = vrot.lane.b32.xlu0 %v1102_v51, %s3153_s11  ;;  %1885 = vrot.lane.b32.xlu1 %v5766_v49, %s3154_s16 }
 0x1fb   : > { %v1644_v54 = vpop.permute.xlu0 %1643  ;;  %v1989_v1 = vpop.permute.xlu1 %1988 }
 0x1fc   : > { %v2309_v41 = vsel %vm2301_vm10, %v2276_v56, %v1989_v1  ;;  %v2212_v29 = vsel %vm2202_vm7, %v2179_v26, %v1644_v54  ;;  %v5779_v56 = vld [vmem:[#allocation116_spill] sm:$0xff] }
 0x1fd   : > { %3062 = vmatmul.mubr.msk.f32.gmra.mrb[6].mxu0 %vm2339_vm11, %v2309_v41  ;;  %v5780_v54 = vld [vmem:[#allocation28_spill] sm:$0xff] }
 0x1fe   : > { %1443 = vrot.lane.b32.xlu0 %v1033_v23, %s3150_s8  ;;  %1537 = vrot.lane.b32.xlu1 %v5766_v49, %s3151_s9  ;;  %v2147_v49 = vsel %vm2136_vm5, %v5779_v56, %v4564_v47  ;;  %v1071_v23 = vmul.f32 %v5781_v0, %v5778_v40  ;;  %v2148_v47 = vsel %vm2136_vm5, %v5782_v5, %v4575_v32 }
 0x1ff   : > { %v1772_v24 = vpop.permute.xlu0 %1771  ;;  %v1770_v2 = vpop.permute.xlu1 %1769 }
 0x200   : > { %v2244_v58 = vsel %vm2235_vm8, %v2211_v52, %v1770_v2  ;;  %v2245_v8 = vsel %vm2235_vm8, %v2212_v29, %v1772_v24 }
 0x202   : > { %1887 = vrot.lane.b32.xlu0 %v5770_v31, %s3154_s16  ;;  %2010 = vrot.lane.b32.xlu1 %v1133_v11, %s3155_s23 }
 0x203   : > { %v1518_v25 = vpop.permute.xlu0 %1517  ;;  %v1866_v21 = vpop.permute.xlu1 %1865 }
 0x204   : > { %v2277_v19 = vsel %vm2268_vm9, %v2244_v58, %v1866_v21  ;;  %v2180_v41 = vsel %vm2169_vm6, %v2147_v49, %v1518_v25  ;;  %v5783_v21 = vld [vmem:[#allocation84_spill] sm:$0xff] }
 0x205   : > { %v1136_v15 = vmul.f32 %v5773_v30, %v5783_v21 }
 0x206   : > { %1539 = vrot.lane.b32.xlu0 %v5770_v31, %s3151_s9  ;;  %1665 = vrot.lane.b32.xlu1 %v1069_v50, %s3152_s10  ;;  %v1072_v50 = vmul.f32 %v5784_v33, %v5783_v21 }
 0x207   : > { %v1991_v57 = vpop.permute.xlu0 %1990  ;;  %v1868_v20 = vpop.permute.xlu1 %1867 }
 0x208   : > { %v2310_v59 = vsel %vm2301_vm10, %v2277_v19, %v1991_v57  ;;  %v2278_v55 = vsel %vm2268_vm9, %v2245_v8, %v1868_v20  ;;  %v5789_v8 = vld [vmem:[#allocation87_spill] sm:$0xff] }
 0x209   : > { %3064 = vmatprep.mubr.msk.f32.mxu0 %vm2339_vm11, %v2310_v59  ;;  %v5785_v59 = vld [vmem:[#allocation19_spill] sm:$0xff] }
 0x20a   : > { %2012 = vrot.lane.b32.xlu0 %v1134_v12, %s3155_s23  ;;  %1667 = vrot.lane.b32.xlu1 %v1070_v6, %s3152_s10  ;;  %v1105_v9 = vmul.f32 %v5775_v4, %v5785_v59  ;;  %v5786_v12 = vld [vmem:[#allocation31_spill] sm:$0xff] }
 0x20b   : > { %v1646_v36 = vpop.permute.xlu0 %1645  ;;  %v1520_v7 = vpop.permute.xlu1 %1519  ;;  %v1036_v30 = vmul.f32 %v5786_v12, %v5785_v59  ;;  %v5800_v59 = vld [vmem:[#allocation36_spill] sm:$0xff] }
 0x20c   : > { %v2213_v24 = vsel %vm2202_vm7, %v2180_v41, %v1646_v36  ;;  %v2181_v31 = vsel %vm2169_vm6, %v2148_v47, %v1520_v7  ;;  %v5787_v36 = vld [vmem:[#allocation29_spill] sm:$0xff]  ;;  %v5795_v41 = vld [vmem:[#allocation86_spill] sm:$0xff] }
 0x20e   : > { %1793 = vrot.lane.b32.xlu0 %v1103_v61, %s3153_s11  ;;  %1445 = vrot.lane.b32.xlu1 %v1034_v16, %s3150_s8  ;;  %v5788_v61 = vld [vmem:[#allocation30_spill] sm:$0xff] }
 0x20f   : > { %v1648_v60 = vpop.permute.xlu0 %1647  ;;  %v1993_v3 = vpop.permute.xlu1 %1992  ;;  %v1037_v4 = vmul.f32 %v5788_v61, %v4440_v18  ;;  %v1108_v21 = vmul.f32 %v5788_v61, %v4468_v34 }
 0x210   : > { %v2311_v35 = vsel %vm2301_vm10, %v2278_v55, %v1993_v3  ;;  %v2214_v32 = vsel %vm2202_vm7, %v2181_v31, %v1648_v60  ;;  %v1137_v55 = vmul.f32 %v5781_v0, %v5789_v8  ;;  %v5790_v60 = vld [vmem:[#allocation118_spill] sm:$0xff] }
 0x211   : > { %3065 = vmatmul.mubr.msk.f32.gmra.mrb[8].mxu0 %vm2339_vm11, %v2311_v35  ;;  %v2149_v3 = vsel %vm2136_vm5, %v5790_v60, %v4573_v42  ;;  %v5791_v35 = vld [vmem:[#allocation32_spill] sm:$0xff] }
 0x212   : > { %1795 = vrot.lane.b32.xlu0 %v1104_v46, %s3153_s11  ;;  %1889 = vrot.lane.b32.xlu1 %v5776_v45, %s3154_s16 }
 0x213   : > { %v1776_v22 = vpop.permute.xlu0 %1775  ;;  %v1774_v53 = vpop.permute.xlu1 %1773 }
 0x214   : > { %v2246_v2 = vsel %vm2235_vm8, %v2213_v24, %v1774_v53  ;;  %v2247_v52 = vsel %vm2235_vm8, %v2214_v32, %v1776_v22  ;;  %v5792_v22 = vld [vmem:[#allocation85_spill] sm:$0xff] }
 0x215   : > { %v1073_v53 = vmul.f32 %v5792_v22, %v5789_v8 }
 0x216   : > { %1447 = vrot.lane.b32.xlu0 %v1035_v17, %s3150_s8  ;;  %1541 = vrot.lane.b32.xlu1 %v5776_v45, %s3151_s9 }
 0x217   : > { %v1428_v48 = vpop.permute.xlu0 %1427  ;;  %v1870_v51 = vpop.permute.xlu1 %1869 }
 0x218   : > { %v2279_v11 = vsel %vm2268_vm9, %v2246_v2, %v1870_v51  ;;  %v5793_v51 = vld [vmem:[#allocation13_spill] sm:$0xff] }
 0x219   : > { %v2150_v40 = vsel %vm2136_vm5, %v5793_v51, %v1428_v48 }
 0x21a   : > { %1891 = vrot.lane.b32.xlu0 %v5780_v54, %s3154_s16  ;;  %2014 = vrot.lane.b32.xlu1 %v1135_v28, %s3155_s23 }
 0x21b   : > { %v1872_v37 = vpop.permute.xlu0 %1871  ;;  %v1522_v1 = vpop.permute.xlu1 %1521 }
 0x21c   : > { %v2280_v58 = vsel %vm2268_vm9, %v2247_v52, %v1872_v37  ;;  %v2182_v45 = vsel %vm2169_vm6, %v2149_v3, %v1522_v1  ;;  %v5794_v37 = vld [vmem:[#allocation88_spill] sm:$0xff]  ;;  %v5804_v3 = vld [vmem:[#allocation90_spill] sm:$0xff] }
 0x21d   : > { %v1138_v1 = vmul.f32 %v5784_v33, %v5794_v37  ;;  %v1074_v0 = vmul.f32 %v5795_v41, %v5794_v37 }
 0x21e   : > { %1543 = vrot.lane.b32.xlu0 %v5780_v54, %s3151_s9  ;;  %1669 = vrot.lane.b32.xlu1 %v1071_v23, %s3152_s10 }
 0x21f   : > { %v1524_v13 = vpop.permute.xlu0 %1523  ;;  %v1995_v10 = vpop.permute.xlu1 %1994 }
 0x220   : > { %v2312_v25 = vsel %vm2301_vm10, %v2279_v11, %v1995_v10  ;;  %v2183_v49 = vsel %vm2169_vm6, %v2150_v40, %v1524_v13  ;;  %v1107_v11 = vmul.f32 %v5786_v12, %v4450_v27  ;;  %v5796_v13 = vld [vmem:[#allocation35_spill] sm:$0xff] }
 0x221   : > { %3067 = vmatprep.mubr.msk.f32.mxu0 %vm2339_vm11, %v2312_v25  ;;  %v1038_v10 = vmul.f32 %v5796_v13, %v4450_v27  ;;  %v1039_v27 = vmul.f32 %v5709_v62, %v4468_v34 }
 0x222   : > { %2016 = vrot.lane.b32.xlu0 %v1136_v15, %s3155_s23  ;;  %1671 = vrot.lane.b32.xlu1 %v1072_v50, %s3152_s10  ;;  %v5797_v15 = vld [vmem:[#allocation33_spill] sm:$0xff] }
 0x223   : > { %v1997_v19 = vpop.permute.xlu0 %1996  ;;  %v1650_v57 = vpop.permute.xlu1 %1649 }
 0x224   : > { %v2313_v20 = vsel %vm2301_vm10, %v2280_v58, %v1997_v19  ;;  %v2215_v63 = vsel %vm2202_vm7, %v2182_v45, %v1650_v57  ;;  %v5798_v58 = vld [vmem:[#allocation91_spill] sm:$0xff] }
 0x225   : > { %3068 = vmatmul.mubr.msk.f32.gmra.mrb[10].mxu0 %vm2339_vm11, %v2313_v20  ;;  %v1139_v19 = vmul.f32 %v5792_v22, %v5798_v58  ;;  %v5799_v57 = vld [vmem:[#allocation15_spill] sm:$0xff] }
 0x226   : > { %1797 = vrot.lane.b32.xlu0 %v1105_v9, %s3153_s11  ;;  %1449 = vrot.lane.b32.xlu1 %v1036_v30, %s3150_s8  ;;  %v5801_v30 = vld [vmem:[#allocation89_spill] sm:$0xff] }
 0x227   : > { %v1778_v6 = vpop.permute.xlu0 %1777  ;;  %v1652_v44 = vpop.permute.xlu1 %1651 }
 0x228   : > { %v2248_v17 = vsel %vm2235_vm8, %v2215_v63, %v1778_v6  ;;  %v2216_v48 = vsel %vm2202_vm7, %v2183_v49, %v1652_v44  ;;  %v1075_v6 = vmul.f32 %v5801_v30, %v5798_v58  ;;  %v1109_v63 = vmul.f32 %v5796_v13, %v4478_v43  ;;  %v5811_v13 = vld [vmem:[#allocation2_spill] sm:$0xff]  ;;  %v5813_v58 = vld [vmem:[#allocation96_spill] sm:$0xff] }
 0x22a   : > { %1799 = vrot.lane.b32.xlu0 %v1106_v14, %s3153_s11  ;;  %1893 = vrot.lane.b32.xlu1 %v5787_v36, %s3154_s16 }
 0x22b   : > { %v1780_v7 = vpop.permute.xlu0 %1779  ;;  %v1430_v26 = vpop.permute.xlu1 %1429 }
 0x22c   : > { %v2249_v23 = vsel %vm2235_vm8, %v2216_v48, %v1780_v7  ;;  %v2151_v20 = vsel %vm2136_vm5, %v5799_v57, %v1430_v26  ;;  %v5814_v57 = vld [vmem:[#allocation94_spill] sm:$0xff] }
 0x22e   : > { %1451 = vrot.lane.b32.xlu0 %v1037_v4, %s3150_s8  ;;  %1545 = vrot.lane.b32.xlu1 %v5787_v36, %s3151_s9  ;;  %v5802_v36 = vld [vmem:[#allocation51_spill] sm:$0xff] }
 0x22f   : > { %v1432_v16 = vpop.permute.xlu0 %1431  ;;  %v1874_v29 = vpop.permute.xlu1 %1873 }
 0x230   : > { %v2281_v42 = vsel %vm2268_vm9, %v2248_v17, %v1874_v29  ;;  %v2152_v7 = vsel %vm2136_vm5, %v5802_v36, %v1432_v16  ;;  %v1040_v17 = vmul.f32 %v5710_v38, %v4478_v43  ;;  %v5806_v43 = vld [vmem:[#allocation38_spill] sm:$0xff] }
 0x232   : > { %1895 = vrot.lane.b32.xlu0 %v5791_v35, %s3154_s16  ;;  %2018 = vrot.lane.b32.xlu1 %v1137_v55, %s3155_s23  ;;  %v5803_v55 = vld [vmem:[#allocation92_spill] sm:$0xff] }
 0x233   : > { %v1876_v18 = vpop.permute.xlu0 %1875  ;;  %v1526_v46 = vpop.permute.xlu1 %1525  ;;  %v1140_v60 = vmul.f32 %v5795_v41, %v5803_v55  ;;  %v5807_v41 = vld [vmem:[#allocation95_spill] sm:$0xff] }
 0x234   : > { %v2282_v24 = vsel %vm2268_vm9, %v2249_v23, %v1876_v18  ;;  %v2184_v12 = vsel %vm2169_vm6, %v2151_v20, %v1526_v46  ;;  %v5809_v23 = vld [vmem:[#allocation40_spill] sm:$0xff]  ;;  %v1078_v20 = vmul.f32 %v5814_v57, %v5813_v58 }
 0x236   : > { %1547 = vrot.lane.b32.xlu0 %v5791_v35, %s3151_s9  ;;  %1673 = vrot.lane.b32.xlu1 %v1073_v53, %s3152_s10  ;;  %v1076_v35 = vmul.f32 %v5804_v3, %v5803_v55 }
 0x237   : > { %v1528_v28 = vpop.permute.xlu0 %1527  ;;  %v1999_v56 = vpop.permute.xlu1 %1998 }
 0x238   : > { %v2314_v54 = vsel %vm2301_vm10, %v2281_v42, %v1999_v56  ;;  %v2185_v29 = vsel %vm2169_vm6, %v2152_v7, %v1528_v28  ;;  %v1110_v42 = vmul.f32 %v5709_v62, %v4502_v39  ;;  %v5805_v28 = vld [vmem:[#allocation37_spill] sm:$0xff]  ;;  %v1141_v62 = vmul.f32 %v5801_v30, %v5807_v41 }
 0x239   : > { %3070 = vmatprep.mubr.msk.f32.mxu0 %vm2339_vm11, %v2314_v54  ;;  %v1041_v54 = vmul.f32 %v5806_v43, %v4502_v39 }
 0x23a   : > { %2020 = vrot.lane.b32.xlu0 %v1138_v1, %s3155_s23  ;;  %1675 = vrot.lane.b32.xlu1 %v1074_v0, %s3152_s10  ;;  %v5808_v0 = vld [vmem:[#allocation14_spill] sm:$0xff] }
 0x23b   : > { %v2001_v2 = vpop.permute.xlu0 %2000  ;;  %v1654_v5 = vpop.permute.xlu1 %1653 }
 0x23c   : > { %v2315_v47 = vsel %vm2301_vm10, %v2282_v24, %v2001_v2  ;;  %v2217_v44 = vsel %vm2202_vm7, %v2184_v12, %v1654_v5  ;;  %v5810_v5 = vld [vmem:[#allocation93_spill] sm:$0xff] }
 0x23d   : > { %3071 = vmatmul.mubr.msk.f32.gmra.mrb[12].mxu0 %vm2339_vm11, %v2315_v47  ;;  %v1077_v47 = vmul.f32 %v5810_v5, %v5807_v41 }
 0x23e   : > { %1801 = vrot.lane.b32.xlu0 %v1107_v11, %s3153_s11  ;;  %1453 = vrot.lane.b32.xlu1 %v1038_v10, %s3150_s8  ;;  %v1006_v10 = vrot.slane %v5811_v13, 7 }
 0x23f   : > { %v1782_v31 = vpop.permute.xlu0 %1781  ;;  %v1656_v25 = vpop.permute.xlu1 %1655 }
 0x240   : > { %v2250_v14 = vsel %vm2235_vm8, %v2217_v44, %v1782_v31  ;;  %v2218_v16 = vsel %vm2202_vm7, %v2185_v29, %v1656_v25  ;;  %v5812_v25 = vld [vmem:[#allocation17_spill] sm:$0xff] }
 0x242   : > { %1803 = vrot.lane.b32.xlu0 %v1108_v21, %s3153_s11  ;;  %1897 = vrot.lane.b32.xlu1 %v5797_v15, %s3154_s16 }
 0x243   : > { %v1784_v33 = vpop.permute.xlu0 %1783  ;;  %v1434_v50 = vpop.permute.xlu1 %1433 }
 0x244   : > { %v2251_v18 = vsel %vm2235_vm8, %v2218_v16, %v1784_v33  ;;  %v2153_v48 = vsel %vm2136_vm5, %v5808_v0, %v1434_v50 }
 0x246   : > { %1455 = vrot.lane.b32.xlu0 %v1039_v27, %s3150_s8  ;;  %1549 = vrot.lane.b32.xlu1 %v5797_v15, %s3151_s9 }
 0x247   : > { %v1436_v32 = vpop.permute.xlu0 %1435  ;;  %v1878_v52 = vpop.permute.xlu1 %1877 }
 0x248   : > { %v2283_v26 = vsel %vm2268_vm9, %v2250_v14, %v1878_v52  ;;  %v2154_v21 = vsel %vm2136_vm5, %v5812_v25, %v1436_v32 }
 0x24a   : > { %1899 = vrot.lane.b32.xlu0 %v5800_v59, %s3154_s16  ;;  %2022 = vrot.lane.b32.xlu1 %v1139_v19, %s3155_s23  ;;  %v1142_v19 = vmul.f32 %v5804_v3, %v5813_v58  ;;  %v5818_v3 = vld [vmem:[#allocation41_spill] sm:$0xff] }
 0x24b   : > { %v1880_v9 = vpop.permute.xlu0 %1879  ;;  %v1530_v34 = vpop.permute.xlu1 %1529 }
 0x24c   : > { %v2284_v46 = vsel %vm2268_vm9, %v2251_v18, %v1880_v9  ;;  %v2186_v2 = vsel %vm2169_vm6, %v2153_v48, %v1530_v34  ;;  %v5816_v34 = vrot.slane %v5809_v23, 7  ;;  %v5823_v48 = vld [vmem:[#allocation5_spill] sm:$0xff] }
 0x24e   : > { %1551 = vrot.lane.b32.xlu0 %v5800_v59, %s3151_s9  ;;  %1677 = vrot.lane.b32.xlu1 %v1075_v6, %s3152_s10  ;;  %v5815_v59 = vld [vmem:[#allocation3_spill] sm:$0xff]  ;;  %v1007_v12 = vsel %vm467_vm1, %v5816_v34, %v1006_v10 }
 0x24f   : > { %v1532_v61 = vpop.permute.xlu0 %1531  ;;  %v2003_v4 = vpop.permute.xlu1 %2002  ;;  %v1008_v9 = vrot.slane %v5815_v59, 7  ;;  %v1111_v7 = vmul.f32 %v1007_v12, %v5710_v38 }
 0x250   : > { %v2316_v8 = vsel %vm2301_vm10, %v2283_v26, %v2003_v4  ;;  %v2187_v27 = vsel %vm2169_vm6, %v2154_v21, %v1532_v61  ;;  %v5817_v26 = vld [vmem:[#allocation42_spill] sm:$0xff] }
 0x251   : > { %3073 = vmatprep.mubr.msk.f32.mxu0 %vm2339_vm11, %v2316_v8  ;;  %v1042_v61 = vmul.f32 %v1007_v12, %v5817_v26  ;;  %v1009_v4 = vsel %vm467_vm1, %v1006_v10, %v1008_v9 }
 0x252   : > { %2024 = vrot.lane.b32.xlu0 %v1140_v60, %s3155_s23  ;;  %1679 = vrot.lane.b32.xlu1 %v1076_v35, %s3152_s10  ;;  %v1112_v55 = vmul.f32 %v1009_v4, %v5806_v43  ;;  %v1043_v35 = vmul.f32 %v1009_v4, %v5818_v3  ;;  %v5822_v43 = vld [vmem:[#allocation49_spill] sm:$0xff] }
 0x253   : > { %v2005_v45 = vpop.permute.xlu0 %2004  ;;  %v1658_v22 = vpop.permute.xlu1 %1657 }
 0x254   : > { %v2317_v53 = vsel %vm2301_vm10, %v2284_v46, %v2005_v45  ;;  %v2219_v11 = vsel %vm2202_vm7, %v2186_v2, %v1658_v22  ;;  %v5819_v46 = vld [vmem:[#allocation4_spill] sm:$0xff]  ;;  %v1082_v2 = vsel %vm467_vm1, %v1008_v9, 0.0 }
 0x255   : > { %3074 = vmatmul.mubr.msk.f32.gmra.mrb[14].mxu0 %vm2339_vm11, %v2317_v53  ;;  %v1143_v45 = vmul.f32 %v5819_v46, %v5810_v5  ;;  %v5820_v22 = vld [vmem:[#allocation52_spill] sm:$0xff]  ;;  %v1113_v25 = vmul.f32 %v1082_v2, %v5817_v26 }
 0x256   : > { %1805 = vrot.lane.b32.xlu0 %v1109_v63, %s3153_s11  ;;  %1457 = vrot.lane.b32.xlu1 %v1040_v17, %s3150_s8 }
 0x257   : > { %v1786_v51 = vpop.permute.xlu0 %1785  ;;  %v1660_v40 = vpop.permute.xlu1 %1659 }
 0x258   : > { %v2252_v31 = vsel %vm2235_vm8, %v2219_v11, %v1786_v51  ;;  %v2220_v32 = vsel %vm2202_vm7, %v2187_v27, %v1660_v40  ;;  %v5821_v40 = vld [vmem:[#allocation97_spill] sm:$0xff] }
 0x25a   : > { %1807 = vrot.lane.b32.xlu0 %v1110_v42, %s3153_s11  ;;  %1901 = vrot.lane.b32.xlu1 %v5805_v28, %s3154_s16  ;;  %v1079_v42 = vmul.f32 %v5819_v46, %v5821_v40 }
 0x25b   : > { %v1788_v56 = vpop.permute.xlu0 %1787  ;;  %v1438_v49 = vpop.permute.xlu1 %1437 }
 0x25c   : > { %v2253_v30 = vsel %vm2235_vm8, %v2220_v32, %v1788_v56  ;;  %v2155_v53 = vsel %vm2136_vm5, %v5820_v22, %v1438_v49 }
 0x25e   : > { %1459 = vrot.lane.b32.xlu0 %v1041_v54, %s3150_s8  ;;  %1553 = vrot.lane.b32.xlu1 %v5805_v28, %s3151_s9 }
 0x25f   : > { %v5001_v37 = vpop.permute.xlu0 %1439  ;;  %v1882_v1 = vpop.permute.xlu1 %1881 }
 0x260   : > { %v2285_v15 = vsel %vm2268_vm9, %v2252_v31, %v1882_v1  ;;  %v2156_v49 = vsel %vm2136_vm5, %v5822_v43, %v5001_v37  ;;  %v1114_v31 = vmul.f32 0.0, %v5818_v3 }
 0x262   : > { %1903 = vrot.lane.b32.xlu0 %v5809_v23, %s3154_s16  ;;  %2026 = vrot.lane.b32.xlu1 %v1141_v62, %s3155_s23 }
 0x263   : > { %v1884_v39 = vpop.permute.xlu0 %1883  ;;  %v1534_v24 = vpop.permute.xlu1 %1533 }
 0x264   : > { %v2286_v6 = vsel %vm2268_vm9, %v2253_v30, %v1884_v39  ;;  %v2188_v51 = vsel %vm2169_vm6, %v2155_v53, %v1534_v24  ;;  %v5824_v39 = vld [vmem:[#allocation98_spill] sm:$0xff] }
 0x265   : > { %v1080_v24 = vmul.f32 %v5823_v48, %v5824_v39  ;;  %v1146_v58 = vmul.f32 0.0, %v5824_v39 }
 0x266   : > { %1555 = vrot.lane.b32.xlu0 %v5809_v23, %s3151_s9  ;;  %1681 = vrot.lane.b32.xlu1 %v1077_v47, %s3152_s10  ;;  %v1144_v23 = vmul.f32 %v5823_v48, %v5814_v57 }
 0x267   : > { %v1536_v33 = vpop.permute.xlu0 %1535  ;;  %v2007_v50 = vpop.permute.xlu1 %2006 }
 0x268   : > { %v2318_v52 = vsel %vm2301_vm10, %v2285_v15, %v2007_v50  ;;  %v2189_v62 = vsel %vm2169_vm6, %v2156_v49, %v1536_v33  ;;  %v1145_v33 = vmul.f32 0.0, %v5821_v40  ;;  %v5825_v50 = vmov 0.0  }
 0x269   : > { %3076 = vmatprep.mubr.msk.f32.mxu1 %vm2339_vm11, %v2318_v52 }
 0x26a   : > { %2028 = vrot.lane.b32.xlu0 %v1142_v19, %s3155_s23  ;;  %1683 = vrot.lane.b32.xlu1 %v1078_v20, %s3152_s10  ;;  %v5826_v20 = vld [vmem:[#allocation16_spill] sm:$0xff] }
 0x26b   : > { %v2009_v44 = vpop.permute.xlu0 %2008  ;;  %v1662_v14 = vpop.permute.xlu1 %1661 }
 0x26c   : > { %v2319_v36 = vsel %vm2301_vm10, %v2286_v6, %v2009_v44  ;;  %v2221_v28 = vsel %vm2202_vm7, %v2188_v51, %v1662_v14 }
 0x26d   : > { %3077 = vmatmul.mubr.msk.f32.vlgmr.msra.gmra.mrb[0].mxu1 %vm2339_vm11, %v2319_v36 }
 0x26e   : > { %1809 = vrot.lane.b32.xlu0 %v1111_v7, %s3153_s11  ;;  %1461 = vrot.lane.b32.xlu1 %v1042_v61, %s3150_s8  ;;  %v5827_v61 = vld [vmem:[#allocation20_spill] sm:$0xff] }
 0x26f   : > { %v1790_v29 = vpop.permute.xlu0 %1789  ;;  %v1664_v8 = vpop.permute.xlu1 %1663 }
 0x270   : > { %v2254_v56 = vsel %vm2235_vm8, %v2221_v28, %v1790_v29  ;;  %v2222_v37 = vsel %vm2202_vm7, %v2189_v62, %v1664_v8 }
 0x272   : > { %1811 = vrot.lane.b32.xlu0 %v1112_v55, %s3153_s11  ;;  %1905 = vrot.lane.b32.xlu1 %v5811_v13, %s3154_s16 }
 0x273   : > { %v1792_v38 = vpop.permute.xlu0 %1791  ;;  %v1442_v60 = vpop.permute.xlu1 %1441 }
 0x274   : > { %v2255_v5 = vsel %vm2235_vm8, %v2222_v37, %v1792_v38  ;;  %v2157_v32 = vsel %vm2136_vm5, %v5826_v20, %v1442_v60 }
 0x276   : > { %1463 = vrot.lane.b32.xlu0 %v1043_v35, %s3150_s8  ;;  %1557 = vrot.lane.b32.xlu1 %v5811_v13, %s3151_s9  ;;  %s262_s8 = scalar_lea.vmem %s5348_s6, %s2965_s27 }
 0x277   : > { %v5053_v16 = vpop.permute.xlu0 %1443  ;;  %v1886_v18 = vpop.permute.xlu1 %1885 }
 0x278   : > { %v2287_v54 = vsel %vm2268_vm9, %v2254_v56, %v1886_v18  ;;  %v2158_v4 = vsel %vm2136_vm5, %v5827_v61, %v5053_v16 }
 0x27a   : > { %1907 = vrot.lane.b32.xlu0 %v5815_v59, %s3154_s16  ;;  %2030 = vrot.lane.b32.xlu1 %v1143_v45, %s3155_s23 }
 0x27b   : > { %v1888_v63 = vpop.permute.xlu0 %1887  ;;  %v1538_v17 = vpop.permute.xlu1 %1537 }
 0x27c   : > { %v2288_v47 = vsel %vm2268_vm9, %v2255_v5, %v1888_v63  ;;  %v2190_v34 = vsel %vm2169_vm6, %v2157_v32, %v1538_v17 }
 0x27e   : > { %1559 = vrot.lane.b32.xlu0 %v5815_v59, %s3151_s9  ;;  %1685 = vrot.lane.b32.xlu1 %v1079_v42, %s3152_s10 }
 0x27f   : > { %v1540_v1 = vpop.permute.xlu0 %1539  ;;  %v2011_v41 = vpop.permute.xlu1 %2010 }
 0x280   : > { %v2320_v0 = vsel %vm2301_vm10, %v2287_v54, %v2011_v41  ;;  %v2191_v3 = vsel %vm2169_vm6, %v2158_v4, %v1540_v1 }
 0x281   : > { %3079 = vmatprep.mubr.msk.f32.mxu1 %vm2339_vm11, %v2320_v0  ;;  %v5828_v0 = vld [vmem:[#allocation50_spill] sm:$0xff] }
 0x282   : > { %2032 = vrot.lane.b32.xlu0 %v1144_v23, %s3155_s23  ;;  %1687 = vrot.lane.b32.xlu1 %v1080_v24, %s3152_s10 }
 0x283   : > { %v2013_v11 = vpop.permute.xlu0 %2012  ;;  %v1666_v13 = vpop.permute.xlu1 %1665 }
 0x284   : > { %v2321_v10 = vsel %vm2301_vm10, %v2288_v47, %v2013_v11  ;;  %v2223_v30 = vsel %vm2202_vm7, %v2190_v34, %v1666_v13 }
 0x285   : > { %3080 = vmatmul.mubr.msk.f32.gmra.mrb[2].mxu1 %vm2339_vm11, %v2321_v10 }
 0x286   : > { %1813 = vrot.lane.b32.xlu0 %v1113_v25, %s3153_s11  ;;  %1815 = vrot.lane.b32.xlu1 %v1114_v31, %s3153_s11  ;;  %v5829_v25 = vld [vmem:[#allocation23_spill] sm:$0xff] }
 0x287   : > { %v1794_v21 = vpop.permute.xlu0 %1793  ;;  %v1668_v15 = vpop.permute.xlu1 %1667 }
 0x288   : > { %v2256_v36 = vsel %vm2235_vm8, %v2223_v30, %v1794_v21  ;;  %v2224_v46 = vsel %vm2202_vm7, %v2191_v3, %v1668_v15 }
 0x28a   : > { %1909 = vrot.lane.b32.xlu0 %v5825_v50, %s3154_s16  ;;  %2034 = vrot.lane.b32.xlu1 %v1145_v33, %s3155_s23 }
 0x28b   : > { %v1796_v27 = vpop.permute.xlu0 %1795  ;;  %v1446_v52 = vpop.permute.xlu1 %1445 }
 0x28c   : > { %v2257_v16 = vsel %vm2235_vm8, %v2224_v46, %v1796_v27  ;;  %v2159_v48 = vsel %vm2136_vm5, %v5828_v0, %v1446_v52 }
 0x28e   : > { %2036 = vrot.lane.b32.xlu0 %v1146_v58, %s3155_s23 }
 0x28f   : > { %v1448_v19 = vpop.permute.xlu0 %1447  ;;  %v1890_v57 = vpop.permute.xlu1 %1889 }
 0x290   : > { %v2289_v29 = vsel %vm2268_vm9, %v2256_v36, %v1890_v57  ;;  %v2160_v21 = vsel %vm2136_vm5, %v5829_v25, %v1448_v19 }
 0x293   : > { %v1892_v59 = vpop.permute.xlu0 %1891  ;;  %v1542_v9 = vpop.permute.xlu1 %1541 }
 0x294   : > { %v3054_v12 = vpop.f32.mrb[0].mxu0  ;;  %v2290_v22 = vsel %vm2268_vm9, %v2257_v16, %v1892_v59  ;;  %v2192_v37 = vsel %vm2169_vm6, %v2159_v48, %v1542_v9 }
 0x295   : > { %2666 = vst.msk [vmem:[%s5104_s29 + $0x8] sm:$0xff] %vm2070_vm3, %v3054_v12  ;;  %v2698_v6 = vsel %vm2070_vm3, %v3054_v12, 0.0  ;;  %v2767_v44 = vmul.f32 %v3054_v12, %v3054_v12  ;;  %v2506_v14 = vpop.f32.mrb[1].mxu0 }
 0x296   : > { %2665 = vst.msk [vmem:[%s5104_s29] sm:$0xff] %vm2070_vm3, %v2506_v14  ;;  %v2697_v7 = vsel %vm2070_vm3, %v2506_v14, 0.0  ;;  %v2766_v26 = vmul.f32 %v2506_v14, %v2506_v14 }
 0x297   : > { %v2799_v8 = vsel %vm2070_vm3, %v2767_v44, 0.0  ;;  %v2699_v55 = vadd.f32 %v2698_v6, %v2697_v7  ;;  %v1544_v38 = vpop.permute.xlu0 %1543  ;;  %v2015_v60 = vpop.permute.xlu1 %2014 }
 0x298   : > { %v2798_v35 = vsel %vm2070_vm3, %v2766_v26, 0.0  ;;  %v2322_v18 = vsel %vm2301_vm10, %v2289_v29, %v2015_v60  ;;  %v2193_v52 = vsel %vm2169_vm6, %v2160_v21, %v1544_v38 }
 0x299   : > { %v2800_v45 = vadd.f32 %v2799_v8, %v2798_v35  ;;  %3082 = vmatprep.mubr.msk.f32.mxu1 %vm2339_vm11, %v2322_v18  ;;  %v5830_v35 = vld [vmem:[#allocation10_spill] sm:$0xff] }
 0x29b   : > { %v2017_v53 = vpop.permute.xlu0 %2016  ;;  %v1670_v63 = vpop.permute.xlu1 %1669 }
 0x29c   : > { %v2323_v17 = vsel %vm2301_vm10, %v2290_v22, %v2017_v53  ;;  %v2225_v47 = vsel %vm2202_vm7, %v2192_v37, %v1670_v63 }
 0x29d   : > { %3083 = vmatmul.mubr.msk.f32.gmra.mrb[4].mxu1 %vm2339_vm11, %v2323_v17  ;;  %v5831_v17 = vld [vmem:[#allocation55_spill] sm:$0xff] }
 0x29f   : > { %v1798_v51 = vpop.permute.xlu0 %1797  ;;  %v1672_v40 = vpop.permute.xlu1 %1671 }
 0x2a0   : > { %v2258_v10 = vsel %vm2235_vm8, %v2225_v47, %v1798_v51  ;;  %v2226_v57 = vsel %vm2202_vm7, %v2193_v52, %v1672_v40  ;;  %v5832_v52 = vld [vmem:[#allocation110_spill] sm:$0xff] }
 0x2a3   : > { %v1800_v42 = vpop.permute.xlu0 %1799  ;;  %v1450_v28 = vpop.permute.xlu1 %1449 }
 0x2a4   : > { %v2259_v20 = vsel %vm2235_vm8, %v2226_v57, %v1800_v42  ;;  %v2161_v18 = vsel %vm2136_vm5, %v5830_v35, %v1450_v28 }
 0x2a7   : > { %v5131_v56 = vpop.permute.xlu0 %1451  ;;  %v1894_v43 = vpop.permute.xlu1 %1893 }
 0x2a8   : > { %v3057_v49 = vpop.f32.mrb[2].mxu0  ;;  %v2291_v15 = vsel %vm2268_vm9, %v2258_v10, %v1894_v43  ;;  %v2162_v51 = vsel %vm2136_vm5, %v5831_v17, %v5131_v56 }
 0x2a9   : > { %2668 = vst.msk [vmem:[%s5104_s29 + $0x18] sm:$0xff] %vm2070_vm3, %v3057_v49  ;;  %v2516_v54 = vpop.f32.mrb[3].mxu0  ;;  %v2769_v1 = vmul.f32 %v3057_v49, %v3057_v49  ;;  %v2702_v2 = vsel %vm2070_vm3, %v3057_v49, 0.0 }
 0x2aa   : > { %2667 = vst.msk [vmem:[%s5104_s29 + $0x10] sm:$0xff] %vm2070_vm3, %v2516_v54  ;;  %v2700_v41 = vsel %vm2070_vm3, %v2516_v54, 0.0  ;;  %v2768_v62 = vmul.f32 %v2516_v54, %v2516_v54 }
 0x2ab   : > { %v2701_v23 = vadd.f32 %v2700_v41, %v2699_v55  ;;  %v1896_v39 = vpop.permute.xlu0 %1895  ;;  %v1546_v24 = vpop.permute.xlu1 %1545  ;;  %v2803_v31 = vsel %vm2070_vm3, %v2769_v1, 0.0 }
 0x2ac   : > { %v2801_v5 = vsel %vm2070_vm3, %v2768_v62, 0.0  ;;  %v2292_v32 = vsel %vm2268_vm9, %v2259_v20, %v1896_v39  ;;  %v2194_v22 = vsel %vm2169_vm6, %v2161_v18, %v1546_v24 }
 0x2ad   : > { %v2802_v11 = vadd.f32 %v2801_v5, %v2800_v45  ;;  %v2703_v13 = vadd.f32 %v2702_v2, %v2701_v23 }
 0x2af   : > { %v1548_v33 = vpop.permute.xlu0 %1547  ;;  %v2019_v50 = vpop.permute.xlu1 %2018  ;;  %v2804_v27 = vadd.f32 %v2803_v31, %v2802_v11 }
 0x2b0   : > { %v2324_v58 = vsel %vm2301_vm10, %v2291_v15, %v2019_v50  ;;  %v2195_v28 = vsel %vm2169_vm6, %v2162_v51, %v1548_v33 }
 0x2b1   : > { %3085 = vmatprep.mubr.msk.f32.mxu1 %vm2339_vm11, %v2324_v58 }
 0x2b3   : > { %v2021_v19 = vpop.permute.xlu0 %2020  ;;  %v1674_v59 = vpop.permute.xlu1 %1673 }
 0x2b4   : > { %v2325_v9 = vsel %vm2301_vm10, %v2292_v32, %v2021_v19  ;;  %v2227_v53 = vsel %vm2202_vm7, %v2194_v22, %v1674_v59 }
 0x2b5   : > { %3086 = vmatmul.mubr.msk.f32.gmra.mrb[6].mxu1 %vm2339_vm11, %v2325_v9  ;;  %v5833_v9 = vld [vmem:[#allocation56_spill] sm:$0xff] }
 0x2b7   : > { %v1802_v34 = vpop.permute.xlu0 %1801  ;;  %v1676_v12 = vpop.permute.xlu1 %1675 }
 0x2b8   : > { %v2260_v63 = vsel %vm2235_vm8, %v2227_v53, %v1802_v34  ;;  %v2228_v54 = vsel %vm2202_vm7, %v2195_v28, %v1676_v12  ;;  %v5834_v28 = vld [vmem:[#allocation53_spill] sm:$0xff] }
 0x2bb   : > { %v1804_v30 = vpop.permute.xlu0 %1803  ;;  %v1454_v6 = vpop.permute.xlu1 %1453 }
 0x2bc   : > { %v3060_v44 = vpop.f32.mrb[4].mxu0  ;;  %v2261_v1 = vsel %vm2235_vm8, %v2228_v54, %v1804_v30  ;;  %v2163_v58 = vsel %vm2136_vm5, %v5832_v52, %v1454_v6 }
 0x2bd   : > { %2670 = vst.msk [vmem:[%s5104_s29 + $0x28] sm:$0xff] %vm2070_vm3, %v3060_v44  ;;  %v2526_v14 = vpop.f32.mrb[5].mxu0  ;;  %v2771_v36 = vmul.f32 %v3060_v44, %v3060_v44  ;;  %v2706_v8 = vsel %vm2070_vm3, %v3060_v44, 0.0 }
 0x2be   : > { %2669 = vst.msk [vmem:[%s5104_s29 + $0x20] sm:$0xff] %vm2070_vm3, %v2526_v14  ;;  %v2704_v7 = vsel %vm2070_vm3, %v2526_v14, 0.0  ;;  %v2770_v26 = vmul.f32 %v2526_v14, %v2526_v14 }
 0x2bf   : > { %v2705_v61 = vadd.f32 %v2704_v7, %v2703_v13  ;;  %v1456_v4 = vpop.permute.xlu0 %1455  ;;  %v1898_v29 = vpop.permute.xlu1 %1897  ;;  %v2807_v3 = vsel %vm2070_vm3, %v2771_v36, 0.0 }
 0x2c0   : > { %v2805_v55 = vsel %vm2070_vm3, %v2770_v26, 0.0  ;;  %v2293_v40 = vsel %vm2268_vm9, %v2260_v63, %v1898_v29  ;;  %v2164_v34 = vsel %vm2136_vm5, %v5833_v9, %v1456_v4 }
 0x2c1   : > { %v2806_v38 = vadd.f32 %v2805_v55, %v2804_v27  ;;  %v2707_v60 = vadd.f32 %v2706_v8, %v2705_v61 }
 0x2c3   : > { %v1900_v46 = vpop.permute.xlu0 %1899  ;;  %v1550_v45 = vpop.permute.xlu1 %1549  ;;  %v2808_v16 = vadd.f32 %v2807_v3, %v2806_v38 }
 0x2c4   : > { %v2294_v41 = vsel %vm2268_vm9, %v2261_v1, %v1900_v46  ;;  %v2196_v32 = vsel %vm2169_vm6, %v2163_v58, %v1550_v45 }
 0x2c7   : > { %v1552_v42 = vpop.permute.xlu0 %1551  ;;  %v2023_v43 = vpop.permute.xlu1 %2022 }
 0x2c8   : > { %v2326_v49 = vsel %vm2301_vm10, %v2293_v40, %v2023_v43  ;;  %v2197_v14 = vsel %vm2169_vm6, %v2164_v34, %v1552_v42  ;;  %v5836_v34 = vld [vmem:[#allocation34_spill] sm:$0xff] }
 0x2c9   : > { %3088 = vmatprep.mubr.msk.f32.mxu1 %vm2339_vm11, %v2326_v49 }
 0x2cb   : > { %v2025_v62 = vpop.permute.xlu0 %2024  ;;  %v1678_v56 = vpop.permute.xlu1 %1677 }
 0x2cc   : > { %v2327_v0 = vsel %vm2301_vm10, %v2294_v41, %v2025_v62  ;;  %v2229_v19 = vsel %vm2202_vm7, %v2196_v32, %v1678_v56 }
 0x2cd   : > { %3089 = vmatmul.mubr.msk.f32.gmra.mrb[8].mxu1 %vm2339_vm11, %v2327_v0  ;;  %v5835_v0 = vld [vmem:[#allocation111_spill] sm:$0xff] }
 0x2cf   : > { %v1806_v48 = vpop.permute.xlu0 %1805  ;;  %v1680_v23 = vpop.permute.xlu1 %1679 }
 0x2d0   : > { %v3063_v39 = vpop.f32.mrb[6].mxu0  ;;  %v2262_v59 = vsel %vm2235_vm8, %v2229_v19, %v1806_v48  ;;  %v2230_v36 = vsel %vm2202_vm7, %v2197_v14, %v1680_v23 }
 0x2d1   : > { %2672 = vst.msk [vmem:[%s5104_s29 + $0x38] sm:$0xff] %vm2070_vm3, %v3063_v39  ;;  %v2536_v24 = vpop.f32.mrb[7].mxu0  ;;  %v2773_v37 = vmul.f32 %v3063_v39, %v3063_v39  ;;  %v2710_v10 = vsel %vm2070_vm3, %v3063_v39, 0.0 }
 0x2d2   : > { %2671 = vst.msk [vmem:[%s5104_s29 + $0x30] sm:$0xff] %vm2070_vm3, %v2536_v24  ;;  %v2708_v2 = vsel %vm2070_vm3, %v2536_v24, 0.0  ;;  %v2772_v5 = vmul.f32 %v2536_v24, %v2536_v24 }
 0x2d3   : > { %v2709_v47 = vadd.f32 %v2708_v2, %v2707_v60  ;;  %v1808_v11 = vpop.permute.xlu0 %1807  ;;  %v1458_v13 = vpop.permute.xlu1 %1457  ;;  %v2811_v15 = vsel %vm2070_vm3, %v2773_v37, 0.0 }
 0x2d4   : > { %v2809_v31 = vsel %vm2070_vm3, %v2772_v5, 0.0  ;;  %v2263_v7 = vsel %vm2235_vm8, %v2230_v36, %v1808_v11  ;;  %v2165_v49 = vsel %vm2136_vm5, %v5834_v28, %v1458_v13 }
 0x2d5   : > { %v2810_v25 = vadd.f32 %v2809_v31, %v2808_v16  ;;  %v2711_v21 = vadd.f32 %v2710_v10, %v2709_v47 }
 0x2d7   : > { %v1460_v33 = vpop.permute.xlu0 %1459  ;;  %v1902_v50 = vpop.permute.xlu1 %1901  ;;  %v2812_v27 = vadd.f32 %v2811_v15, %v2810_v25 }
 0x2d8   : > { %v2295_v12 = vsel %vm2268_vm9, %v2262_v59, %v1902_v50  ;;  %v2166_v48 = vsel %vm2136_vm5, %v5835_v0, %v1460_v33 }
 0x2db   : > { %v1904_v57 = vpop.permute.xlu0 %1903  ;;  %v1554_v20 = vpop.permute.xlu1 %1553 }
 0x2dc   : > { %v2296_v26 = vsel %vm2268_vm9, %v2263_v7, %v1904_v57  ;;  %v2198_v41 = vsel %vm2169_vm6, %v2165_v49, %v1554_v20 }
 0x2df   : > { %v1556_v30 = vpop.permute.xlu0 %1555  ;;  %v2027_v44 = vpop.permute.xlu1 %2026 }
 0x2e0   : > { %v2328_v6 = vsel %vm2301_vm10, %v2295_v12, %v2027_v44  ;;  %v2199_v37 = vsel %vm2169_vm6, %v2166_v48, %v1556_v30  ;;  %v5837_v44 = vld [vmem:[#allocation112_spill] sm:$0xff] }
 0x2e1   : > { %3091 = vmatprep.mubr.msk.f32.mxu1 %vm2339_vm11, %v2328_v6 }
 0x2e3   : > { %v2029_v61 = vpop.permute.xlu0 %2028  ;;  %v1682_v29 = vpop.permute.xlu1 %1681 }
 0x2e4   : > { %v2329_v4 = vsel %vm2301_vm10, %v2296_v26, %v2029_v61  ;;  %v3066_v8 = vpop.f32.mrb[8].mxu0  ;;  %v2231_v62 = vsel %vm2202_vm7, %v2198_v41, %v1682_v29 }
 0x2e5   : > { %2674 = vst.msk [vmem:[%s5104_s29 + $0x48] sm:$0xff] %vm2070_vm3, %v3066_v8  ;;  %v2546_v55 = vpop.f32.mrb[9].mxu0  ;;  %3092 = vmatmul.mubr.msk.f32.gmra.mrb[10].mxu1 %vm2339_vm11, %v2329_v4  ;;  %v2775_v38 = vmul.f32 %v3066_v8, %v3066_v8  ;;  %v2714_v45 = vsel %vm2070_vm3, %v3066_v8, 0.0 }
 0x2e6   : > { %2673 = vst.msk [vmem:[%s5104_s29 + $0x40] sm:$0xff] %vm2070_vm3, %v2546_v55  ;;  %v2712_v60 = vsel %vm2070_vm3, %v2546_v55, 0.0  ;;  %v2774_v3 = vmul.f32 %v2546_v55, %v2546_v55 }
 0x2e7   : > { %v2713_v35 = vadd.f32 %v2712_v60, %v2711_v21  ;;  %v1810_v18 = vpop.permute.xlu0 %1809  ;;  %v1684_v46 = vpop.permute.xlu1 %1683  ;;  %v2815_v63 = vsel %vm2070_vm3, %v2775_v38, 0.0 }
 0x2e8   : > { %v2813_v16 = vsel %vm2070_vm3, %v2774_v3, 0.0  ;;  %v2264_v56 = vsel %vm2235_vm8, %v2231_v62, %v1810_v18  ;;  %v2232_v47 = vsel %vm2202_vm7, %v2199_v37, %v1684_v46 }
 0x2e9   : > { %v2814_v22 = vadd.f32 %v2813_v16, %v2812_v27  ;;  %v2715_v53 = vadd.f32 %v2714_v45, %v2713_v35 }
 0x2eb   : > { %v1812_v17 = vpop.permute.xlu0 %1811  ;;  %v1462_v51 = vpop.permute.xlu1 %1461  ;;  %v2816_v40 = vadd.f32 %v2815_v63, %v2814_v22 }
 0x2ec   : > { %v2265_v13 = vsel %vm2235_vm8, %v2232_v47, %v1812_v17  ;;  %v2167_v14 = vsel %vm2136_vm5, %v5837_v44, %v1462_v51 }
 0x2ef   : > { %v1464_v42 = vpop.permute.xlu0 %1463  ;;  %v1906_v43 = vpop.permute.xlu1 %1905 }
 0x2f0   : > { %v2297_v23 = vsel %vm2268_vm9, %v2264_v56, %v1906_v43  ;;  %v2168_v12 = vsel %vm2136_vm5, %v5836_v34, %v1464_v42 }
 0x2f3   : > { %v1908_v54 = vpop.permute.xlu0 %1907  ;;  %v1558_v1 = vpop.permute.xlu1 %1557 }
 0x2f4   : > { %v2298_v21 = vsel %vm2268_vm9, %v2265_v13, %v1908_v54  ;;  %v2200_v26 = vsel %vm2169_vm6, %v2167_v14, %v1558_v1 }
 0x2f7   : > { %v1560_v39 = vpop.permute.xlu0 %1559  ;;  %v2031_v24 = vpop.permute.xlu1 %2030 }
 0x2f8   : > { %v2330_v2 = vsel %vm2301_vm10, %v2297_v23, %v2031_v24  ;;  %v3069_v5 = vpop.f32.mrb[10].mxu0  ;;  %v2201_v30 = vsel %vm2169_vm6, %v2168_v12, %v1560_v39 }
 0x2f9   : > { %2676 = vst.msk [vmem:[%s5104_s29 + $0x58] sm:$0xff] %vm2070_vm3, %v3069_v5  ;;  %v2556_v11 = vpop.f32.mrb[11].mxu0  ;;  %3094 = vmatprep.mubr.msk.f32.mxu1 %vm2339_vm11, %v2330_v2  ;;  %v2777_v10 = vmul.f32 %v3069_v5, %v3069_v5  ;;  %v2718_v27 = vsel %vm2070_vm3, %v3069_v5, 0.0 }
 0x2fa   : > { %2675 = vst.msk [vmem:[%s5104_s29 + $0x50] sm:$0xff] %vm2070_vm3, %v2556_v11  ;;  %v2716_v31 = vsel %vm2070_vm3, %v2556_v11, 0.0  ;;  %v2776_v25 = vmul.f32 %v2556_v11, %v2556_v11 }
 0x2fb   : > { %v2717_v15 = vadd.f32 %v2716_v31, %v2715_v53  ;;  %v2033_v33 = vpop.permute.xlu0 %2032  ;;  %v1686_v50 = vpop.permute.xlu1 %1685  ;;  %v2819_v32 = vsel %vm2070_vm3, %v2777_v10, 0.0 }
 0x2fc   : > { %v2817_v52 = vsel %vm2070_vm3, %v2776_v25, 0.0  ;;  %v2331_v58 = vsel %vm2301_vm10, %v2298_v21, %v2033_v33  ;;  %v2233_v29 = vsel %vm2202_vm7, %v2200_v26, %v1686_v50 }
 0x2fd   : > { %v2818_v57 = vadd.f32 %v2817_v52, %v2816_v40  ;;  %3095 = vmatmul.mubr.msk.f32.gmra.mrb[12].mxu1 %vm2339_vm11, %v2331_v58  ;;  %v2719_v20 = vadd.f32 %v2718_v27, %v2717_v15 }
 0x2ff   : > { %v1814_v19 = vpop.permute.xlu0 %1813  ;;  %v1688_v59 = vpop.permute.xlu1 %1687  ;;  %v2820_v9 = vadd.f32 %v2819_v32, %v2818_v57 }
 0x300   : > { %v2234_v6 = vsel %vm2202_vm7, %v2201_v30, %v1688_v59  ;;  %v2266_v4 = vsel %vm2235_vm8, %v2233_v29, %v1814_v19 }
 0x303   : > { %v1910_v36 = vpop.permute.xlu0 %1909  ;;  %v1816_v7 = vpop.permute.xlu1 %1815 }
 0x304   : > { %v2267_v61 = vsel %vm2235_vm8, %v2234_v6, %v1816_v7  ;;  %v2299_v8 = vsel %vm2268_vm9, %v2266_v4, %v1910_v36 }
 0x305   : > { %v2300_v38 = vsel %vm2268_vm9, %v2267_v61, %v1910_v36 }
 0x307   : > { %v2037_v55 = vpop.permute.xlu0 %2036  ;;  %v2035_v60 = vpop.permute.xlu1 %2034 }
 0x308   : > { %v2333_v3 = vsel %vm2301_vm10, %v2300_v38, %v2037_v55  ;;  %v2332_v35 = vsel %vm2301_vm10, %v2299_v8, %v2035_v60 }
 0x309   : > { %3097 = vmatprep.mubr.msk.f32.mxu1 %vm2339_vm11, %v2332_v35 }
 0x30a   : > { %3098 = vmatmul.mubr.msk.f32.gmra.mrb[14].mxu1 %vm2339_vm11, %v2333_v3 }
 0x310   : > { %v3072_v18 = vpop.f32.mrb[12].mxu0 }
 0x311   : > { %2678 = vst.msk [vmem:[%s5104_s29 + $0x68] sm:$0xff] %vm2070_vm3, %v3072_v18  ;;  %v2566_v46 = vpop.f32.mrb[13].mxu0  ;;  %v2779_v45 = vmul.f32 %v3072_v18, %v3072_v18  ;;  %v2722_v63 = vsel %vm2070_vm3, %v3072_v18, 0.0 }
 0x312   : > { %2677 = vst.msk [vmem:[%s5104_s29 + $0x60] sm:$0xff] %vm2070_vm3, %v2566_v46  ;;  %v2720_v16 = vsel %vm2070_vm3, %v2566_v46, 0.0  ;;  %v2778_v22 = vmul.f32 %v2566_v46, %v2566_v46 }
 0x313   : > { %v2721_v53 = vadd.f32 %v2720_v16, %v2719_v20  ;;  %v2823_v42 = vsel %vm2070_vm3, %v2779_v45, 0.0 }
 0x314   : > { %v2821_v17 = vsel %vm2070_vm3, %v2778_v22, 0.0 }
 0x315   : > { %v2822_v51 = vadd.f32 %v2821_v17, %v2820_v9  ;;  %v2723_v40 = vadd.f32 %v2722_v63, %v2721_v53 }
 0x317   : > { %v2824_v43 = vadd.f32 %v2823_v42, %v2822_v51 }
 0x328   : > { %v3075_v28 = vpop.f32.mrb[14].mxu0 }
 0x329   : > { %2680 = vst.msk [vmem:[%s5104_s29 + $0x78] sm:$0xff] %vm2070_vm3, %v3075_v28  ;;  %v2576_v49 = vpop.f32.mrb[15].mxu0  ;;  %v2781_v54 = vmul.f32 %v3075_v28, %v3075_v28  ;;  %v2726_v56 = vsel %vm2070_vm3, %v3075_v28, 0.0 }
 0x32a   : > { %2679 = vst.msk [vmem:[%s5104_s29 + $0x70] sm:$0xff] %vm2070_vm3, %v2576_v49  ;;  %v2724_v1 = vsel %vm2070_vm3, %v2576_v49, 0.0  ;;  %v2780_v41 = vmul.f32 %v2576_v49, %v2576_v49 }
 0x32b   : > { %v2725_v62 = vadd.f32 %v2724_v1, %v2723_v40  ;;  %v2827_v39 = vsel %vm2070_vm3, %v2781_v54, 0.0 }
 0x32c   : > { %v2825_v0 = vsel %vm2070_vm3, %v2780_v41, 0.0 }
 0x32d   : > { %v2727_v48 = vadd.f32 %v2726_v56, %v2725_v62  ;;  %v2826_v23 = vadd.f32 %v2825_v0, %v2824_v43 }
 0x32f   : > { %v2828_v24 = vadd.f32 %v2827_v39, %v2826_v23 }
 0x340   : > { %v3078_v37 = vpop.f32.mrb[0].mxu1 }
 0x341   : > { %2682 = vst.msk [vmem:[%s5104_s29 + $0x88] sm:$0xff] %vm2070_vm3, %v3078_v37  ;;  %v2586_v2 = vpop.f32.mrb[1].mxu1  ;;  %v2783_v5 = vmul.f32 %v3078_v37, %v3078_v37  ;;  %v2730_v10 = vsel %vm2070_vm3, %v3078_v37, 0.0 }
 0x342   : > { %2681 = vst.msk [vmem:[%s5104_s29 + $0x80] sm:$0xff] %vm2070_vm3, %v2586_v2  ;;  %v2728_v47 = vsel %vm2070_vm3, %v2586_v2, 0.0  ;;  %v2782_v11 = vmul.f32 %v2586_v2, %v2586_v2 }
 0x343   : > { %v2729_v13 = vadd.f32 %v2728_v47, %v2727_v48  ;;  %v2831_v15 = vsel %vm2070_vm3, %v2783_v5, 0.0 }
 0x344   : > { %v2829_v31 = vsel %vm2070_vm3, %v2782_v11, 0.0 }
 0x345   : > { %v2830_v25 = vadd.f32 %v2829_v31, %v2828_v24  ;;  %v2731_v21 = vadd.f32 %v2730_v10, %v2729_v13 }
 0x347   : > { %v2832_v33 = vadd.f32 %v2831_v15, %v2830_v25 }
 0x358   : > { %v3081_v50 = vpop.f32.mrb[2].mxu1 }
 0x359   : > { %2684 = vst.msk [vmem:[%s5104_s29 + $0x98] sm:$0xff] %vm2070_vm3, %v3081_v50  ;;  %v2596_v27 = vpop.f32.mrb[3].mxu1  ;;  %v2785_v52 = vmul.f32 %v3081_v50, %v3081_v50  ;;  %v2734_v32 = vsel %vm2070_vm3, %v3081_v50, 0.0 }
 0x35a   : > { %2683 = vst.msk [vmem:[%s5104_s29 + $0x90] sm:$0xff] %vm2070_vm3, %v2596_v27  ;;  %v2732_v58 = vsel %vm2070_vm3, %v2596_v27, 0.0  ;;  %v2784_v57 = vmul.f32 %v2596_v27, %v2596_v27 }
 0x35b   : > { %v2733_v20 = vadd.f32 %v2732_v58, %v2731_v21  ;;  %v2835_v34 = vsel %vm2070_vm3, %v2785_v52, 0.0 }
 0x35c   : > { %v2833_v19 = vsel %vm2070_vm3, %v2784_v57, 0.0 }
 0x35d   : > { %v2834_v59 = vadd.f32 %v2833_v19, %v2832_v33  ;;  %v2735_v9 = vadd.f32 %v2734_v32, %v2733_v20 }
 0x35f   : > { %v2836_v12 = vadd.f32 %v2835_v34, %v2834_v59 }
 0x370   : > { %v3084_v30 = vpop.f32.mrb[4].mxu1 }
 0x371   : > { %2686 = vst.msk [vmem:[%s5104_s29 + $0xa8] sm:$0xff] %vm2070_vm3, %v3084_v30  ;;  %v2606_v44 = vpop.f32.mrb[5].mxu1  ;;  %v2787_v14 = vmul.f32 %v3084_v30, %v3084_v30  ;;  %v2738_v26 = vsel %vm2070_vm3, %v3084_v30, 0.0 }
 0x372   : > { %2685 = vst.msk [vmem:[%s5104_s29 + $0xa0] sm:$0xff] %vm2070_vm3, %v2606_v44  ;;  %v2736_v6 = vsel %vm2070_vm3, %v2606_v44, 0.0  ;;  %v2786_v36 = vmul.f32 %v2606_v44, %v2606_v44 }
 0x373   : > { %v2737_v7 = vadd.f32 %v2736_v6, %v2735_v9  ;;  %v2839_v8 = vsel %vm2070_vm3, %v2787_v14, 0.0 }
 0x374   : > { %v2837_v61 = vsel %vm2070_vm3, %v2786_v36, 0.0 }
 0x375   : > { %v2838_v29 = vadd.f32 %v2837_v61, %v2836_v12  ;;  %v2739_v4 = vadd.f32 %v2738_v26, %v2737_v7 }
 0x377   : > { %v2840_v55 = vadd.f32 %v2839_v8, %v2838_v29 }
 0x388   : > { %v3087_v38 = vpop.f32.mrb[6].mxu1 }
 0x389   : > { %2688 = vst.msk [vmem:[%s5104_s29 + $0xb8] sm:$0xff] %vm2070_vm3, %v3087_v38  ;;  %v2616_v60 = vpop.f32.mrb[7].mxu1  ;;  %v2789_v3 = vmul.f32 %v3087_v38, %v3087_v38  ;;  %v2742_v45 = vsel %vm2070_vm3, %v3087_v38, 0.0 }
 0x38a   : > { %2687 = vst.msk [vmem:[%s5104_s29 + $0xb0] sm:$0xff] %vm2070_vm3, %v2616_v60  ;;  %v2740_v35 = vsel %vm2070_vm3, %v2616_v60, 0.0  ;;  %v2788_v18 = vmul.f32 %v2616_v60, %v2616_v60 }
 0x38b   : > { %v2741_v46 = vadd.f32 %v2740_v35, %v2739_v4  ;;  %v2843_v63 = vsel %vm2070_vm3, %v2789_v3, 0.0 }
 0x38c   : > { %v2841_v16 = vsel %vm2070_vm3, %v2788_v18, 0.0 }
 0x38d   : > { %v2842_v22 = vadd.f32 %v2841_v16, %v2840_v55  ;;  %v2743_v53 = vadd.f32 %v2742_v45, %v2741_v46 }
 0x38f   : > { %v2844_v17 = vadd.f32 %v2843_v63, %v2842_v22 }
 0x3a0   : > { %v3090_v51 = vpop.f32.mrb[8].mxu1 }
 0x3a1   : > { %2690 = vst.msk [vmem:[%s5104_s29 + $0xc8] sm:$0xff] %vm2070_vm3, %v3090_v51  ;;  %v2626_v40 = vpop.f32.mrb[9].mxu1  ;;  %v2791_v42 = vmul.f32 %v3090_v51, %v3090_v51  ;;  %v2746_v54 = vsel %vm2070_vm3, %v3090_v51, 0.0 }
 0x3a2   : > { %2689 = vst.msk [vmem:[%s5104_s29 + $0xc0] sm:$0xff] %vm2070_vm3, %v2626_v40  ;;  %v2744_v43 = vsel %vm2070_vm3, %v2626_v40, 0.0  ;;  %v2790_v28 = vmul.f32 %v2626_v40, %v2626_v40 }
 0x3a3   : > { %v2745_v49 = vadd.f32 %v2744_v43, %v2743_v53  ;;  %v2847_v56 = vsel %vm2070_vm3, %v2791_v42, 0.0 }
 0x3a4   : > { %v2845_v1 = vsel %vm2070_vm3, %v2790_v28, 0.0 }
 0x3a5   : > { %v2846_v41 = vadd.f32 %v2845_v1, %v2844_v17  ;;  %v2747_v62 = vadd.f32 %v2746_v54, %v2745_v49 }
 0x3a7   : > { %v2848_v0 = vadd.f32 %v2847_v56, %v2846_v41 }
 0x3b8   : > { %v3093_v48 = vpop.f32.mrb[10].mxu1 }
 0x3b9   : > { %2692 = vst.msk [vmem:[%s5104_s29 + $0xd8] sm:$0xff] %vm2070_vm3, %v3093_v48  ;;  %v2636_v23 = vpop.f32.mrb[11].mxu1  ;;  %v2793_v39 = vmul.f32 %v3093_v48, %v3093_v48  ;;  %v2750_v5 = vsel %vm2070_vm3, %v3093_v48, 0.0 }
 0x3ba   : > { %2691 = vst.msk [vmem:[%s5104_s29 + $0xd0] sm:$0xff] %vm2070_vm3, %v2636_v23  ;;  %v2748_v24 = vsel %vm2070_vm3, %v2636_v23, 0.0  ;;  %v2792_v37 = vmul.f32 %v2636_v23, %v2636_v23 }
 0x3bb   : > { %v2749_v2 = vadd.f32 %v2748_v24, %v2747_v62  ;;  %v2851_v10 = vsel %vm2070_vm3, %v2793_v39, 0.0 }
 0x3bc   : > { %v2849_v47 = vsel %vm2070_vm3, %v2792_v37, 0.0 }
 0x3bd   : > { %v2850_v11 = vadd.f32 %v2849_v47, %v2848_v0  ;;  %v2751_v13 = vadd.f32 %v2750_v5, %v2749_v2 }
 0x3bf   : > { %v2852_v31 = vadd.f32 %v2851_v10, %v2850_v11 }
 0x3d0   : > { %v3096_v25 = vpop.f32.mrb[12].mxu1 }
 0x3d1   : > { %2694 = vst.msk [vmem:[%s5104_s29 + $0xe8] sm:$0xff] %vm2070_vm3, %v3096_v25  ;;  %v2646_v21 = vpop.f32.mrb[13].mxu1  ;;  %v2795_v15 = vmul.f32 %v3096_v25, %v3096_v25  ;;  %v2754_v52 = vsel %vm2070_vm3, %v3096_v25, 0.0 }
 0x3d2   : > { %2693 = vst.msk [vmem:[%s5104_s29 + $0xe0] sm:$0xff] %vm2070_vm3, %v2646_v21  ;;  %v2752_v33 = vsel %vm2070_vm3, %v2646_v21, 0.0  ;;  %v2794_v50 = vmul.f32 %v2646_v21, %v2646_v21 }
 0x3d3   : > { %v2753_v27 = vadd.f32 %v2752_v33, %v2751_v13  ;;  %v2855_v32 = vsel %vm2070_vm3, %v2795_v15, 0.0 }
 0x3d4   : > { %v2853_v58 = vsel %vm2070_vm3, %v2794_v50, 0.0 }
 0x3d5   : > { %v2854_v57 = vadd.f32 %v2853_v58, %v2852_v31  ;;  %v2755_v20 = vadd.f32 %v2754_v52, %v2753_v27 }
 0x3d7   : > { %v2856_v19 = vadd.f32 %v2855_v32, %v2854_v57 }
 0x3dd   : > { %v3099_v59 = vpop.f32.mrb[14].mxu1 }
 0x3de   : > { %2696 = vst.msk [vmem:[%s5104_s29 + $0xf8] sm:$0xff] %vm2070_vm3, %v3099_v59  ;;  %v2656_v9 = vpop.f32.mrb[15].mxu1  ;;  %v2797_v34 = vmul.f32 %v3099_v59, %v3099_v59  ;;  %v2758_v14 = vsel %vm2070_vm3, %v3099_v59, 0.0 }
 0x3df   : > { %2695 = vst.msk [vmem:[%s5104_s29 + $0xf0] sm:$0xff] %vm2070_vm3, %v2656_v9  ;;  %v2756_v12 = vsel %vm2070_vm3, %v2656_v9, 0.0  ;;  %v2796_v30 = vmul.f32 %v2656_v9, %v2656_v9 }
 0x3e0   : > { %v2757_v44 = vadd.f32 %v2756_v12, %v2755_v20  ;;  %v2859_v26 = vsel %vm2070_vm3, %v2797_v34, 0.0 }
 0x3e1   : > { %v2857_v6 = vsel %vm2070_vm3, %v2796_v30, 0.0 }
 0x3e2   : > { %v2759_v36 = vadd.f32 %v2758_v14, %v2757_v44  ;;  %v2858_v7 = vadd.f32 %v2857_v6, %v2856_v19 }
 0x3e4   : > { %v2760_v61 = vrot.slane %v2759_v36, 4  ;;  %v2860_v29 = vadd.f32 %v2859_v26, %v2858_v7 }
 0x3e6   : > { %v2761_v4 = vadd.f32 %v2760_v61, %v2759_v36  ;;  %v2861_v8 = vrot.slane %v2860_v29, 4 }
 0x3e8   : > { %v2762_v55 = vrot.slane %v2761_v4, 2  ;;  %v2862_v38 = vadd.f32 %v2861_v8, %v2860_v29 }
 0x3ea   : > { %v2763_v60 = vadd.f32 %v2762_v55, %v2761_v4  ;;  %v2863_v3 = vrot.slane %v2862_v38, 2 }
 0x3ec   : > { %v2764_v35 = vrot.slane %v2763_v60, 1  ;;  %v2864_v18 = vadd.f32 %v2863_v3, %v2862_v38 }
 0x3ee   : > { %v2865_v46 = vrot.slane %v2864_v18, 1  ;;  %v2765_v45 = vadd.f32 %v2764_v35, %v2763_v60 }
 0x3f0   : > { %v2866_v16 = vadd.f32 %v2865_v46, %v2864_v18 }
 0x3f2   : > { %v2867_v22 = vsel %vm467_vm1, %v2765_v45, %v2866_v16 }
 0x3f3   : > { %2869 = vst.msk [vmem:[%s262_s8] sm:$0x3] %vm2868_vm12, %v2867_v22 }
 0x3f4 PF: > { %s17_s21 = sadd.s32 1, %s3143_s21  }
 0x3f5   : > { %p14_p4 = scmp.ge.s32.totalorder %s17_s21, 4  }
 0x3f7   :  { %16 = sbr.rel (!%p14_p4) target bundleno = 1 (0x1), region = 82 }

</bundles_post_ra>
